<compile_context>
chip_gen: v6e
topology: v6e:2x2x1
jax: 0.10.0
libtpu: 0.0.40
codegen_flags: <defaults>
</compile_context>

<pallas_src>
import functools

import jax
import jax.numpy as jnp
from jax.experimental import pallas as pl
from jax.experimental.pallas import tpu as pltpu

TAU = 0.07
EPS = 1e-8


def _pick_tile(n):
    """Largest of 512/256/128 that divides n (n is a multiple of 128)."""
    for t in (512, 256, 128):
        if n % t == 0:
            return t
    return n


def _vmem_limit_bytes():
    """Per-generation scoped-VMEM budget (leaves headroom for Mosaic)."""
    try:
        cap = int(pltpu.get_tpu_info().vmem_capacity_bytes)
    except Exception:
        cap = 64 * 1024 * 1024
    return max(32 * 1024 * 1024, min(cap * 3 // 4, 96 * 1024 * 1024))


# ---------------------------------------------------------------------------
# Pass 1: shared MLP projector + cosine normalization (tiled over batch rows)
# ---------------------------------------------------------------------------
def _project_kernel(x_ref, y_ref, w1_ref, b1_ref, w2_ref, b2_ref,
                    px_ref, py_ref, *, inv_tau, b_real, tile, padded):
    """Outputs:
         px_ref : (tile, Do) bf16  normalized proj(x) with 1/tau folded in
         py_ref : (tile, Do) bf16  normalized proj(y)
    """
    w1 = w1_ref[...]          # bf16
    w2 = w2_ref[...]          # bf16
    b1 = b1_ref[...]          # f32
    b2 = b2_ref[...]          # f32

    def mlp_norm(v):          # v: (tile, D) bf16
        h = jnp.dot(v, w1, preferred_element_type=jnp.float32) + b1
        h = jnp.maximum(h, 0.0)                                   # relu
        p = jnp.dot(h.astype(jnp.bfloat16), w2,
                    preferred_element_type=jnp.float32) + b2
        # cosine normalization: eps-clamped rsqrt (== 1 / max(||p||, eps))
        ssq = jnp.sum(p * p, axis=-1, keepdims=True)
        return p * jax.lax.rsqrt(jnp.maximum(ssq, EPS * EPS))

    pxn = mlp_norm(x_ref[...])       # (tile, Do) f32
    pyn = mlp_norm(y_ref[...])       # (tile, Do) f32

    if padded:
        # zero padded rows so pass 2 sees exactly-zero similarity for them
        row_ids = (pl.program_id(0) * tile
                   + jax.lax.broadcasted_iota(jnp.int32, (tile, 1), 0))
        valid = row_ids < b_real
        pxn = jnp.where(valid, pxn, 0.0)
        pyn = jnp.where(valid, pyn, 0.0)

    # Fold 1/tau into one MXU operand instead of scaling the BxB sim matrix.
    px_ref[...] = (pxn * inv_tau).astype(jnp.bfloat16)
    py_ref[...] = pyn.astype(jnp.bfloat16)


# ---------------------------------------------------------------------------
# Pass 2: fused bidirectional logsumexp + positive-pair diagonal, one sweep
# ---------------------------------------------------------------------------
def _lse_kernel(q_ref, k_ref, acc_ref, row_s_ref, col_s_ref, *,
                inv_tau, b_real, tile, padded):
    """Grid (qi, ki), ki innermost.  Accumulates into the lane-dense (1,128)
    output:  sum_i log(row_s_i) + sum_j log(col_s_j) - 2 * sum_i sim[i,i],
    with sim = (px/tau) @ py^T and row/col sums of exp(sim - 1/tau).
    """
    qi = pl.program_id(0)
    ki = pl.program_id(1)
    nq = pl.num_programs(0)
    nk = pl.num_programs(1)

    @pl.when(jnp.logical_and(qi == 0, ki == 0))
    def _():
        acc_ref[...] = jnp.zeros_like(acc_ref)
        col_s_ref[...] = jnp.zeros_like(col_s_ref)

    @pl.when(ki == 0)
    def _():
        row_s_ref[...] = jnp.zeros_like(row_s_ref)

    # (tile, tile) similarity tile; contract feature axes directly (no .T).
    sim = jax.lax.dot_general(
        q_ref[...], k_ref[...],
        dimension_numbers=(((1,), (1,)), ((), ())),
        preferred_element_type=jnp.float32)

    # Bounded-domain logsumexp: |sim| <= 1/tau (cosine similarity in [-1,1]),
    # so exp(sim - 1/tau) in (0, 1] — a fixed shift replaces the online max
    # and ONE exp per element feeds both the row and the column accumulators.
    e = jnp.exp(sim - inv_tau)

    if padded:
        row_ids = qi * tile + jax.lax.broadcasted_iota(jnp.int32, (tile, 1), 0)
        col_ids = ki * tile + jax.lax.broadcasted_iota(jnp.int32, (1, tile), 1)
        valid_row = row_ids < b_real          # (tile, 1)
        valid_col = col_ids < b_real          # (1, tile)
        e_rows = jnp.where(valid_col, e, 0.0)  # drop padded columns
        e_cols = jnp.where(valid_row, e, 0.0)  # drop padded rows
    else:
        valid_row = valid_col = None
        e_rows = e
        e_cols = e

    # row accumulation (x -> y direction), carried across ki
    row_s_ref[...] = row_s_ref[...] + jnp.sum(e_rows, axis=1, keepdims=True)

    # column accumulation (y -> x direction), carried across qi in a
    # persistent (1, Bp) scratch; 128-aligned lane slice for block ki.
    csl = pl.ds(pl.multiple_of(ki * tile, tile), tile)
    col_s_ref[:, csl] = col_s_ref[:, csl] + jnp.sum(e_cols, axis=0,
                                                    keepdims=True)

    # positive-pair diagonal from the same bf16-quantized sim as the LSE
    @pl.when(qi == ki)
    def _():
        rr = jax.lax.broadcasted_iota(jnp.int32, sim.shape, 0)
        cc = jax.lax.broadcasted_iota(jnp.int32, sim.shape, 1)
        dmask = rr == cc
        if padded:
            dmask = jnp.logical_and(dmask, valid_row)
        acc_ref[...] = acc_ref[...] - 2.0 * jnp.sum(jnp.where(dmask, sim, 0.0))

    # finalize row logsumexp for this q block
    @pl.when(ki == nk - 1)
    def _():
        rs = row_s_ref[...]
        if padded:
            rs = jnp.where(valid_row, rs, 1.0)     # log(1) = 0 for pad rows
        acc_ref[...] = acc_ref[...] + jnp.sum(jnp.log(rs))

    # finalize column logsumexp for this k block
    @pl.when(qi == nq - 1)
    def _():
        cs = col_s_ref[:, csl]
        if padded:
            cs = jnp.where(valid_col, cs, 1.0)
        acc_ref[...] = acc_ref[...] + jnp.sum(jnp.log(cs))


# ---------------------------------------------------------------------------
# Wrapper
# ---------------------------------------------------------------------------
def contrast_loss_pallas(batch_x, batch_y, w1, b1, w2, b2, tau=TAU):
    B, D = batch_x.shape
    assert batch_y.shape == (B, D), "input features must share the same shape"
    Dh = w1.shape[1]
    Do = w2.shape[1]
    assert w1.shape[0] == D and w2.shape[0] == Dh

    inv_tau = 1.0 / tau
    Bp = ((B + 127) // 128) * 128          # pad batch to a multiple of 128
    padded = Bp != B
    tile = _pick_tile(Bp)                  # 256-512 when possible
    nb = Bp // tile
    vmem_limit = _vmem_limit_bytes()

    # bf16 MXU operands (f32 accumulation in-kernel); biases in f32.
    xb = batch_x.astype(jnp.bfloat16)
    yb = batch_y.astype(jnp.bfloat16)
    if padded:
        pad = Bp - B
        xb = jnp.pad(xb, ((0, pad), (0, 0)))
        yb = jnp.pad(yb, ((0, pad), (0, 0)))
    w1b = w1.astype(jnp.bfloat16)
    w2b = w2.astype(jnp.bfloat16)
    b1f = b1.astype(jnp.float32).reshape(1, Dh)
    b2f = b2.astype(jnp.float32).reshape(1, Do)

    # ---- pass 1: project + normalize both views -----------------------------
    px_s, py_n = pl.pallas_call(
        functools.partial(_project_kernel, inv_tau=inv_tau,
                          b_real=B, tile=tile, padded=padded),
        grid_spec=pltpu.PrefetchScalarGridSpec(
            num_scalar_prefetch=0,
            grid=(nb,),
            in_specs=[
                pl.BlockSpec((tile, D), lambda i: (i, 0)),
                pl.BlockSpec((tile, D), lambda i: (i, 0)),
                pl.BlockSpec((D, Dh), lambda i: (0, 0)),
                pl.BlockSpec((1, Dh), lambda i: (0, 0)),
                pl.BlockSpec((Dh, Do), lambda i: (0, 0)),
                pl.BlockSpec((1, Do), lambda i: (0, 0)),
            ],
            out_specs=[
                pl.BlockSpec((tile, Do), lambda i: (i, 0)),
                pl.BlockSpec((tile, Do), lambda i: (i, 0)),
            ]),
        out_shape=(
            jax.ShapeDtypeStruct((Bp, Do), jnp.bfloat16),
            jax.ShapeDtypeStruct((Bp, Do), jnp.bfloat16),
        ),
        compiler_params=pltpu.CompilerParams(
            dimension_semantics=("parallel",),
            vmem_limit_bytes=vmem_limit),
        cost_estimate=pl.CostEstimate(
            flops=4 * Bp * (D * Dh + Dh * Do),
            transcendentals=2 * Bp,
            bytes_accessed=2 * Bp * (D + Do) * 2 + (D * Dh + Dh * Do) * 2),
    )(xb, yb, w1b, b1f, w2b, b2f)

    # ---- pass 2: fused row+column logsumexp + diagonal, single sweep --------
    # Both grid axes are "arbitrary": row sums carry across ki, column sums
    # and the scalar accumulator carry across qi (sequential row-major grid).
    acc = pl.pallas_call(
        functools.partial(_lse_kernel, inv_tau=inv_tau,
                          b_real=B, tile=tile, padded=padded),
        grid_spec=pltpu.PrefetchScalarGridSpec(
            num_scalar_prefetch=0,
            grid=(nb, nb),
            in_specs=[
                pl.BlockSpec((tile, Do), lambda qi, ki: (qi, 0)),
                pl.BlockSpec((tile, Do), lambda qi, ki: (ki, 0)),
            ],
            out_specs=pl.BlockSpec((1, 128), lambda qi, ki: (0, 0)),
            scratch_shapes=[
                pltpu.VMEM((tile, 1), jnp.float32),   # running row sums
                pltpu.VMEM((1, Bp), jnp.float32),     # persistent column sums
            ]),
        out_shape=jax.ShapeDtypeStruct((1, 128), jnp.float32),
        compiler_params=pltpu.CompilerParams(
            dimension_semantics=("arbitrary", "arbitrary"),
            vmem_limit_bytes=vmem_limit),
        cost_estimate=pl.CostEstimate(
            flops=2 * Bp * Bp * Do + 4 * Bp * Bp,
            transcendentals=Bp * Bp + 2 * Bp,
            bytes_accessed=(nb + 1) * Bp * Do * 2 + 512),
    )(px_s, py_n)

    # acc = sum_i log(row_s_i) + sum_j log(col_s_j) - 2*sum(diag); each LSE
    # carries a +1/tau shift, so  loss = acc/(2B) + 1/tau.
    return acc[0, 0] / (2.0 * B) + inv_tau


# ---------------------------------------------------------------------------
# References
# ---------------------------------------------------------------------------
def contrast_loss_ref_f32(batch_x, batch_y, w1, b1, w2, b2, tau=TAU):
    """Pure-JAX f32 reference mirroring the PyTorch forward (world_size==1)."""
    def mlp(v):
        h = jnp.maximum(v @ w1 + b1, 0.0)
        return h @ w2 + b2

    def one_dir(i, j):
        i_n = i / jnp.maximum(jnp.linalg.norm(i, axis=-1, keepdims=True), EPS)
        j_n = j / jnp.maximum(jnp.linalg.norm(j, axis=-1, keepdims=True), EPS)
        sim = (i_n @ j_n.T) / tau
        lse = jax.scipy.special.logsumexp(sim, axis=-1)
        return -jnp.mean(jnp.diag(sim) - lse)

    px, py = mlp(batch_x), mlp(batch_y)
    return 0.5 * (one_dir(px, py) + one_dir(py, px))


def contrast_loss_ref_bf16(batch_x, batch_y, w1, b1, w2, b2, tau=TAU):
    """Reference using the same bf16-operand / f32-accum recipe as the kernels
    (diag taken from the same bf16 sim matrix) for a tight numerical check."""
    bf16 = jnp.bfloat16
    inv_tau = 1.0 / tau
    w1b, w2b = w1.astype(bf16), w2.astype(bf16)

    def mlp_norm(v):
        h = jnp.dot(v.astype(bf16), w1b, preferred_element_type=jnp.float32) + b1
        h = jnp.maximum(h, 0.0)
        p = jnp.dot(h.astype(bf16), w2b, preferred_element_type=jnp.float32) + b2
        ssq = jnp.sum(p * p, axis=-1, keepdims=True)
        return p * jax.lax.rsqrt(jnp.maximum(ssq, EPS * EPS))

    pxn, pyn = mlp_norm(batch_x), mlp_norm(batch_y)
    pxs = (pxn * inv_tau).astype(bf16)
    pyb = pyn.astype(bf16)
    sim = jnp.dot(pxs, pyb.T, preferred_element_type=jnp.float32)
    diag = jnp.diagonal(sim)
    lse_row = jax.scipy.special.logsumexp(sim, axis=1)
    lse_col = jax.scipy.special.logsumexp(sim, axis=0)
    B = batch_x.shape[0]
    return (jnp.sum(lse_row) + jnp.sum(lse_col) - 2.0 * jnp.sum(diag)) / (2.0 * B)


if __name__ == "__main__":
    # Hardware-aligned shapes: B multiple of 128, D = 128 lanes.
    B, D = 256, 128

    key = jax.random.PRNGKey(0)
    kx, ky, kw1, kb1, kw2, kb2 = jax.random.split(key, 6)

    batch_x = jax.random.normal(kx, (B, D), dtype=jnp.float32)
    batch_y = jax.random.normal(ky, (B, D), dtype=jnp.float32)

    # Deterministic MLP params: Linear(D, D) -> ReLU -> Linear(D, D)
    scale = 1.0 / jnp.sqrt(jnp.float32(D))
    w1 = jax.random.normal(kw1, (D, D), dtype=jnp.float32) * scale
    b1 = jax.random.normal(kb1, (D,), dtype=jnp.float32) * 0.1
    w2 = jax.random.normal(kw2, (D, D), dtype=jnp.float32) * scale
    b2 = jax.random.normal(kb2, (D,), dtype=jnp.float32) * 0.1

    loss_fn = jax.jit(contrast_loss_pallas)
    loss = loss_fn(batch_x, batch_y, w1, b1, w2, b2)
    jax.block_until_ready(loss)

    # Tight check vs. a reference using the same bf16-MXU / f32-accum recipe.
    ref_bf16 = contrast_loss_ref_bf16(batch_x, batch_y, w1, b1, w2, b2)
    assert jnp.allclose(loss, ref_bf16, atol=1e-3, rtol=1e-3), (loss, ref_bf16)

    # Sanity check vs. the full-f32 PyTorch-parity reference (bf16 operand
    # quantization tolerance).
    ref_f32 = contrast_loss_ref_f32(batch_x, batch_y, w1, b1, w2, b2)
    assert jnp.allclose(loss, ref_f32, atol=5e-2, rtol=5e-2), (loss, ref_f32)

    # Padding path: B not divisible by 128 (padded to 256, masked in-kernel).
    B2 = 160
    x2 = jax.random.normal(jax.random.PRNGKey(1), (B2, D), dtype=jnp.float32)
    y2 = jax.random.normal(jax.random.PRNGKey(2), (B2, D), dtype=jnp.float32)
    loss2 = loss_fn(x2, y2, w1, b1, w2, b2)
    jax.block_until_ready(loss2)
    ref2_bf16 = contrast_loss_ref_bf16(x2, y2, w1, b1, w2, b2)
    ref2_f32 = contrast_loss_ref_f32(x2, y2, w1, b1, w2, b2)
    assert jnp.allclose(loss2, ref2_bf16, atol=1e-3, rtol=1e-3), (loss2, ref2_bf16)
    assert jnp.allclose(loss2, ref2_f32, atol=5e-2, rtol=5e-2), (loss2, ref2_f32)

    print("KERNEL_OK")
</pallas_src>

<mosaic_0001>
module attributes {stable_mosaic.version = 11 : i64} {
  func.func @_project_kernel(%arg0: i32, %arg1: memref<256x128xbf16, #tpu.memory_space<vmem>>, %arg2: memref<256x128xbf16, #tpu.memory_space<vmem>>, %arg3: memref<128x128xbf16, #tpu.memory_space<vmem>>, %arg4: memref<1x128xf32, #tpu.memory_space<vmem>>, %arg5: memref<128x128xbf16, #tpu.memory_space<vmem>>, %arg6: memref<1x128xf32, #tpu.memory_space<vmem>>, %arg7: memref<256x128xbf16, #tpu.memory_space<vmem>>, %arg8: memref<256x128xbf16, #tpu.memory_space<vmem>>) attributes {dimension_semantics = [#tpu.dimension_semantics<parallel>], iteration_bounds = array<i64: 1>, scalar_prefetch = 0 : i64, scratch_operands = 0 : i64, tpu.core_type = #tpu.core_type<tc>, window_params = [{transform_indices = @transform_0, window_bounds = array<i64: 256, 128>}, {transform_indices = @transform_1, window_bounds = array<i64: 256, 128>}, {pipeline_mode = #tpu.pipeline_mode<synchronous>, transform_indices = @transform_2, window_bounds = array<i64: 128, 128>}, {pipeline_mode = #tpu.pipeline_mode<synchronous>, transform_indices = @transform_3, window_bounds = array<i64: 1, 128>}, {pipeline_mode = #tpu.pipeline_mode<synchronous>, transform_indices = @transform_4, window_bounds = array<i64: 128, 128>}, {pipeline_mode = #tpu.pipeline_mode<synchronous>, transform_indices = @transform_5, window_bounds = array<i64: 1, 128>}, {transform_indices = @transform_6, window_bounds = array<i64: 256, 128>}, {transform_indices = @transform_7, window_bounds = array<i64: 256, 128>}]} {
    %c0 = arith.constant 0 : index
    %c0_0 = arith.constant 0 : index
    %0 = vector.load %arg3[%c0, %c0_0] : memref<128x128xbf16, #tpu.memory_space<vmem>>, vector<128x128xbf16>
    %c0_1 = arith.constant 0 : index
    %c0_2 = arith.constant 0 : index
    %1 = vector.load %arg5[%c0_1, %c0_2] : memref<128x128xbf16, #tpu.memory_space<vmem>>, vector<128x128xbf16>
    %c0_3 = arith.constant 0 : index
    %c0_4 = arith.constant 0 : index
    %2 = vector.load %arg4[%c0_3, %c0_4] : memref<1x128xf32, #tpu.memory_space<vmem>>, vector<1x128xf32>
    %c0_5 = arith.constant 0 : index
    %c0_6 = arith.constant 0 : index
    %3 = vector.load %arg6[%c0_5, %c0_6] : memref<1x128xf32, #tpu.memory_space<vmem>>, vector<1x128xf32>
    %c0_7 = arith.constant 0 : index
    %c0_8 = arith.constant 0 : index
    %4 = vector.load %arg1[%c0_7, %c0_8] : memref<256x128xbf16, #tpu.memory_space<vmem>>, vector<256x128xbf16>
    %cst = arith.constant dense<0.000000e+00> : vector<256x128xf32>
    %5 = tpu.matmul %4, %0, %cst {dimension_numbers = #tpu.dot_dimension_numbers<[1], [0], [0], [1], [0, 0, 1, 1], [], []>} : vector<256x128xbf16>, vector<128x128xbf16>, vector<256x128xf32> -> vector<256x128xf32>
    %6 = vector.broadcast %2 : vector<1x128xf32> to vector<256x128xf32>
    %7 = arith.addf %5, %6 : vector<256x128xf32>
    %cst_9 = arith.constant 0.000000e+00 : f32
    %8 = vector.broadcast %cst_9 : f32 to vector<256x128xf32>
    %9 = arith.maximumf %7, %8 : vector<256x128xf32>
    %10 = arith.truncf %9 : vector<256x128xf32> to vector<256x128xbf16>
    %cst_10 = arith.constant dense<0.000000e+00> : vector<256x128xf32>
    %11 = tpu.matmul %10, %1, %cst_10 {dimension_numbers = #tpu.dot_dimension_numbers<[1], [0], [0], [1], [0, 0, 1, 1], [], []>} : vector<256x128xbf16>, vector<128x128xbf16>, vector<256x128xf32> -> vector<256x128xf32>
    %12 = vector.broadcast %3 : vector<1x128xf32> to vector<256x128xf32>
    %13 = arith.addf %11, %12 : vector<256x128xf32>
    %14 = arith.mulf %13, %13 : vector<256x128xf32>
    %cst_11 = arith.constant dense<0.000000e+00> : vector<256xf32>
    %15 = vector.multi_reduction <add>, %14, %cst_11 [1] : vector<256x128xf32> to vector<256xf32>
    %16 = vector.shape_cast %15 : vector<256xf32> to vector<256x1xf32>
    %cst_12 = arith.constant 1.000000e-16 : f32
    %17 = vector.broadcast %cst_12 : f32 to vector<256x1xf32>
    %18 = arith.maximumf %16, %17 : vector<256x1xf32>
    %19 = math.rsqrt %18 : vector<256x1xf32>
    %20 = vector.broadcast %19 : vector<256x1xf32> to vector<256x128xf32>
    %21 = arith.mulf %13, %20 : vector<256x128xf32>
    %c0_13 = arith.constant 0 : index
    %c0_14 = arith.constant 0 : index
    %22 = vector.load %arg2[%c0_13, %c0_14] : memref<256x128xbf16, #tpu.memory_space<vmem>>, vector<256x128xbf16>
    %cst_15 = arith.constant dense<0.000000e+00> : vector<256x128xf32>
    %23 = tpu.matmul %22, %0, %cst_15 {dimension_numbers = #tpu.dot_dimension_numbers<[1], [0], [0], [1], [0, 0, 1, 1], [], []>} : vector<256x128xbf16>, vector<128x128xbf16>, vector<256x128xf32> -> vector<256x128xf32>
    %24 = vector.broadcast %2 : vector<1x128xf32> to vector<256x128xf32>
    %25 = arith.addf %23, %24 : vector<256x128xf32>
    %cst_16 = arith.constant 0.000000e+00 : f32
    %26 = vector.broadcast %cst_16 : f32 to vector<256x128xf32>
    %27 = arith.maximumf %25, %26 : vector<256x128xf32>
    %28 = arith.truncf %27 : vector<256x128xf32> to vector<256x128xbf16>
    %cst_17 = arith.constant dense<0.000000e+00> : vector<256x128xf32>
    %29 = tpu.matmul %28, %1, %cst_17 {dimension_numbers = #tpu.dot_dimension_numbers<[1], [0], [0], [1], [0, 0, 1, 1], [], []>} : vector<256x128xbf16>, vector<128x128xbf16>, vector<256x128xf32> -> vector<256x128xf32>
    %30 = vector.broadcast %3 : vector<1x128xf32> to vector<256x128xf32>
    %31 = arith.addf %29, %30 : vector<256x128xf32>
    %32 = arith.mulf %31, %31 : vector<256x128xf32>
    %cst_18 = arith.constant dense<0.000000e+00> : vector<256xf32>
    %33 = vector.multi_reduction <add>, %32, %cst_18 [1] : vector<256x128xf32> to vector<256xf32>
    %34 = vector.shape_cast %33 : vector<256xf32> to vector<256x1xf32>
    %cst_19 = arith.constant 1.000000e-16 : f32
    %35 = vector.broadcast %cst_19 : f32 to vector<256x1xf32>
    %36 = arith.maximumf %34, %35 : vector<256x1xf32>
    %37 = math.rsqrt %36 : vector<256x1xf32>
    %38 = vector.broadcast %37 : vector<256x1xf32> to vector<256x128xf32>
    %39 = arith.mulf %31, %38 : vector<256x128xf32>
    %cst_20 = arith.constant 14.2857141 : f32
    %40 = vector.broadcast %cst_20 : f32 to vector<256x128xf32>
    %41 = arith.mulf %21, %40 : vector<256x128xf32>
    %42 = arith.truncf %41 : vector<256x128xf32> to vector<256x128xbf16>
    %c0_21 = arith.constant 0 : index
    %c0_22 = arith.constant 0 : index
    %43 = vector.load %arg7[%c0_21, %c0_22] : memref<256x128xbf16, #tpu.memory_space<vmem>>, vector<256x128xbf16>
    tpu.vector_store %arg7[%c0_21, %c0_22], %42 {strides = array<i32>} : memref<256x128xbf16, #tpu.memory_space<vmem>>, vector<256x128xbf16>,
    %44 = arith.truncf %39 : vector<256x128xf32> to vector<256x128xbf16>
    %c0_23 = arith.constant 0 : index
    %c0_24 = arith.constant 0 : index
    %45 = vector.load %arg8[%c0_23, %c0_24] : memref<256x128xbf16, #tpu.memory_space<vmem>>, vector<256x128xbf16>
    tpu.vector_store %arg8[%c0_23, %c0_24], %44 {strides = array<i32>} : memref<256x128xbf16, #tpu.memory_space<vmem>>, vector<256x128xbf16>,
    return
  }
  func.func @transform_0(%arg0: i32) -> (i32, i32) {
    %c0_i32 = arith.constant 0 : i32
    %c0_i32_0 = arith.constant 0 : i32
    return %arg0, %c0_i32 : i32, i32
  }
  func.func @transform_1(%arg0: i32) -> (i32, i32) {
    %c0_i32 = arith.constant 0 : i32
    %c0_i32_0 = arith.constant 0 : i32
    return %arg0, %c0_i32 : i32, i32
  }
  func.func @transform_2(%arg0: i32) -> (i32, i32) {
    %c0_i32 = arith.constant 0 : i32
    %c0_i32_0 = arith.constant 0 : i32
    %c0_i32_1 = arith.constant 0 : i32
    return %c0_i32, %c0_i32_0 : i32, i32
  }
  func.func @transform_3(%arg0: i32) -> (i32, i32) {
    %c0_i32 = arith.constant 0 : i32
    %c0_i32_0 = arith.constant 0 : i32
    %c0_i32_1 = arith.constant 0 : i32
    return %c0_i32, %c0_i32_0 : i32, i32
  }
  func.func @transform_4(%arg0: i32) -> (i32, i32) {
    %c0_i32 = arith.constant 0 : i32
    %c0_i32_0 = arith.constant 0 : i32
    %c0_i32_1 = arith.constant 0 : i32
    return %c0_i32, %c0_i32_0 : i32, i32
  }
  func.func @transform_5(%arg0: i32) -> (i32, i32) {
    %c0_i32 = arith.constant 0 : i32
    %c0_i32_0 = arith.constant 0 : i32
    %c0_i32_1 = arith.constant 0 : i32
    return %c0_i32, %c0_i32_0 : i32, i32
  }
  func.func @transform_6(%arg0: i32) -> (i32, i32) {
    %c0_i32 = arith.constant 0 : i32
    %c0_i32_0 = arith.constant 0 : i32
    return %arg0, %c0_i32 : i32, i32
  }
  func.func @transform_7(%arg0: i32) -> (i32, i32) {
    %c0_i32 = arith.constant 0 : i32
    %c0_i32_0 = arith.constant 0 : i32
    return %arg0, %c0_i32 : i32, i32
  }
}

module attributes {stable_mosaic.version = 11 : i64} {
  func.func @_lse_kernel(%arg0: i32, %arg1: i32, %arg2: memref<256x128xbf16, #tpu.memory_space<vmem>>, %arg3: memref<256x128xbf16, #tpu.memory_space<vmem>>, %arg4: memref<1x128xf32, #tpu.memory_space<vmem>>, %arg5: memref<256x1xf32, #tpu.memory_space<vmem>>, %arg6: memref<1x256xf32, #tpu.memory_space<vmem>>) attributes {dimension_semantics = [#tpu.dimension_semantics<arbitrary>, #tpu.dimension_semantics<arbitrary>], iteration_bounds = array<i64: 1, 1>, scalar_prefetch = 0 : i64, scratch_operands = 2 : i64, tpu.core_type = #tpu.core_type<tc>, window_params = [{transform_indices = @transform_0, window_bounds = array<i64: 256, 128>}, {transform_indices = @transform_1, window_bounds = array<i64: 256, 128>}, {pipeline_mode = #tpu.pipeline_mode<synchronous>, transform_indices = @transform_2, window_bounds = array<i64: 1, 128>}]} {
    %c0_i32 = arith.constant 0 : i32
    %0 = arith.cmpi eq, %arg0, %c0_i32 : i32
    %c0_i32_0 = arith.constant 0 : i32
    %1 = arith.cmpi eq, %arg1, %c0_i32_0 : i32
    %2 = arith.andi %0, %1 : i1
    %3 = arith.extui %2 : i1 to i32
    %c0_i32_1 = arith.constant 0 : i32
    %4 = arith.cmpi ne, %3, %c0_i32_1 : i32
    scf.if %4 {
      %cst_21 = arith.constant 0.000000e+00 : f32
      %37 = vector.broadcast %cst_21 : f32 to vector<1x128xf32>
      %c0_22 = arith.constant 0 : index
      %c0_23 = arith.constant 0 : index
      %38 = vector.load %arg4[%c0_22, %c0_23] : memref<1x128xf32, #tpu.memory_space<vmem>>, vector<1x128xf32>
      tpu.vector_store %arg4[%c0_22, %c0_23], %37 {strides = array<i32>} : memref<1x128xf32, #tpu.memory_space<vmem>>, vector<1x128xf32>,
      %cst_24 = arith.constant 0.000000e+00 : f32
      %39 = vector.broadcast %cst_24 : f32 to vector<1x256xf32>
      %c0_25 = arith.constant 0 : index
      %c0_26 = arith.constant 0 : index
      %40 = vector.load %arg6[%c0_25, %c0_26] : memref<1x256xf32, #tpu.memory_space<vmem>>, vector<1x256xf32>
      tpu.vector_store %arg6[%c0_25, %c0_26], %39 {strides = array<i32>} : memref<1x256xf32, #tpu.memory_space<vmem>>, vector<1x256xf32>,
    } else {
    }
    %c0_i32_2 = arith.constant 0 : i32
    %5 = arith.cmpi eq, %arg1, %c0_i32_2 : i32
    %6 = arith.extui %5 : i1 to i32
    %c0_i32_3 = arith.constant 0 : i32
    %7 = arith.cmpi ne, %6, %c0_i32_3 : i32
    scf.if %7 {
      %cst_21 = arith.constant 0.000000e+00 : f32
      %37 = vector.broadcast %cst_21 : f32 to vector<256x1xf32>
      %c0_22 = arith.constant 0 : index
      %c0_23 = arith.constant 0 : index
      %38 = vector.load %arg5[%c0_22, %c0_23] : memref<256x1xf32, #tpu.memory_space<vmem>>, vector<256x1xf32>
      tpu.vector_store %arg5[%c0_22, %c0_23], %37 {strides = array<i32>} : memref<256x1xf32, #tpu.memory_space<vmem>>, vector<256x1xf32>,
    } else {
    }
    %c0 = arith.constant 0 : index
    %c0_4 = arith.constant 0 : index
    %8 = vector.load %arg2[%c0, %c0_4] : memref<256x128xbf16, #tpu.memory_space<vmem>>, vector<256x128xbf16>
    %c0_5 = arith.constant 0 : index
    %c0_6 = arith.constant 0 : index
    %9 = vector.load %arg3[%c0_5, %c0_6] : memref<256x128xbf16, #tpu.memory_space<vmem>>, vector<256x128xbf16>
    %cst = arith.constant dense<0.000000e+00> : vector<256x256xf32>
    %10 = tpu.matmul %8, %9, %cst {dimension_numbers = #tpu.dot_dimension_numbers<[1], [1], [0], [0], [0, 0, 1, 0], [], []>} : vector<256x128xbf16>, vector<256x128xbf16>, vector<256x256xf32> -> vector<256x256xf32>
    %cst_7 = arith.constant 14.2857141 : f32
    %11 = vector.broadcast %cst_7 : f32 to vector<256x256xf32>
    %12 = arith.subf %10, %11 : vector<256x256xf32>
    %13 = math.exp %12 : vector<256x256xf32>
    %c0_8 = arith.constant 0 : index
    %c0_9 = arith.constant 0 : index
    %14 = vector.load %arg5[%c0_8, %c0_9] : memref<256x1xf32, #tpu.memory_space<vmem>>, vector<256x1xf32>
    %cst_10 = arith.constant dense<0.000000e+00> : vector<256xf32>
    %15 = vector.multi_reduction <add>, %13, %cst_10 [1] : vector<256x256xf32> to vector<256xf32>
    %16 = vector.shape_cast %15 : vector<256xf32> to vector<256x1xf32>
    %17 = arith.addf %14, %16 : vector<256x1xf32>
    %c0_11 = arith.constant 0 : index
    %c0_12 = arith.constant 0 : index
    %18 = vector.load %arg5[%c0_11, %c0_12] : memref<256x1xf32, #tpu.memory_space<vmem>>, vector<256x1xf32>
    tpu.vector_store %arg5[%c0_11, %c0_12], %17 {strides = array<i32>} : memref<256x1xf32, #tpu.memory_space<vmem>>, vector<256x1xf32>,
    %c256_i32 = arith.constant 256 : i32
    %19 = arith.muli %arg1, %c256_i32 : i32
    %20 = tpu.assume_multiple %19, 256 : i32
    %c0_13 = arith.constant 0 : index
    %21 = arith.index_cast %20 : i32 to index
    %22 = vector.load %arg6[%c0_13, %21] : memref<1x256xf32, #tpu.memory_space<vmem>>, vector<1x256xf32>
    %cst_14 = arith.constant dense<0.000000e+00> : vector<256xf32>
    %23 = vector.multi_reduction <add>, %13, %cst_14 [0] : vector<256x256xf32> to vector<256xf32>
    %24 = vector.shape_cast %23 : vector<256xf32> to vector<1x256xf32>
    %25 = arith.addf %22, %24 : vector<1x256xf32>
    %c0_15 = arith.constant 0 : index
    %26 = arith.index_cast %20 : i32 to index
    %27 = vector.load %arg6[%c0_15, %26] : memref<1x256xf32, #tpu.memory_space<vmem>>, vector<1x256xf32>
    tpu.vector_store %arg6[%c0_15, %26], %25 {strides = array<i32>} : memref<1x256xf32, #tpu.memory_space<vmem>>, vector<1x256xf32>,
    %28 = arith.cmpi eq, %arg0, %arg1 : i32
    %29 = arith.extui %28 : i1 to i32
    %c0_i32_16 = arith.constant 0 : i32
    %30 = arith.cmpi ne, %29, %c0_i32_16 : i32
    scf.if %30 {
      %37 = tpu.iota {dimensions = array<i32: 0>} : vector<256x256xi32>
      %38 = tpu.iota {dimensions = array<i32: 1>} : vector<256x256xi32>
      %39 = arith.cmpi eq, %37, %38 : vector<256x256xi32>
      %c0_21 = arith.constant 0 : index
      %c0_22 = arith.constant 0 : index
      %40 = vector.load %arg4[%c0_21, %c0_22] : memref<1x128xf32, #tpu.memory_space<vmem>>, vector<1x128xf32>
      %cst_23 = arith.constant 0.000000e+00 : f32
      %41 = vector.broadcast %cst_23 : f32 to vector<256x256xf32>
      %42 = arith.select %39, %10, %41 : vector<256x256xi1>, vector<256x256xf32>
      %43 = vector.shape_cast %42 : vector<256x256xf32> to vector<1x256x256xf32>
      %cst_24 = arith.constant dense<0.000000e+00> : vector<1xf32>
      %44 = vector.multi_reduction <add>, %43, %cst_24 [1, 2] : vector<1x256x256xf32> to vector<1xf32>
      %45 = vector.shape_cast %44 : vector<1xf32> to vector<1x1x1xf32>
      %46 = vector.extract %45[0, 0, 0] : f32 from vector<1x1x1xf32>
      %cst_25 = arith.constant 2.000000e+00 : f32
      %47 = arith.mulf %cst_25, %46 : f32
      %48 = vector.broadcast %47 : f32 to vector<1x128xf32>
      %49 = arith.subf %40, %48 : vector<1x128xf32>
      %c0_26 = arith.constant 0 : index
      %c0_27 = arith.constant 0 : index
      %50 = vector.load %arg4[%c0_26, %c0_27] : memref<1x128xf32, #tpu.memory_space<vmem>>, vector<1x128xf32>
      tpu.vector_store %arg4[%c0_26, %c0_27], %49 {strides = array<i32>} : memref<1x128xf32, #tpu.memory_space<vmem>>, vector<1x128xf32>,
    } else {
    }
    %c0_i32_17 = arith.constant 0 : i32
    %31 = arith.cmpi eq, %arg1, %c0_i32_17 : i32
    %32 = arith.extui %31 : i1 to i32
    %c0_i32_18 = arith.constant 0 : i32
    %33 = arith.cmpi ne, %32, %c0_i32_18 : i32
    scf.if %33 {
      %c0_21 = arith.constant 0 : index
      %c0_22 = arith.constant 0 : index
      %37 = vector.load %arg5[%c0_21, %c0_22] : memref<256x1xf32, #tpu.memory_space<vmem>>, vector<256x1xf32>
      %c0_23 = arith.constant 0 : index
      %c0_24 = arith.constant 0 : index
      %38 = vector.load %arg4[%c0_23, %c0_24] : memref<1x128xf32, #tpu.memory_space<vmem>>, vector<1x128xf32>
      %39 = math.log %37 : vector<256x1xf32>
      %40 = vector.shape_cast %39 : vector<256x1xf32> to vector<1x256x1xf32>
      %cst_25 = arith.constant dense<0.000000e+00> : vector<1xf32>
      %41 = vector.multi_reduction <add>, %40, %cst_25 [1, 2] : vector<1x256x1xf32> to vector<1xf32>
      %42 = vector.shape_cast %41 : vector<1xf32> to vector<1x1x1xf32>
      %43 = vector.extract %42[0, 0, 0] : f32 from vector<1x1x1xf32>
      %44 = vector.broadcast %43 : f32 to vector<1x128xf32>
      %45 = arith.addf %38, %44 : vector<1x128xf32>
      %c0_26 = arith.constant 0 : index
      %c0_27 = arith.constant 0 : index
      %46 = vector.load %arg4[%c0_26, %c0_27] : memref<1x128xf32, #tpu.memory_space<vmem>>, vector<1x128xf32>
      tpu.vector_store %arg4[%c0_26, %c0_27], %45 {strides = array<i32>} : memref<1x128xf32, #tpu.memory_space<vmem>>, vector<1x128xf32>,
    } else {
    }
    %c0_i32_19 = arith.constant 0 : i32
    %34 = arith.cmpi eq, %arg0, %c0_i32_19 : i32
    %35 = arith.extui %34 : i1 to i32
    %c0_i32_20 = arith.constant 0 : i32
    %36 = arith.cmpi ne, %35, %c0_i32_20 : i32
    scf.if %36 {
      %c0_21 = arith.constant 0 : index
      %37 = arith.index_cast %20 : i32 to index
      %38 = vector.load %arg6[%c0_21, %37] : memref<1x256xf32, #tpu.memory_space<vmem>>, vector<1x256xf32>
      %c0_22 = arith.constant 0 : index
      %c0_23 = arith.constant 0 : index
      %39 = vector.load %arg4[%c0_22, %c0_23] : memref<1x128xf32, #tpu.memory_space<vmem>>, vector<1x128xf32>
      %40 = math.log %38 : vector<1x256xf32>
      %41 = vector.shape_cast %40 : vector<1x256xf32> to vector<1x1x256xf32>
      %cst_24 = arith.constant dense<0.000000e+00> : vector<1xf32>
      %42 = vector.multi_reduction <add>, %41, %cst_24 [1, 2] : vector<1x1x256xf32> to vector<1xf32>
      %43 = vector.shape_cast %42 : vector<1xf32> to vector<1x1x1xf32>
      %44 = vector.extract %43[0, 0, 0] : f32 from vector<1x1x1xf32>
      %45 = vector.broadcast %44 : f32 to vector<1x128xf32>
      %46 = arith.addf %39, %45 : vector<1x128xf32>
      %c0_25 = arith.constant 0 : index
      %c0_26 = arith.constant 0 : index
      %47 = vector.load %arg4[%c0_25, %c0_26] : memref<1x128xf32, #tpu.memory_space<vmem>>, vector<1x128xf32>
      tpu.vector_store %arg4[%c0_25, %c0_26], %46 {strides = array<i32>} : memref<1x128xf32, #tpu.memory_space<vmem>>, vector<1x128xf32>,
    } else {
    }
    return
  }
  func.func @transform_0(%arg0: i32, %arg1: i32) -> (i32, i32) {
    %c0_i32 = arith.constant 0 : i32
    %c0_i32_0 = arith.constant 0 : i32
    return %arg0, %c0_i32 : i32, i32
  }
  func.func @transform_1(%arg0: i32, %arg1: i32) -> (i32, i32) {
    %c0_i32 = arith.constant 0 : i32
    %c0_i32_0 = arith.constant 0 : i32
    return %arg1, %c0_i32 : i32, i32
  }
  func.func @transform_2(%arg0: i32, %arg1: i32) -> (i32, i32) {
    %c0_i32 = arith.constant 0 : i32
    %c0_i32_0 = arith.constant 0 : i32
    %c0_i32_1 = arith.constant 0 : i32
    return %c0_i32, %c0_i32_0 : i32, i32
  }
}

</mosaic_0001>

<bundles_post_ra>
// kernel: contrast_loss_pallas.3
= control target key start
LH: loop header
LB: loop body
LE: loop exit
PB: predicated region body
PF: predicated region fallthrough
CT: control target
= control target key end

     0   :  { %v19_v32 = vlaneseq  ;;  %v2668_v33 = vmov 0  ;;  %v2656_v34 = vmov 0.0   ;;  %vm27_vm1 = vcmask 7168   ;;  %s2653_s1 = inlined_call_operand.vmem [shape: bf16[256,128], index: 1, kind: input, shape index: {}]   ;;  %s2654_s0 = inlined_call_operand.vmem [shape: bf16[256,128], index: 0, kind: input, shape index: {}]   ;;  %s2655_s2 = inlined_call_operand.vmem [shape: f32[1,128], index: 2, kind: output, shape index: {}]  }
   0x1   :  { %v1624_v0 = vld [vmem:[%s2653_s1 + $0x78] sm:$0xff]   ;;  %v1626_v2 = vld [vmem:[%s2653_s1 + $0x70] sm:$0xff]   ;;  %v1628_v4 = vld [vmem:[%s2653_s1 + $0x68] sm:$0xff]   ;;  %28 = vst.msk [vmem:[#allocation2] sm:$0xff] %vm27_vm1, %v2656_v34 }
   0x2   :  { %v1625_v1 = vld [vmem:[%s2653_s1 + $0x38] sm:$0xff]   ;;  %1552 = vmatprep.subr.bf16.mxu0 %v1624_v0  ;;  %1600 = vmatprep.subr.bf16.mxu1 %v1624_v0  ;;  %v1627_v3 = vld [vmem:[%s2653_s1 + $0x30] sm:$0xff]   ;;  %v1629_v5 = vld [vmem:[%s2653_s1 + $0x28] sm:$0xff]   ;;  %vm1964_vm0 = vcmp.lt.s32.totalorder %v19_v32, 256  ;;  %29 = vst.msk [vmem:[#allocation2 + $0x8] sm:$0xff] %vm27_vm1, %v2656_v34  ;;  %v2057_v56 = vshrl.u32 %v19_v32, 7 }
   0x3   :  { %1553 = vmatpush3.bf16.xpose.msra.mxu0 %v1625_v1  ;;  %1608 = vmatpush3.bf16.xpose.msra.mxu1 %v1625_v1  ;;  %v1630_v6 = vld [vmem:[%s2653_s1 + $0x60] sm:$0xff]   ;;  %v1632_v10 = vld [vmem:[%s2653_s1 + $0x58] sm:$0xff]   ;;  %v1634_v12 = vld [vmem:[%s2653_s1 + $0x50] sm:$0xff]   ;;  %v2669_v33 = vsel %vm1964_vm0, 4294967295, %v2668_v33  ;;  %23 = vst.msk [vmem:[#allocation3] sm:$0x3] %vm1964_vm0, %v2656_v34 }
   0x4   :  { %1554 = vmatprep.subr.bf16.mxu0 %v1626_v2  ;;  %1601 = vmatprep.subr.bf16.mxu1 %v1626_v2  ;;  %v1640_v7 = vld [vmem:[%s2654_s0] sm:$0xff]   ;;  %v1633_v11 = vld [vmem:[%s2653_s1 + $0x18] sm:$0xff]   ;;  %v1635_v13 = vld [vmem:[%s2653_s1 + $0x10] sm:$0xff]   ;;  %2670 = vst [vmem:[#allocation4_spill] sm:$0xff] %v2669_v33  ;;  %v2064_v61 = vand.u32 127, %v19_v32  ;;  %v2067_v62 = vadd.s32 8, %v2057_v56 }
   0x5   :  { %1568 = vmatprep.mubr.bf16.mxu0 %v1640_v7  ;;  %v1644_v8 = vld [vmem:[%s2654_s0 + $0x40] sm:$0xff]   ;;  %v1636_v14 = vld [vmem:[%s2653_s1 + $0x48] sm:$0xff]   ;;  %v1642_v20 = vld [vmem:[%s2654_s0 + $0x10] sm:$0xff]   ;;  %30 = vst.msk [vmem:[#allocation2 + $0x10] sm:$0xff] %vm27_vm1, %v2656_v34  ;;  %v2071_v1 = vadd.s32 16, %v2057_v56  ;;  %v2074_v2 = vadd.s32 24, %v2057_v56 }
   0x6   :  { %1584 = vmatprep.mubr.bf16.mxu1 %v1644_v8  ;;  %v1631_v9 = vld [vmem:[%s2653_s1 + $0x20] sm:$0xff]   ;;  %v1637_v15 = vld [vmem:[%s2653_s1 + $0x8] sm:$0xff]   ;;  %v1648_v21 = vld [vmem:[%s2654_s0 + $0x50] sm:$0xff]   ;;  %31 = vst.msk [vmem:[#allocation2 + $0x18] sm:$0xff] %vm27_vm1, %v2656_v34  ;;  %vm1037_vm2 = vcmp.eq.s32.totalorder %v2057_v56, %v2064_v61  ;;  %vm1039_vm3 = vcmp.eq.s32.totalorder %v2067_v62, %v2064_v61  ;;  %v2197_v33 = vadd.s32 208, %v2057_v56 }
   0x7   :  { %v1638_v16 = vld [vmem:[%s2653_s1 + $0x40] sm:$0xff]   ;;  %v1641_v18 = vld [vmem:[%s2654_s0 + $0x8] sm:$0xff]   ;;  %v1643_v22 = vld [vmem:[%s2654_s0 + $0x18] sm:$0xff]   ;;  %32 = vst.msk [vmem:[#allocation2 + $0x20] sm:$0xff] %vm27_vm1, %v2656_v34  ;;  %vm1041_vm4 = vcmp.eq.s32.totalorder %v2071_v1, %v2064_v61  ;;  %vm1043_vm5 = vcmp.eq.s32.totalorder %v2074_v2, %v2064_v61 }
   0x8   :  { %v1639_v17 = vld [vmem:[%s2653_s1] sm:$0xff]   ;;  %v1646_v19 = vld [vmem:[%s2654_s0 + $0x48] sm:$0xff]   ;;  %v1650_v23 = vld [vmem:[%s2654_s0 + $0x58] sm:$0xff]   ;;  %33 = vst.msk [vmem:[#allocation2 + $0x28] sm:$0xff] %vm27_vm1, %v2656_v34 }
   0x9   :  { %v1645_v24 = vld [vmem:[%s2654_s0 + $0x20] sm:$0xff]   ;;  %v1647_v26 = vld [vmem:[%s2654_s0 + $0x28] sm:$0xff]   ;;  %v1649_v28 = vld [vmem:[%s2654_s0 + $0x30] sm:$0xff]   ;;  %34 = vst.msk [vmem:[#allocation2 + $0x30] sm:$0xff] %vm27_vm1, %v2656_v34 }
   0xa   :  { %v1652_v25 = vld [vmem:[%s2654_s0 + $0x60] sm:$0xff]   ;;  %v1653_v27 = vld [vmem:[%s2654_s0 + $0x68] sm:$0xff]   ;;  %v1654_v29 = vld [vmem:[%s2654_s0 + $0x70] sm:$0xff]   ;;  %35 = vst.msk [vmem:[#allocation2 + $0x38] sm:$0xff] %vm27_vm1, %v2656_v34 }
   0xb   :  { %1555 = vmatpush3.bf16.xpose.msra.mxu0 %v1627_v3  ;;  %1609 = vmatpush3.bf16.xpose.msra.mxu1 %v1627_v3  ;;  %v1651_v30 = vld [vmem:[%s2654_s0 + $0x38] sm:$0xff]   ;;  %36 = vst.msk [vmem:[#allocation2 + $0x40] sm:$0xff] %vm27_vm1, %v2656_v34  ;;  %37 = vst.msk [vmem:[#allocation2 + $0x48] sm:$0xff] %vm27_vm1, %v2656_v34 }
   0xc   :  { %1556 = vmatprep.subr.bf16.mxu0 %v1628_v4  ;;  %1602 = vmatprep.subr.bf16.mxu1 %v1628_v4  ;;  %v1655_v31 = vld [vmem:[%s2654_s0 + $0x78] sm:$0xff]   ;;  %38 = vst.msk [vmem:[#allocation2 + $0x50] sm:$0xff] %vm27_vm1, %v2656_v34  ;;  %39 = vst.msk [vmem:[#allocation2 + $0x58] sm:$0xff] %vm27_vm1, %v2656_v34  ;;  %v2077_v4 = vadd.s32 32, %v2057_v56 }
   0xd   :  { %40 = vst.msk [vmem:[#allocation2 + $0x60] sm:$0xff] %vm27_vm1, %v2656_v34  ;;  %41 = vst.msk [vmem:[#allocation2 + $0x68] sm:$0xff] %vm27_vm1, %v2656_v34 }
   0xe   :  { %42 = vst.msk [vmem:[#allocation2 + $0x70] sm:$0xff] %vm27_vm1, %v2656_v34  ;;  %43 = vst.msk [vmem:[#allocation2 + $0x78] sm:$0xff] %vm27_vm1, %v2656_v34  ;;  %vm1045_vm6 = vcmp.eq.s32.totalorder %v2077_v4, %v2064_v61 }
   0xf   :  { %44 = vst.msk [vmem:[#allocation2 + $0x80] sm:$0xff] %vm27_vm1, %v2656_v34  ;;  %45 = vst.msk [vmem:[#allocation2 + $0x88] sm:$0xff] %vm27_vm1, %v2656_v34 }
  0x10   :  { %46 = vst.msk [vmem:[#allocation2 + $0x90] sm:$0xff] %vm27_vm1, %v2656_v34  ;;  %47 = vst.msk [vmem:[#allocation2 + $0x98] sm:$0xff] %vm27_vm1, %v2656_v34 }
  0x11   :  { %48 = vst.msk [vmem:[#allocation2 + $0xa0] sm:$0xff] %vm27_vm1, %v2656_v34  ;;  %49 = vst.msk [vmem:[#allocation2 + $0xa8] sm:$0xff] %vm27_vm1, %v2656_v34 }
  0x12   :  { %50 = vst.msk [vmem:[#allocation2 + $0xb0] sm:$0xff] %vm27_vm1, %v2656_v34  ;;  %51 = vst.msk [vmem:[#allocation2 + $0xb8] sm:$0xff] %vm27_vm1, %v2656_v34 }
  0x13   :  { %1557 = vmatpush3.bf16.xpose.msra.mxu0 %v1629_v5  ;;  %1610 = vmatpush3.bf16.xpose.msra.mxu1 %v1629_v5  ;;  %52 = vst.msk [vmem:[#allocation2 + $0xc0] sm:$0xff] %vm27_vm1, %v2656_v34  ;;  %53 = vst.msk [vmem:[#allocation2 + $0xc8] sm:$0xff] %vm27_vm1, %v2656_v34 }
  0x14   :  { %1558 = vmatprep.subr.bf16.mxu0 %v1630_v6  ;;  %1603 = vmatprep.subr.bf16.mxu1 %v1630_v6  ;;  %54 = vst.msk [vmem:[#allocation2 + $0xd0] sm:$0xff] %vm27_vm1, %v2656_v34  ;;  %55 = vst.msk [vmem:[#allocation2 + $0xd8] sm:$0xff] %vm27_vm1, %v2656_v34 }
  0x15   :  { %56 = vst.msk [vmem:[#allocation2 + $0xe0] sm:$0xff] %vm27_vm1, %v2656_v34  ;;  %57 = vst.msk [vmem:[#allocation2 + $0xe8] sm:$0xff] %vm27_vm1, %v2656_v34 }
  0x16   :  { %58 = vst.msk [vmem:[#allocation2 + $0xf0] sm:$0xff] %vm27_vm1, %v2656_v34  ;;  %59 = vst.msk [vmem:[#allocation2 + $0xf8] sm:$0xff] %vm27_vm1, %v2656_v34  ;;  %v2194_v34 = vadd.s32 200, %v2057_v56 }
  0x17   :  { %2671 = vst [vmem:[#allocation5_spill] sm:$0xff] %v2057_v56  ;;  %2677 = vst [vmem:[#allocation11_spill] sm:$0xff] %v2197_v33 }
  0x18   :  { %2676 = vst [vmem:[#allocation10_spill] sm:$0xff] %v2194_v34 }
  0x1b   :  { %1559 = vmatpush3.bf16.xpose.msra.mxu0 %v1631_v9  ;;  %1611 = vmatpush3.bf16.xpose.msra.mxu1 %v1631_v9 }
  0x1c   :  { %1560 = vmatprep.subr.bf16.mxu0 %v1632_v10  ;;  %1604 = vmatprep.subr.bf16.mxu1 %v1632_v10 }
  0x23   :  { %1561 = vmatpush3.bf16.xpose.msra.mxu0 %v1633_v11  ;;  %1612 = vmatpush3.bf16.xpose.msra.mxu1 %v1633_v11  ;;  %v2090_v11 = vadd.s32 56, %v2057_v56 }
  0x24   :  { %1562 = vmatprep.subr.bf16.mxu0 %v1634_v12  ;;  %1605 = vmatprep.subr.bf16.mxu1 %v1634_v12  ;;  %v2093_v12 = vadd.s32 128, %v2057_v56 }
  0x25   :  { %vm1051_vm10 = vcmp.eq.s32.totalorder %v2090_v11, %v2064_v61 }
  0x2b   :  { %1563 = vmatpush3.bf16.xpose.msra.mxu0 %v1635_v13  ;;  %1613 = vmatpush3.bf16.xpose.msra.mxu1 %v1635_v13 }
  0x2c   :  { %1564 = vmatprep.subr.bf16.mxu0 %v1636_v14  ;;  %1606 = vmatprep.subr.bf16.mxu1 %v1636_v14 }
  0x33   :  { %1565 = vmatpush3.bf16.xpose.msra.mxu0 %v1637_v15  ;;  %1614 = vmatpush3.bf16.xpose.msra.mxu1 %v1637_v15 }
  0x34   :  { %1566 = vmatprep.subr.bf16.mxu0 %v1638_v16  ;;  %1607 = vmatprep.subr.bf16.mxu1 %v1638_v16  ;;  %v2103_v16 = vadd.s32 128, %v2064_v61 }
  0x36   :  { %vm1070_vm7 = vcmp.eq.s32.totalorder %v2093_v12, %v2103_v16 }
  0x3b   :  { %1567 = vmatpush3.bf16.xpose.msra.mxu0 %v1639_v17  ;;  %1615 = vmatpush3.bf16.xpose.msra.mxu1 %v1639_v17  ;;  %v2106_v17 = vadd.s32 64, %v2057_v56 }
  0x3d   :  { %vm1053_vm13 = vcmp.eq.s32.totalorder %v2106_v17, %v2064_v61 }
  0x42   :  { %1569 = vmatmul.mubr.bf16.vlgmr.msra.gmra.mxu0 %v1640_v7  ;;  %1585 = vmatmul.mubr.bf16.vlgmr.msra.gmra.mxu1 %v1644_v8  ;;  %v2082_v7 = vadd.s32 40, %v2057_v56  ;;  %v2085_v8 = vadd.s32 48, %v2057_v56 }
  0x43   :  { %1570 = vmatprep.mubr.bf16.mxu0 %v1641_v18  ;;  %1586 = vmatprep.mubr.bf16.mxu1 %v1646_v19 }
  0x44   :  { %vm1047_vm8 = vcmp.eq.s32.totalorder %v2082_v7, %v2064_v61  ;;  %vm1049_vm9 = vcmp.eq.s32.totalorder %v2085_v8, %v2064_v61 }
  0x4a   :  { %1571 = vmatmul.mubr.bf16.gmra.mxu0 %v1641_v18  ;;  %1587 = vmatmul.mubr.bf16.gmra.mxu1 %v1646_v19  ;;  %v2109_v19 = vadd.s32 136, %v2057_v56 }
  0x4b   :  { %1572 = vmatprep.mubr.bf16.mxu0 %v1642_v20  ;;  %1588 = vmatprep.mubr.bf16.mxu1 %v1648_v21 }
  0x4c   :  { %vm1072_vm11 = vcmp.eq.s32.totalorder %v2109_v19, %v2103_v16 }
  0x52   :  { %1573 = vmatmul.mubr.bf16.gmra.mxu0 %v1642_v20  ;;  %1589 = vmatmul.mubr.bf16.gmra.mxu1 %v1648_v21  ;;  %v2112_v20 = vadd.s32 72, %v2057_v56  ;;  %v2115_v21 = vadd.s32 144, %v2057_v56 }
  0x53   :  { %1574 = vmatprep.mubr.bf16.mxu0 %v1643_v22  ;;  %1590 = vmatprep.mubr.bf16.mxu1 %v1650_v23 }
  0x54   :  { %vm1074_vm12 = vcmp.eq.s32.totalorder %v2115_v21, %v2103_v16  ;;  %vm1055_vm14 = vcmp.eq.s32.totalorder %v2112_v20, %v2064_v61 }
  0x5a   :  { %1575 = vmatmul.mubr.bf16.gmra.mxu0 %v1643_v22  ;;  %1591 = vmatmul.mubr.bf16.gmra.mxu1 %v1650_v23  ;;  %v2118_v22 = vadd.s32 80, %v2057_v56 }
  0x5b   :  { %1576 = vmatprep.mubr.bf16.mxu0 %v1645_v24  ;;  %1592 = vmatprep.mubr.bf16.mxu1 %v1652_v25 }
  0x62   :  { %1577 = vmatmul.mubr.bf16.gmra.mxu0 %v1645_v24  ;;  %1593 = vmatmul.mubr.bf16.gmra.mxu1 %v1652_v25  ;;  %v2123_v25 = vadd.s32 152, %v2057_v56 }
  0x63   :  { %1578 = vmatprep.mubr.bf16.mxu0 %v1647_v26  ;;  %1594 = vmatprep.mubr.bf16.mxu1 %v1653_v27 }
  0x64   :  { %vm1076_vm15 = vcmp.eq.s32.totalorder %v2123_v25, %v2103_v16 }
  0x6a   :  { %1579 = vmatmul.mubr.bf16.gmra.mxu0 %v1647_v26  ;;  %1595 = vmatmul.mubr.bf16.gmra.mxu1 %v1653_v27  ;;  %v2126_v26 = vadd.s32 88, %v2057_v56 }
  0x6b   :  { %1580 = vmatprep.mubr.bf16.mxu0 %v1649_v28  ;;  %1596 = vmatprep.mubr.bf16.mxu1 %v1654_v29 }
  0x72   :  { %1581 = vmatmul.mubr.bf16.gmra.mxu0 %v1649_v28  ;;  %1597 = vmatmul.mubr.bf16.gmra.mxu1 %v1654_v29 }
  0x73   :  { %1582 = vmatprep.mubr.bf16.mxu0 %v1651_v30  ;;  %1598 = vmatprep.mubr.bf16.mxu1 %v1655_v31 }
  0x7a   :  { %1583 = vmatmul.mubr.bf16.gmra.mxu0 %v1651_v30  ;;  %1599 = vmatmul.mubr.bf16.gmra.mxu1 %v1655_v31  ;;  %v2134_v31 = vadd.s32 160, %v2057_v56 }
 0x102   :  { %v1971_v35 = vpop.f32.mrf.mxu0  ;;  %v1973_v36 = vpop.f32.mrf.mxu1 }
 0x103   :  { %v1488_v37 = vadd.f32 -14.285714, %v1971_v35  ;;  %v1520_v30 = vadd.f32 -14.285714, %v1973_v36 }
 0x104   :  { %v352_v38 = vpop.f32.mrf.mxu0  ;;  %v1976_v39 = vpop.f32.mrf.mxu1 }
 0x105   :  { %v1489_v40 = vadd.f32 -14.285714, %v352_v38  ;;  %v573_v41 = vmul.f32 1.442695, %v1488_v37 }
 0x106   :  { %v1978_v42 = vpop.f32.mrf.mxu0  ;;  %v1980_v43 = vpop.f32.mrf.mxu1 }
 0x107   :  { %v575_v44 = vmul.f32 1.442695, %v1489_v40  ;;  %v1490_v45 = vadd.f32 -14.285714, %v1978_v42 }
 0x108   :  { %v356_v46 = vpop.f32.mrf.mxu0  ;;  %v1983_v47 = vpop.f32.mrf.mxu1 }
 0x109   :  { %1656 = vpow2.f32 %v575_v44  ;;  %v1491_v48 = vadd.f32 -14.285714, %v356_v46  ;;  %v577_v49 = vmul.f32 1.442695, %v1490_v45  ;;  %v2147_v44 = vadd.s32 168, %v2057_v56 }
 0x10a   :  { %1658 = vpow2.f32 %v573_v41  ;;  %v1985_v50 = vpop.f32.mrf.mxu0  ;;  %v1987_v51 = vpop.f32.mrf.mxu1  ;;  %v2144_v41 = vadd.s32 96, %v2057_v56  ;;  %v1521_v46 = vadd.f32 -14.285714, %v1976_v39 }
 0x10b   :  { %v579_v52 = vmul.f32 1.442695, %v1491_v48  ;;  %v1492_v53 = vadd.f32 -14.285714, %v1985_v50 }
 0x10c   :  { %v362_v54 = vpop.f32.mrf.mxu0  ;;  %v2054_v55 = vpop.f32.mrf.mxu1 }
 0x10d   :  { %1660 = vpow2.f32 %v579_v52  ;;  %v1493_v57 = vadd.f32 -14.285714, %v362_v54  ;;  %v581_v58 = vmul.f32 1.442695, %v1492_v53  ;;  %v2158_v52 = vadd.s32 176, %v2057_v56 }
 0x10e   :  { %1662 = vpow2.f32 %v577_v49  ;;  %v2059_v59 = vpop.f32.mrf.mxu0  ;;  %v2061_v60 = vpop.f32.mrf.mxu1  ;;  %v2155_v49 = vadd.s32 104, %v2057_v56  ;;  %v2163_v54 = vadd.s32 112, %v2057_v56 }
 0x10f   :  { %v583_v63 = vmul.f32 1.442695, %v1493_v57  ;;  %v1494_v0 = vadd.f32 -14.285714, %v2059_v59  ;;  %2672 = vst [vmem:[#allocation6_spill] sm:$0xff] %v2158_v52  ;;  %v2166_v57 = vadd.s32 184, %v2057_v56 }
 0x110   :  { %v366_v3 = vpop.f32.mrf.mxu0  ;;  %v2079_v5 = vpop.f32.mrf.mxu1  ;;  %v1524_v52 = vadd.f32 -14.285714, %v1987_v51  ;;  %v1106_v51 = vsel %vm1041_vm4, %v1985_v50, 0.0  ;;  %vm1061_vm4 = vcmp.eq.s32.totalorder %v2144_v41, %v2064_v61 }
 0x111   :  { %1664 = vpow2.f32 %v583_v63  ;;  %v1495_v6 = vadd.f32 -14.285714, %v366_v3  ;;  %v585_v9 = vmul.f32 1.442695, %v1494_v0  ;;  %2673 = vst [vmem:[#allocation7_spill] sm:$0xff] %v2166_v57 }
 0x112   :  { %1666 = vpow2.f32 %v581_v58  ;;  %v2087_v10 = vpop.f32.mrf.mxu0  ;;  %v2095_v13 = vpop.f32.mrf.mxu1  ;;  %v637_v3 = vmul.f32 1.442695, %v1520_v30  ;;  %v645_v1 = vmul.f32 1.442695, %v1524_v52 }
 0x113   :  { %v587_v14 = vmul.f32 1.442695, %v1495_v6  ;;  %v1496_v15 = vadd.f32 -14.285714, %v2087_v10 }
 0x114   :  { %v372_v18 = vpop.f32.mrf.mxu0  ;;  %v2120_v23 = vpop.f32.mrf.mxu1 }
 0x115   :  { %1668 = vpow2.f32 %v587_v14  ;;  %v1497_v24 = vadd.f32 -14.285714, %v372_v18  ;;  %v589_v28 = vmul.f32 1.442695, %v1496_v15 }
 0x116   :  { %v2128_v27 = vpop.eup %1656  ;;  %1670 = vpow2.f32 %v585_v9  ;;  %v2130_v29 = vpop.f32.mrf.mxu0  ;;  %v2175_v9 = vadd.s32 120, %v2057_v56 }
 0x117   :  { %v2136_v32 = vpop.f32.mrf.mxu1  ;;  %v2138_v37 = vpop.eup %1658  ;;  %v591_v38 = vmul.f32 1.442695, %v1497_v24  ;;  %v1498_v40 = vadd.f32 -14.285714, %v2130_v29  ;;  %v1522_v24 = vadd.f32 -14.285714, %v1980_v43 }
 0x118   :  { %v376_v36 = vpop.f32.mrf.mxu0  ;;  %v733_v45 = vadd.f32 %v2138_v37, %v2128_v27 }
 0x119   :  { %v2152_v48 = vpop.f32.mrf.mxu1  ;;  %1672 = vpow2.f32 %v591_v38  ;;  %v1499_v53 = vadd.f32 -14.285714, %v376_v36  ;;  %v593_v63 = vmul.f32 1.442695, %v1498_v40  ;;  %v639_v38 = vmul.f32 1.442695, %v1521_v46 }
 0x11a   :  { %v2168_v58 = vpop.eup %1660  ;;  %1674 = vpow2.f32 %v589_v28  ;;  %734 = vadd.xlane.f32.xlu0 %v733_v45  ;;  %v2170_v0 = vpop.f32.mrf.mxu0  ;;  %v1523_v40 = vadd.f32 -14.285714, %v1983_v47  ;;  %v2191_v45 = vadd.s32 192, %v2057_v56  ;;  %v1102_v46 = vsel %vm1037_vm2, %v1971_v35, 0.0 }
 0x11b   :  { %v2172_v6 = vpop.f32.mrf.mxu1  ;;  %v2177_v14 = vpop.eup %1662  ;;  %v595_v15 = vmul.f32 1.442695, %v1499_v53  ;;  %v1500_v18 = vadd.f32 -14.285714, %v2170_v0  ;;  %v641_v57 = vmul.f32 1.442695, %v1522_v24  ;;  %vm1057_vm2 = vcmp.eq.s32.totalorder %v2118_v22, %v2064_v61 }
 0x11c   :  { %v382_v28 = vpop.f32.mrf.mxu0  ;;  %v736_v30 = vadd.f32 %v2177_v14, %v2168_v58  ;;  %2675 = vst [vmem:[#allocation9_spill] sm:$0xff] %v2191_v45  ;;  %v1104_v45 = vsel %vm1039_vm3, %v1978_v42, 0.0  ;;  %vm1059_vm3 = vcmp.eq.s32.totalorder %v2126_v26, %v2064_v61  ;;  %v1114_v7 = vsel %vm1049_vm9, %v2170_v0, 0.0 }
 0x11d   :  { %v2188_v36 = vpop.f32.mrf.mxu1  ;;  %1676 = vpow2.f32 %v595_v15  ;;  %v597_v53 = vmul.f32 1.442695, %v1500_v18  ;;  %v1501_v15 = vadd.f32 -14.285714, %v382_v28  ;;  %v643_v28 = vmul.f32 1.442695, %v1523_v40 }
 0x11e   :  { %2674 = vst [vmem:[#allocation8_spill] sm:$0xff] %v2188_v36  ;;  %v2199_v43 = vpop.eup %1664  ;;  %1678 = vpow2.f32 %v593_v63  ;;  %737 = vadd.xlane.f32.xlu0 %v736_v30  ;;  %v2211_v18 = vpop.f32.mrf.mxu0  ;;  %v2226_v36 = vadd.s32 216, %v2057_v56  ;;  %v2323_v0 = vsel %vm1072_vm11, %v1983_v47, 0.0  ;;  %vm1080_vm9 = vcmp.eq.s32.totalorder %v2147_v44, %v2103_v16 }
 0x11f   :  { %v2213_v33 = vpop.f32.mrf.mxu1  ;;  %v2215_v34 = vpop.eup %1666  ;;  %1680 = vpow2.f32 %v637_v3  ;;  %v1502_v35 = vadd.f32 -14.285714, %v2211_v18  ;;  %v599_v42 = vmul.f32 1.442695, %v1501_v15  ;;  %v1116_v8 = vsel %vm1051_vm10, %v2211_v18, 0.0 }
 0x120   :  { %2678 = vst [vmem:[#allocation12_spill] sm:$0xff] %v2213_v33  ;;  %1682 = vpow2.f32 %v639_v38  ;;  %v386_v62 = vpop.f32.mrf.mxu0  ;;  %v739_v63 = vadd.f32 %v2215_v34, %v2199_v43  ;;  %v1167_v33 = vadd.f32 %v1104_v45, %v1102_v46  ;;  %2679 = vst [vmem:[#allocation13_spill] sm:$0xff] %v2226_v36  ;;  %v1525_v45 = vadd.f32 -14.285714, %v2054_v55 }
 0x121   :  { %v2223_v30 = vpop.f32.mrf.mxu1  ;;  %1684 = vpow2.f32 %v597_v53  ;;  %v1503_v3 = vadd.f32 -14.285714, %v386_v62  ;;  %v601_v38 = vmul.f32 1.442695, %v1502_v35  ;;  %v1108_v35 = vsel %vm1043_vm5, %v2059_v59, 0.0 }
 0x122   :  { %v2228_v24 = vpop.eup %1668  ;;  %1686 = vpow2.f32 %v599_v42  ;;  %740 = vadd.xlane.f32.xlu1 %v739_v63  ;;  %v2236_v40 = vpop.f32.mrf.mxu0  ;;  %v1169_v52 = vadd.f32 %v1167_v33, %v1106_v51  ;;  %v1527_v33 = vadd.f32 -14.285714, %v2079_v5  ;;  %v647_v4 = vmul.f32 1.442695, %v1525_v45 }
 0x123   :  { %v2241_v53 = vpop.f32.mrf.mxu1  ;;  %v2243_v46 = vpop.eup %1670  ;;  %v603_v15 = vmul.f32 1.442695, %v1503_v3  ;;  %1688 = vpow2.f32 %v641_v57  ;;  %v1504_v50 = vadd.f32 -14.285714, %v2236_v40  ;;  %v1526_v57 = vadd.f32 -14.285714, %v2061_v60 }
 0x124   :  { %1690 = vpow2.f32 %v643_v28  ;;  %v392_v42 = vpop.f32.mrf.mxu0  ;;  %v742_v62 = vadd.f32 %v2243_v46, %v2228_v24  ;;  %v2263_v3 = vsel %vm1070_vm7, %v1976_v39, 0.0  ;;  %v1110_v28 = vsel %vm1045_vm6, %v2087_v10, 0.0 }
 0x125   :  { %v2257_v63 = vpop.f32.mrf.mxu1  ;;  %1692 = vpow2.f32 %v603_v15  ;;  %v605_v59 = vmul.f32 1.442695, %v1504_v50  ;;  %v1505_v60 = vadd.f32 -14.285714, %v392_v42  ;;  %v1171_v51 = vadd.f32 %v1169_v52, %v1108_v35 }
 0x126   :  { %v2265_v2 = vpop.eup %1672  ;;  %1694 = vpow2.f32 %v601_v38  ;;  %743 = vadd.xlane.f32.xlu1 %v742_v62  ;;  %v2271_v56 = vpop.f32.mrf.mxu0  ;;  %v649_v50 = vmul.f32 1.442695, %v1526_v57  ;;  %v1528_v62 = vadd.f32 -14.285714, %v2095_v13  ;;  %v1112_v45 = vsel %vm1047_vm8, %v2130_v29, 0.0 }
 0x127   :  { %v2276_v39 = vpop.f32.mrf.mxu1  ;;  %v2278_v12 = vpop.eup %1674  ;;  %1696 = vpow2.f32 %v645_v1  ;;  %v1506_v15 = vadd.f32 -14.285714, %v2271_v56  ;;  %v607_v10 = vmul.f32 1.442695, %v1505_v60  ;;  %v1173_v1 = vadd.f32 %v1171_v51, %v1110_v28 }
 0x128   :  { %2680 = vst [vmem:[#allocation14_spill] sm:$0xff] %v2276_v39  ;;  %v396_v38 = vpop.f32.mrf.mxu0  ;;  %v745_v42 = vadd.f32 %v2278_v12, %v2265_v2  ;;  %1698 = vpow2.f32 %v605_v59  ;;  %v651_v39 = vmul.f32 1.442695, %v1527_v33  ;;  %v1529_v13 = vadd.f32 -14.285714, %v2120_v23 }
 0x129   :  { %v2288_v36 = vpop.f32.mrf.mxu1  ;;  %v1507_v35 = vadd.f32 -14.285714, %v396_v38  ;;  %1700 = vpow2.f32 %v607_v10  ;;  %v609_v57 = vmul.f32 1.442695, %v1506_v15  ;;  %v1175_v15 = vadd.f32 %v1173_v1, %v1112_v45 }
 0x12a   :  { %2681 = vst [vmem:[#allocation15_spill] sm:$0xff] %v2288_v36  ;;  %v2294_v52 = vpop.eup %1676  ;;  %746 = vadd.xlane.f32.xlu0 %v745_v42  ;;  %v400_v60 = vpop.f32.mrf.mxu0  ;;  %1702 = vpow2.f32 %v647_v4  ;;  %v653_v10 = vmul.f32 1.442695, %v1528_v62  ;;  %v2331_v1 = vsel %vm1074_vm12, %v2054_v55, 0.0  ;;  %vm1063_vm5 = vcmp.eq.s32.totalorder %v2155_v49, %v2064_v61 }
 0x12b   :  { %v2299_v28 = vpop.eup %1678  ;;  %v611_v29 = vmul.f32 1.442695, %v1507_v35  ;;  %v1508_v59 = vadd.f32 -14.285714, %v400_v60  ;;  %1704 = vpow2.f32 %v649_v50  ;;  %v2311_v42 = vpop.f32.mrf.mxu1  ;;  %v1177_v62 = vadd.f32 %v1175_v15, %v1114_v7 }
 0x12c   :  { %v2305_v51 = vpop.eup %1680  ;;  %v402_v33 = vpop.f32.mrf.mxu0  ;;  %v748_v38 = vadd.f32 %v2299_v28, %v2294_v52  ;;  %v1118_v19 = vsel %vm1053_vm13, %v2236_v40, 0.0  ;;  %v655_v35 = vmul.f32 1.442695, %v1529_v13  ;;  %vm1078_vm6 = vcmp.eq.s32.totalorder %v2134_v31, %v2103_v16 }
 0x12d   :  { %v2313_v36 = vpop.eup %1682  ;;  %1706 = vpow2.f32 %v611_v29  ;;  %v613_v4 = vmul.f32 1.442695, %v1508_v59  ;;  %v1509_v11 = vadd.f32 -14.285714, %v402_v33  ;;  %v1179_v21 = vadd.f32 %v1177_v62, %v1116_v8  ;;  %v2347_v59 = vpop.f32.mrf.mxu1 }
 0x12e   :  { %v2325_v50 = vpop.eup %1684  ;;  %1708 = vpow2.f32 %v609_v57  ;;  %749 = vadd.xlane.f32.xlu1 %v748_v38  ;;  %v404_v18 = vpop.f32.mrf.mxu0  ;;  %v1120_v17 = vsel %vm1055_vm14, %v2271_v56, 0.0  ;;  %vm1065_vm7 = vcmp.eq.s32.totalorder %v2163_v54, %v2064_v61  ;;  %v899_v33 = vadd.f32 %v2177_v14, %v2138_v37 }
 0x12f   :  { %v2335_v47 = vpop.eup %1686  ;;  %1710 = vpow2.f32 %v651_v39  ;;  %v1510_v45 = vadd.f32 -14.285714, %v404_v18  ;;  %v615_v57 = vmul.f32 1.442695, %v1509_v11  ;;  %v2365_v38 = vsel %vm1076_vm15, %v2079_v5, 0.0 }
 0x130   :  { %v2343_v55 = vpop.eup %1688  ;;  %1712 = vpow2.f32 %v653_v10  ;;  %v406_v7 = vpop.f32.mrf.mxu0  ;;  %v751_v29 = vadd.f32 %v2335_v47, %v2325_v50  ;;  %v1181_v10 = vadd.f32 %v1179_v21, %v1118_v19  ;;  %v1122_v8 = vsel %vm1057_vm2, %v400_v60, 0.0 }
 0x131   :  { %v2349_v15 = vpop.eup %1690  ;;  %1714 = vpow2.f32 %v613_v4  ;;  %v617_v40 = vmul.f32 1.442695, %v1510_v45  ;;  %v1511_v39 = vadd.f32 -14.285714, %v406_v7  ;;  %v936_v14 = vadd.f32 %v2168_v58, %v2128_v27  ;;  %v2380_v19 = vpop.f32.mrf.mxu1 }
 0x132   :  { %v2357_v13 = vpop.eup %1692  ;;  %1716 = vpow2.f32 %v615_v57  ;;  %752 = vadd.xlane.f32.xlu0 %v751_v29  ;;  %v410_v56 = vpop.f32.mrf.mxu0  ;;  %v1183_v25 = vadd.f32 %v1181_v10, %v1120_v17  ;;  %vm1067_vm8 = vcmp.eq.s32.totalorder %v2175_v9, %v2064_v61  ;;  %v900_v22 = vadd.f32 %v2215_v34, %v899_v33 }
 0x133   :  { %v2367_v20 = vpop.eup %1694  ;;  %1718 = vpow2.f32 %v655_v35  ;;  %v619_v4 = vmul.f32 1.442695, %v1511_v39  ;;  %v1512_v62 = vadd.f32 -14.285714, %v410_v56  ;;  %v1124_v60 = vsel %vm1059_vm3, %v404_v18, 0.0 }
 0x134   :  { %v2372_v37 = vpop.eup %1696  ;;  %1720 = vpow2.f32 %v617_v40  ;;  %v412_v5 = vpop.f32.mrf.mxu0  ;;  %v754_v11 = vadd.f32 %v2367_v20, %v2357_v13  ;;  %v937_v58 = vadd.f32 %v2199_v43, %v936_v14  ;;  %v1185_v35 = vadd.f32 %v1183_v25, %v1122_v8 }
 0x135   :  { %1722 = vpow2.f32 %v619_v4  ;;  %v621_v45 = vmul.f32 1.442695, %v1512_v62  ;;  %v2386_v27 = vpop.eup %1698  ;;  %v1530_v21 = vadd.f32 -14.285714, %v2136_v32  ;;  %v1513_v57 = vadd.f32 -14.285714, %v412_v5  ;;  %v2402_v8 = vpop.f32.mrf.mxu1 }
 0x136   :  { %755 = vadd.xlane.f32.xlu1 %v754_v11  ;;  %v414_v7 = vpop.f32.mrf.mxu0  ;;  %v2390_v29 = vpop.eup %1700  ;;  %v901_v34 = vadd.f32 %v2243_v46, %v900_v22  ;;  %v1126_v26 = vsel %vm1061_vm4, %v410_v56, 0.0  ;;  %v1531_v18 = vadd.f32 -14.285714, %v2152_v48  ;;  %v938_v43 = vadd.f32 %v2228_v24, %v937_v58 }
 0x137   :  { %v1514_v17 = vadd.f32 -14.285714, %v414_v7  ;;  %v2397_v40 = vpop.eup %1702  ;;  %v1187_v39 = vadd.f32 %v1185_v35, %v1124_v60  ;;  %v623_v32 = vmul.f32 1.442695, %v1513_v57  ;;  %v757_v10 = vadd.f32 %v2390_v29, %v2386_v27  ;;  %v2427_v57 = vpop.f32.mrf.mxu1 }
 0x138   :  { %v416_v33 = vpop.f32.mrf.mxu0  ;;  %v2404_v46 = vpop.eup %1704  ;;  %1724 = vpow2.f32 %v621_v45  ;;  %v1128_v56 = vsel %vm1063_vm5, %v414_v7, 0.0  ;;  %v2417_v62 = vsel %vm1078_vm6, %v2120_v23, 0.0  ;;  %v657_v14 = vmul.f32 1.442695, %v1530_v21 }
 0x139   :  { %v625_v41 = vmul.f32 1.442695, %v1514_v17  ;;  %v1515_v24 = vadd.f32 -14.285714, %v416_v33  ;;  %v1189_v25 = vadd.f32 %v1187_v39, %v1126_v26  ;;  %1726 = vpow2.f32 %v623_v32  ;;  %758 = vadd.xlane.f32.xlu0 %v757_v10 }
 0x13a   :  { %v2411_v4 = vpop.eup %1706  ;;  %v420_v5 = vpop.f32.mrf.mxu0  ;;  %v902_v22 = vadd.f32 %v2278_v12, %v901_v34  ;;  %v939_v49 = vadd.f32 %v2265_v2, %v938_v43  ;;  %v659_v2 = vmul.f32 1.442695, %v1531_v18  ;;  %v1532_v43 = vadd.f32 -14.285714, %v2172_v6 }
 0x13b   :  { %v1709_v11 = vpop.eup %1708  ;;  %v627_v60 = vmul.f32 1.442695, %v1515_v24  ;;  %v1516_v45 = vadd.f32 -14.285714, %v420_v5  ;;  %1728 = vpow2.f32 %v625_v41  ;;  %v1191_v35 = vadd.f32 %v1189_v25, %v1128_v56 }
 0x13c   :  { %v2421_v58 = vpop.eup %1710  ;;  %v1130_v23 = vsel %vm1065_vm7, %v420_v5, 0.0  ;;  %v422_v31 = vpop.f32.mrf.mxu0  ;;  %v760_v21 = vadd.f32 %v1709_v11, %v2411_v4  ;;  %v903_v12 = vadd.f32 %v2299_v28, %v902_v22  ;;  %v940_v17 = vadd.f32 %v2294_v52, %v939_v49 }
 0x13d   :  { %v2429_v7 = vpop.eup %1712  ;;  %1730 = vpow2.f32 %v627_v60  ;;  %v629_v34 = vmul.f32 1.442695, %v1516_v45  ;;  %v1193_v39 = vadd.f32 %v1191_v35, %v1130_v23  ;;  %v1517_v54 = vadd.f32 -14.285714, %v422_v31  ;;  %v2441_v5 = vpop.f32.mrf.mxu1 }
 0x13e   :  { %v1715_v26 = vpop.eup %1714  ;;  %761 = vadd.xlane.f32.xlu1 %v760_v21  ;;  %v424_v32 = vpop.f32.mrf.mxu0  ;;  %v904_v10 = vadd.f32 %v2325_v50, %v903_v12  ;;  %v941_v56 = vadd.f32 %v2335_v47, %v940_v17  ;;  %v2682_v50 = vld [vmem:[#allocation8_spill] sm:$0xff]  ;;  %v661_v9 = vmul.f32 1.442695, %v1532_v43  ;;  %v2683_v21 = vld [vmem:[#allocation6_spill] sm:$0xff]  ;;  %vm1435_vm6 = vcmask 1040384  }
 0x13f   :  { %v1717_v33 = vpop.eup %1716  ;;  %1732 = vpow2.f32 %v629_v34  ;;  %v1518_v41 = vadd.f32 -14.285714, %v424_v32  ;;  %v1132_v28 = vsel %vm1067_vm8, %v424_v32, 0.0  ;;  %v631_v52 = vmul.f32 1.442695, %v1517_v54 }
 0x140   :  { %v2438_v18 = vpop.eup %1718  ;;  %v1195_v24 = vadd.f32 %v1193_v39, %v1132_v28  ;;  %v426_v6 = vpop.f32.mrf.mxu0  ;;  %v763_v25 = vadd.f32 %v1717_v33, %v1715_v26  ;;  %v905_v49 = vadd.f32 %v2367_v20, %v904_v10  ;;  %v1533_v60 = vadd.f32 -14.285714, %v2682_v50  ;;  %v2685_v28 = vld [vmem:[#allocation7_spill] sm:$0xff] }
 0x141   :  { %v1721_v22 = vpop.eup %1720  ;;  %v633_v45 = vmul.f32 1.442695, %v1518_v41  ;;  %v1519_v35 = vadd.f32 -14.285714, %v426_v6  ;;  %v942_v61 = vadd.f32 %v2357_v13, %v941_v56  ;;  %1734 = vpow2.f32 %v631_v52  ;;  %v2684_v13 = vld [vmem:[#allocation12_spill] sm:$0xff]  ;;  %v2686_v52 = vld [vmem:[#allocation14_spill] sm:$0xff] }
 0x142   :  { %v1723_v23 = vpop.eup %1722  ;;  %v1198_v47 = vadd.f32 %v1195_v24, %v2263_v3  ;;  %764 = vadd.xlane.f32.xlu0 %v763_v25  ;;  %v906_v31 = vadd.f32 %v2386_v27, %v905_v49  ;;  %vm1082_vm10 = vcmp.eq.s32.totalorder %v2683_v21, %v2103_v16  ;;  %v1145_v34 = vsel %vm1080_vm9, %v2152_v48, 0.0  ;;  %v2456_v3 = vpop.f32.mrf.mxu1 }
 0x143   :  { %1736 = vpow2.f32 %v633_v45  ;;  %v635_v12 = vmul.f32 1.442695, %v1519_v35  ;;  %v766_v20 = vadd.f32 %v1723_v23, %v1721_v22  ;;  %v1534_v17 = vadd.f32 -14.285714, %v2684_v13 }
 0x144   :  { %1738 = vpow2.f32 %v657_v14  ;;  %v1200_v43 = vadd.f32 %v1198_v47, %v2323_v0  ;;  %v943_v27 = vadd.f32 %v2390_v29, %v942_v61  ;;  %v907_v39 = vadd.f32 %v1709_v11, %v906_v31  ;;  %v2468_v6 = vpop.f32.mrf.mxu1  ;;  %v2688_v31 = vld [vmem:[#allocation9_spill] sm:$0xff] }
 0x145   :  { %v1535_v54 = vadd.f32 -14.285714, %v2223_v30  ;;  %1740 = vpow2.f32 %v635_v12  ;;  %767 = vadd.xlane.f32.xlu1 %v766_v20  ;;  %v1725_v32 = vpop.eup %1724  ;;  %v663_v14 = vmul.f32 1.442695, %v1533_v60  ;;  %v1536_v10 = vadd.f32 -14.285714, %v2241_v53 }
 0x146   :  { %1742 = vpow2.f32 %v659_v2  ;;  %v1202_v44 = vadd.f32 %v1200_v43, %v2331_v1  ;;  %v1727_v48 = vpop.eup %1726  ;;  %v944_v41 = vadd.f32 %v2411_v4, %v943_v27  ;;  %v908_v0 = vadd.f32 %v1715_v26, %v907_v39  ;;  %v2687_v4 = vld [vmem:[#allocation15_spill] sm:$0xff] }
 0x147   :  { %1744 = vpow2.f32 %v661_v9  ;;  %vm1084_vm11 = vcmp.eq.s32.totalorder %v2685_v28, %v2103_v16  ;;  %v1537_v29 = vadd.f32 -14.285714, %v2257_v63  ;;  %v665_v11 = vmul.f32 1.442695, %v1534_v17  ;;  %v500_v17 = vpop.f32.mrf.mxu1 }
 0x148   :  { %v1204_v56 = vadd.f32 %v1202_v44, %v2365_v38  ;;  %v1538_v2 = vadd.f32 -14.285714, %v2686_v52  ;;  %v769_v24 = vadd.f32 %v1727_v48, %v1725_v32  ;;  %v1729_v53 = vpop.eup %1728  ;;  %v945_v1 = vadd.f32 %v1717_v33, %v944_v41 }
 0x149   :  { %v909_v25 = vadd.f32 %v1721_v22, %v908_v0  ;;  %v667_v49 = vmul.f32 1.442695, %v1535_v54  ;;  %v1539_v26 = vadd.f32 -14.285714, %v2687_v4  ;;  %1746 = vpow2.f32 %v663_v14  ;;  %v2689_v14 = vld [vmem:[#allocation10_spill] sm:$0xff]  ;;  %v2484_v21 = vpop.f32.mrf.mxu1 }
 0x14a   :  { %v1731_v60 = vpop.eup %1730  ;;  %v669_v45 = vmul.f32 1.442695, %v1536_v10  ;;  %v1206_v35 = vadd.f32 %v1204_v56, %v2417_v62  ;;  %v1540_v61 = vadd.f32 -14.285714, %v2311_v42  ;;  %770 = vadd.xlane.f32.xlu0 %v769_v24  ;;  %v946_v38 = vadd.f32 %v1723_v23, %v945_v1 }
 0x14b   :  { %v910_v9 = vadd.f32 %v1725_v32, %v909_v25  ;;  %v671_v47 = vmul.f32 1.442695, %v1537_v29  ;;  %vm1086_vm12 = vcmp.eq.s32.totalorder %v2688_v31, %v2103_v16  ;;  %v772_v12 = vadd.f32 %v1731_v60, %v1729_v53 }
 0x14c   :  { %v1733_v33 = vpop.eup %1732  ;;  %1748 = vpow2.f32 %v665_v11  ;;  %v1208_v22 = vadd.f32 %v1206_v35, %v1145_v34  ;;  %v673_v20 = vmul.f32 1.442695, %v1538_v2  ;;  %v1541_v13 = vadd.f32 -14.285714, %v2347_v59  ;;  %v504_v35 = vpop.f32.mrf.mxu1 }
 0x14d   :  { %v947_v43 = vadd.f32 %v1727_v48, %v946_v38  ;;  %v911_v27 = vadd.f32 %v1729_v53, %v910_v9  ;;  %1750 = vpow2.f32 %v667_v49  ;;  %v675_v62 = vmul.f32 1.442695, %v1539_v26  ;;  %773 = vadd.xlane.f32.xlu1 %v772_v12  ;;  %v2690_v49 = vld [vmem:[#allocation11_spill] sm:$0xff] }
 0x14e   :  { %v1147_v42 = vsel %vm1082_vm10, %v2682_v50, 0.0  ;;  %1752 = vpow2.f32 %v669_v45  ;;  %v677_v23 = vmul.f32 1.442695, %v1540_v61  ;;  %v1542_v39 = vadd.f32 -14.285714, %v2380_v19  ;;  %v1735_v54 = vpop.eup %1734  ;;  %v2518_v31 = vpop.f32.mrf.mxu1 }
 0x14f   :  { %v948_v34 = vadd.f32 %v1731_v60, %v947_v43  ;;  %v912_v32 = vadd.f32 %v1733_v33, %v911_v27  ;;  %1754 = vpow2.f32 %v671_v47  ;;  %vm1088_vm13 = vcmp.eq.s32.totalorder %v2689_v14, %v2103_v16 }
 0x150   :  { %v1543_v10 = vadd.f32 -14.285714, %v2402_v8  ;;  %v1737_v44 = vpop.eup %1736  ;;  %v1210_v48 = vadd.f32 %v1208_v22, %v1147_v42  ;;  %1756 = vpow2.f32 %v673_v20  ;;  %v679_v41 = vmul.f32 1.442695, %v1541_v13 }
 0x151   :  { %v775_v0 = vadd.f32 %v1735_v54, %v1733_v33  ;;  %v2486_v50 = vpop.eup %1738  ;;  %v949_v29 = vadd.f32 %v1735_v54, %v948_v34  ;;  %v913_v19 = vadd.f32 %v1737_v44, %v912_v32  ;;  %1758 = vpow2.f32 %v675_v62 }
 0x152   :  { %v1544_v11 = vadd.f32 -14.285714, %v2427_v57  ;;  %v1741_v56 = vpop.eup %1740  ;;  %v1149_v52 = vsel %vm1084_vm11, %v2223_v30, 0.0  ;;  %1760 = vpow2.f32 %v677_v23  ;;  %v681_v2 = vmul.f32 1.442695, %v1542_v39 }
 0x153   :  { %v1545_v24 = vadd.f32 -14.285714, %v2441_v5  ;;  %776 = vadd.xlane.f32.xlu0 %v775_v0  ;;  %v2494_v53 = vpop.eup %1742  ;;  %v914_v1 = vadd.f32 %v2305_v51, %v913_v19  ;;  %v950_v25 = vadd.f32 %v1741_v56, %v949_v29  ;;  %vm1090_vm14 = vcmp.eq.s32.totalorder %v2690_v49, %v2103_v16 }
 0x154   :  { %v683_v57 = vmul.f32 1.442695, %v1543_v10  ;;  %v778_v26 = vadd.f32 %v1741_v56, %v1737_v44  ;;  %v2499_v60 = vpop.eup %1744  ;;  %v1212_v45 = vadd.f32 %v1210_v48, %v1149_v52  ;;  %1762 = vpow2.f32 %v679_v41 }
 0x155   :  { %v1546_v30 = vadd.f32 -14.285714, %v2456_v3  ;;  %v781_v28 = vadd.f32 %v2313_v36, %v2305_v51  ;;  %v915_v61 = vadd.f32 %v2343_v55, %v914_v1  ;;  %v951_v38 = vadd.f32 %v2313_v36, %v950_v25  ;;  %v2692_v1 = vld [vmem:[#allocation5_spill] sm:$0xff] }
 0x156   :  { %v685_v9 = vmul.f32 1.442695, %v1544_v11  ;;  %v1547_v47 = vadd.f32 -14.285714, %v2468_v6  ;;  %779 = vadd.xlane.f32.xlu1 %v778_v26  ;;  %v1151_v12 = vsel %vm1086_vm12, %v2257_v63, 0.0  ;;  %1764 = vpow2.f32 %v681_v2  ;;  %v1747_v22 = vpop.eup %1746 }
 0x157   :  { %v687_v33 = vmul.f32 1.442695, %v1545_v24  ;;  %v1548_v3 = vadd.f32 -14.285714, %v500_v17  ;;  %782 = vadd.xlane.f32.xlu0 %v781_v28  ;;  %v916_v51 = vadd.f32 %v2372_v37, %v915_v61  ;;  %v952_v20 = vadd.f32 %v2349_v15, %v951_v38 }
 0x158   :  { %1766 = vpow2.f32 %v683_v57  ;;  %v784_v36 = vadd.f32 %v2349_v15, %v2343_v55  ;;  %v1214_v13 = vadd.f32 %v1212_v45, %v1151_v12  ;;  %v689_v43 = vmul.f32 1.442695, %v1546_v30 }
 0x159   :  { %v1549_v27 = vadd.f32 -14.285714, %v2484_v21  ;;  %v787_v63 = vadd.f32 %v2397_v40, %v2372_v37  ;;  %v1749_v17 = vpop.eup %1748  ;;  %v917_v62 = vadd.f32 %v2404_v46, %v916_v51  ;;  %v953_v42 = vadd.f32 %v2397_v40, %v952_v20 }
 0x15a   :  { %1768 = vpow2.f32 %v685_v9  ;;  %v691_v23 = vmul.f32 1.442695, %v1547_v47  ;;  %785 = vadd.xlane.f32.xlu1 %v784_v36  ;;  %v1751_v39 = vpop.eup %1750  ;;  %v1153_v55 = vsel %vm1088_vm13, %v2687_v4, 0.0  ;;  %v693_v15 = vmul.f32 1.442695, %v1548_v3 }
 0x15b   :  { %1770 = vpow2.f32 %v687_v33  ;;  %v1550_v54 = vadd.f32 -14.285714, %v504_v35  ;;  %788 = vadd.xlane.f32.xlu0 %v787_v63  ;;  %v1753_v37 = vpop.eup %1752  ;;  %v954_v34 = vadd.f32 %v2421_v58, %v953_v42  ;;  %v918_v32 = vadd.f32 %v2429_v7, %v917_v62 }
 0x15c   :  { %v1551_v40 = vadd.f32 -14.285714, %v2518_v31  ;;  %v790_v10 = vadd.f32 %v2421_v58, %v2404_v46  ;;  %v1755_v44 = vpop.eup %1754  ;;  %v1216_v48 = vadd.f32 %v1214_v13, %v1153_v55  ;;  %1772 = vpow2.f32 %v689_v43  ;;  %v2691_v58 = vld [vmem:[#allocation13_spill] sm:$0xff] }
 0x15d   :  { %v695_v41 = vmul.f32 1.442695, %v1549_v27  ;;  %v793_v4 = vadd.f32 %v2438_v18, %v2429_v7  ;;  %v1757_v14 = vpop.eup %1756  ;;  %v955_v0 = vadd.f32 %v2438_v18, %v954_v34  ;;  %v919_v29 = vadd.f32 %v2486_v50, %v918_v32 }
 0x15e   :  { %1774 = vpow2.f32 %v691_v23  ;;  %791 = vadd.xlane.f32.xlu1 %v790_v10  ;;  %v1759_v19 = vpop.eup %1758  ;;  %v1155_v46 = vsel %vm1090_vm14, %v2347_v59, 0.0  ;;  %vm1092_vm15 = vcmp.eq.s32.totalorder %v2691_v58, %v2103_v16  ;;  %v697_v11 = vmul.f32 1.442695, %v1550_v54 }
 0x15f   :  { %1776 = vpow2.f32 %v693_v15  ;;  %794 = vadd.xlane.f32.xlu0 %v793_v4  ;;  %v1761_v7 = vpop.eup %1760  ;;  %v920_v56 = vadd.f32 %v2499_v60, %v919_v29  ;;  %v956_v18 = vadd.f32 %v2494_v53, %v955_v0  ;;  %v699_v52 = vmul.f32 1.442695, %v1551_v40 }
 0x160   :  { %v796_v2 = vadd.f32 %v2494_v53, %v2486_v50  ;;  %v1218_v24 = vadd.f32 %v1216_v48, %v1155_v46  ;;  %v1030_v25 = vadd.s32 224, %v2692_v1  ;;  %1778 = vpow2.f32 %v695_v41 }
 0x161   :  { %v799_v59 = vadd.f32 %v1747_v22, %v2499_v60  ;;  %v1763_v49 = vpop.eup %1762  ;;  %v921_v57 = vadd.f32 %v1749_v17, %v920_v56  ;;  %v957_v26 = vadd.f32 %v1747_v22, %v956_v18  ;;  %v1157_v45 = vsel %vm1092_vm15, %v2402_v8, 0.0 }
 0x162   :  { %797 = vadd.xlane.f32.xlu1 %v796_v2  ;;  %1780 = vpow2.f32 %v697_v11  ;;  %v802_v53 = vadd.f32 %v1751_v39, %v1749_v17  ;;  %v1220_v61 = vadd.f32 %v1218_v24, %v1157_v45  ;;  %vm1094_vm2 = vcmp.eq.s32.totalorder %v1030_v25, %v2103_v16 }
 0x163   :  { %800 = vadd.xlane.f32.xlu0 %v799_v59  ;;  %v1765_v30 = vpop.eup %1764  ;;  %v922_v28 = vadd.f32 %v1753_v37, %v921_v57  ;;  %v958_v50 = vadd.f32 %v1751_v39, %v957_v26  ;;  %1782 = vpow2.f32 %v699_v52  ;;  %v1031_v60 = vadd.s32 232, %v2692_v1 }
 0x164   :  { %v805_v38 = vadd.f32 %v1755_v44, %v1753_v37  ;;  %v1159_v22 = vsel %vm1094_vm2, %v2441_v5, 0.0  ;;  %v808_v51 = vadd.f32 %v1759_v19, %v1757_v14  ;;  %v1032_v36 = vadd.s32 240, %v2692_v1 }
 0x165   :  { %v1767_v35 = vpop.eup %1766  ;;  %v923_v9 = vadd.f32 %v1757_v14, %v922_v28  ;;  %v959_v47 = vadd.f32 %v1755_v44, %v958_v50  ;;  %v1222_v20 = vadd.f32 %v1220_v61, %v1159_v22  ;;  %vm1096_vm3 = vcmp.eq.s32.totalorder %v1031_v60, %v2103_v16 }
 0x166   :  { %803 = vadd.xlane.f32.xlu1 %v802_v53  ;;  %v811_v13 = vadd.f32 %v1763_v49, %v1761_v7  ;;  %v1161_v39 = vsel %vm1096_vm3, %v2468_v6, 0.0  ;;  %v814_v55 = vadd.f32 %v1767_v35, %v1765_v30  ;;  %vm1098_vm4 = vcmp.eq.s32.totalorder %v1032_v36, %v2103_v16  ;;  %v898_v53 = vld [vmem:[#allocation3] sm:$0x3] }
 0x167   :  { %v1769_v12 = vpop.eup %1768  ;;  %806 = vadd.xlane.f32.xlu0 %v805_v38  ;;  %v960_v33 = vadd.f32 %v1759_v19, %v959_v47  ;;  %v924_v3 = vadd.f32 %v1761_v7, %v923_v9  ;;  %v1224_v5 = vadd.f32 %v1222_v20, %v1161_v39  ;;  %v1033_v15 = vadd.s32 248, %v2692_v1 }
 0x168   :  { %v1771_v8 = vpop.eup %1770  ;;  %v1163_v48 = vsel %vm1098_vm4, %v2484_v21, 0.0  ;;  %v1851_v2 = vmov 1966171168   ;;  %v1427_v9 = vsub.s32 0, %v2692_v1  ;;  %v1431_v47 = vsub.s32 1, %v2692_v1 }
 0x169   :  { %v1773_v43 = vpop.eup %1772  ;;  %v961_v27 = vadd.f32 %v1763_v49, %v960_v33  ;;  %v925_v63 = vadd.f32 %v1765_v30, %v924_v3  ;;  %v817_v54 = vadd.f32 %v1771_v8, %v1769_v12  ;;  %v1226_v6 = vadd.f32 %v1224_v5, %v1163_v48  ;;  %v701_v33 = vld [vmem:[#allocation2] sm:$0xff] }
 0x16a   :  { %809 = vadd.xlane.f32.xlu1 %v808_v51  ;;  %vm1100_vm5 = vcmp.eq.s32.totalorder %v1033_v15, %v2103_v16  ;;  %v977_v24 = vunpack.c.l.s4 %v1851_v2  ;;  %v705_v5 = vld [vmem:[#allocation2 + $0x20] sm:$0xff] }
 0x16b   :  { %v1775_v17 = vpop.eup %1774  ;;  %812 = vadd.xlane.f32.xlu0 %v811_v13  ;;  %v962_v42 = vadd.f32 %v1767_v35, %v961_v27  ;;  %v926_v23 = vadd.f32 %v1769_v12, %v925_v63  ;;  %v1165_v58 = vsel %vm1100_vm5, %v2518_v31, 0.0  ;;  %v702_v27 = vld [vmem:[#allocation2 + $0x8] sm:$0xff] }
 0x16c   :  { %v1777_v62 = vpop.eup %1776  ;;  %v820_v41 = vadd.f32 %v1775_v17, %v1773_v43  ;;  %v1228_v7 = vadd.f32 %v1226_v6, %v1165_v58  ;;  %v978_v57 = vunpack.c.0.s8 %v977_v24  ;;  %v710_v58 = vld [vmem:[#allocation2 + $0x48] sm:$0xff] }
 0x16d   :  { %v1779_v37 = vpop.eup %1778  ;;  %v963_v34 = vadd.f32 %v1771_v8, %v962_v42  ;;  %v927_v32 = vadd.f32 %v1773_v43, %v926_v23  ;;  %v704_v23 = vld [vmem:[#allocation2 + $0x18] sm:$0xff] }
 0x16e   :  { %815 = vadd.xlane.f32.xlu1 %v814_v55  ;;  %v823_v14 = vadd.f32 %v1779_v37, %v1777_v62  ;;  %v981_v31 = vsub.s32 %v978_v57, %v2692_v1 }
 0x16f   :  { %818 = vadd.xlane.f32.xlu0 %v817_v54  ;;  %v1781_v40 = vpop.eup %1780  ;;  %v964_v10 = vadd.f32 %v1775_v17, %v963_v34  ;;  %v928_v44 = vadd.f32 %v1777_v62, %v927_v32  ;;  %v703_v62 = vld [vmem:[#allocation2 + $0x10] sm:$0xff]  ;;  %v2694_v32 = vmov 0.0  }
 0x170   :  { %v1783_v4 = vpop.eup %1782  ;;  %18 = vst [vmem:[%s2655_s2] sm:$0x1] %v2694_v32 }
 0x171   :  { %v965_v0 = vadd.f32 %v1779_v37, %v964_v10  ;;  %v929_v29 = vadd.f32 %v1781_v40, %v928_v44  ;;  %v826_v11 = vadd.f32 %v1783_v4, %v1781_v40  ;;  %v706_v37 = vld [vmem:[#allocation2 + $0x28] sm:$0xff]  ;;  %v707_v10 = vld [vmem:[#allocation2 + $0x30] sm:$0xff] }
 0x172   :  { %821 = vadd.xlane.f32.xlu1 %v820_v41  ;;  %v708_v41 = vld [vmem:[#allocation2 + $0x38] sm:$0xff] }
 0x173   :  { %824 = vadd.xlane.f32.xlu0 %v823_v14  ;;  %v930_v19 = vrot.slane %v929_v29, 4  ;;  %v966_v46 = vadd.f32 %v1783_v4, %v965_v0  ;;  %v709_v14 = vld [vmem:[#allocation2 + $0x40] sm:$0xff] }
 0x175   :  { %v931_v56 = vadd.f32 %v930_v19, %v929_v29  ;;  %v967_v18 = vrot.slane %v966_v46, 4 }
 0x176   :  { %827 = vadd.xlane.f32.xlu1 %v826_v11 }
 0x177   :  { %1229 = vadd.xlane.f32.xlu0 %v1228_v7  ;;  %v932_v21 = vrot.slane %v931_v56, 2  ;;  %v968_v52 = vadd.f32 %v967_v18, %v966_v46 }
 0x179   :  { %v933_v16 = vadd.f32 %v932_v21, %v931_v56  ;;  %v969_v25 = vrot.slane %v968_v52, 2  ;;  %v711_v21 = vld [vmem:[#allocation2 + $0x50] sm:$0xff] }
 0x17b   :  { %v934_v59 = vrot.slane %v933_v16, 1  ;;  %v970_v49 = vadd.f32 %v969_v25, %v968_v52  ;;  %v712_v25 = vld [vmem:[#allocation2 + $0x58] sm:$0xff] }
 0x17d   :  { %v971_v26 = vrot.slane %v970_v49, 1  ;;  %v935_v45 = vadd.f32 %v934_v59, %v933_v16 }
 0x17f   :  { %v972_v30 = vadd.f32 %v971_v26, %v970_v49 }
 0x181   :  { %v975_v28 = vcombine.low %v935_v45, %v972_v30  ;;  %v713_v45 = vld [vmem:[#allocation2 + $0x60] sm:$0xff] }
 0x183   :  { %v982_v50 = vrot.slane %v975_v28, %v981_v31 }
 0x185   :  { %v989_v35 = vrot.slane %v982_v50, %v981_v31 }
 0x187   :  { %v991_v61 = vadd.f32 %v989_v35, %v898_v53  ;;  %v714_v35 = vld [vmem:[#allocation2 + $0x68] sm:$0xff] }
 0x189   :  { %996 = vst.msk [vmem:[#allocation3] sm:$0x3] %vm1964_vm0, %v991_v61 }
 0x190   :  { %v1420_v38 = vld [vmem:[#allocation3] sm:$0x3] }
 0x191   :  { %1784 = vlog2.f32 %v1420_v38 }
 0x19e   :  { %v1785_v12 = vpop.eup %1784 }
 0x19f   :  { %v1423_v8 = vmul.f32 0.6931472, %v1785_v12 }
 0x1a1   :  { %v1428_v3 = vrot.slane %v1423_v8, %v1427_v9  ;;  %v1432_v22 = vrot.slane %v1423_v8, %v1431_v47 }
 0x1a3   :  { %v735_v51 = vpop.xlane.xlu0 %734  ;;  %v1436_v20 = vsel %vm1435_vm6, %v1428_v3, 0.0  ;;  %v1437_v36 = vsel %vm1435_vm6, %v1432_v22, 0.0 }
 0x1a4   :  { %v829_v13 = vadd.f32 %v735_v51, %v701_v33  ;;  %v1438_v43 = vadd.f32 %v1437_v36, %v1436_v20  ;;  %v715_v51 = vld [vmem:[#allocation2 + $0x70] sm:$0xff] }
 0x1a6   :  { %862 = vst.msk [vmem:[#allocation2] sm:$0xff] %vm27_vm1, %v829_v13  ;;  %1439 = vadd.xlane.f32.xlu0 %v1438_v43 }
 0x1a7   :  { %v738_v63 = vpop.xlane.xlu0 %737 }
 0x1a8   :  { %v830_v17 = vadd.f32 %v738_v63, %v702_v27 }
 0x1aa   :  { %863 = vst.msk [vmem:[#allocation2 + $0x8] sm:$0xff] %vm27_vm1, %v830_v17  ;;  %v716_v17 = vld [vmem:[#allocation2 + $0x78] sm:$0xff] }
 0x1ab   :  { %v741_v1 = vpop.xlane.xlu1 %740 }
 0x1ac   :  { %v831_v42 = vadd.f32 %v741_v1, %v703_v62 }
 0x1ad   :  { %v1245_v46 = vld [vmem:[#allocation2] sm:$0xff] }
 0x1ae   :  { %864 = vst.msk [vmem:[#allocation2 + $0x10] sm:$0xff] %vm27_vm1, %v831_v42 }
 0x1af   :  { %v744_v39 = vpop.xlane.xlu1 %743 }
 0x1b0   :  { %v832_v55 = vadd.f32 %v744_v39, %v704_v23  ;;  %v717_v39 = vld [vmem:[#allocation2 + $0x80] sm:$0xff] }
 0x1b1   :  { %v1246_v29 = vld [vmem:[#allocation2 + $0x8] sm:$0xff] }
 0x1b2   :  { %865 = vst.msk [vmem:[#allocation2 + $0x18] sm:$0xff] %vm27_vm1, %v832_v55  ;;  %1786 = vlog2.f32 %v1246_v29 }
 0x1b3   :  { %v747_v15 = vpop.xlane.xlu0 %746  ;;  %1788 = vlog2.f32 %v1245_v46 }
 0x1b4   :  { %v833_v54 = vadd.f32 %v747_v15, %v705_v5 }
 0x1b5   :  { %v1247_v11 = vld [vmem:[#allocation2 + $0x10] sm:$0xff] }
 0x1b6   :  { %866 = vst.msk [vmem:[#allocation2 + $0x20] sm:$0xff] %vm27_vm1, %v833_v54  ;;  %1790 = vlog2.f32 %v1247_v11 }
 0x1b7   :  { %v750_v34 = vpop.xlane.xlu1 %749 }
 0x1b8   :  { %v834_v40 = vadd.f32 %v750_v34, %v706_v37 }
 0x1b9   :  { %v1248_v56 = vld [vmem:[#allocation2 + $0x18] sm:$0xff] }
 0x1ba   :  { %867 = vst.msk [vmem:[#allocation2 + $0x28] sm:$0xff] %vm27_vm1, %v834_v40  ;;  %1792 = vlog2.f32 %v1248_v56 }
 0x1bb   :  { %v753_v44 = vpop.xlane.xlu0 %752 }
 0x1bc   :  { %v835_v48 = vadd.f32 %v753_v44, %v707_v10 }
 0x1bd   :  { %v1249_v52 = vld [vmem:[#allocation2 + $0x20] sm:$0xff] }
 0x1be   :  { %868 = vst.msk [vmem:[#allocation2 + $0x30] sm:$0xff] %vm27_vm1, %v835_v48  ;;  %1794 = vlog2.f32 %v1249_v52  ;;  %v720_v52 = vld [vmem:[#allocation2 + $0x98] sm:$0xff] }
 0x1bf   :  { %v756_v4 = vpop.xlane.xlu1 %755  ;;  %v1787_v28 = vpop.eup %1786 }
 0x1c0   :  { %v836_v6 = vadd.f32 %v756_v4, %v708_v41  ;;  %v1789_v61 = vpop.eup %1788  ;;  %v1281_v47 = vmul.f32 0.6931472, %v1787_v28  ;;  %v718_v41 = vld [vmem:[#allocation2 + $0x88] sm:$0xff] }
 0x1c1   :  { %v1250_v24 = vld [vmem:[#allocation2 + $0x28] sm:$0xff]  ;;  %v1279_v3 = vmul.f32 0.6931472, %v1789_v61 }
 0x1c2   :  { %869 = vst.msk [vmem:[#allocation2 + $0x38] sm:$0xff] %vm27_vm1, %v836_v6  ;;  %v759_v0 = vpop.xlane.xlu0 %758  ;;  %1796 = vlog2.f32 %v1250_v24  ;;  %v1343_v36 = vsel %vm27_vm1, %v1281_v47, 0.0  ;;  %v722_v61 = vld [vmem:[#allocation2 + $0xa8] sm:$0xff]  ;;  %v723_v47 = vld [vmem:[#allocation2 + $0xb0] sm:$0xff] }
 0x1c3   :  { %v837_v19 = vadd.f32 %v759_v0, %v709_v14  ;;  %v1791_v60 = vpop.eup %1790  ;;  %v1342_v62 = vsel %vm27_vm1, %v1279_v3, 0.0  ;;  %v719_v14 = vld [vmem:[#allocation2 + $0x90] sm:$0xff] }
 0x1c4   :  { %v1283_v22 = vmul.f32 0.6931472, %v1791_v60  ;;  %v1344_v5 = vadd.f32 %v1343_v36, %v1342_v62  ;;  %v725_v62 = vld [vmem:[#allocation2 + $0xc0] sm:$0xff] }
 0x1c5   :  { %870 = vst.msk [vmem:[#allocation2 + $0x40] sm:$0xff] %vm27_vm1, %v837_v19  ;;  %v1251_v59 = vld [vmem:[#allocation2 + $0x30] sm:$0xff] }
 0x1c6   :  { %1798 = vlog2.f32 %v1251_v59  ;;  %v1345_v1 = vsel %vm27_vm1, %v1283_v22, 0.0 }
 0x1c7   :  { %v762_v7 = vpop.xlane.xlu1 %761  ;;  %v1793_v8 = vpop.eup %1792  ;;  %v1346_v10 = vadd.f32 %v1345_v1, %v1344_v5 }
 0x1c8   :  { %v838_v18 = vadd.f32 %v762_v7, %v710_v58  ;;  %v1285_v13 = vmul.f32 0.6931472, %v1793_v8 }
 0x1c9   :  { %v1252_v26 = vld [vmem:[#allocation2 + $0x38] sm:$0xff] }
 0x1ca   :  { %871 = vst.msk [vmem:[#allocation2 + $0x48] sm:$0xff] %vm27_vm1, %v838_v18  ;;  %1800 = vlog2.f32 %v1252_v26  ;;  %v1347_v54 = vsel %vm27_vm1, %v1285_v13, 0.0 }
 0x1cb   :  { %v765_v2 = vpop.xlane.xlu0 %764  ;;  %v1795_v20 = vpop.eup %1794  ;;  %v1348_v29 = vadd.f32 %v1347_v54, %v1346_v10  ;;  %v727_v10 = vld [vmem:[#allocation2 + $0xd0] sm:$0xff] }
 0x1cc   :  { %v839_v16 = vadd.f32 %v765_v2, %v711_v21  ;;  %v1253_v30 = vld [vmem:[#allocation2 + $0x40] sm:$0xff]  ;;  %v1287_v42 = vmul.f32 0.6931472, %v1795_v20 }
 0x1cd   :  { %1802 = vlog2.f32 %v1253_v30 }
 0x1ce   :  { %872 = vst.msk [vmem:[#allocation2 + $0x50] sm:$0xff] %vm27_vm1, %v839_v16  ;;  %v768_v49 = vpop.xlane.xlu1 %767  ;;  %v1349_v4 = vsel %vm27_vm1, %v1287_v42, 0.0 }
 0x1cf   :  { %v840_v57 = vadd.f32 %v768_v49, %v712_v25  ;;  %v1797_v27 = vpop.eup %1796  ;;  %v1350_v18 = vadd.f32 %v1349_v4, %v1348_v29  ;;  %v721_v25 = vld [vmem:[#allocation2 + $0xa0] sm:$0xff] }
 0x1d0   :  { %v1289_v37 = vmul.f32 0.6931472, %v1797_v27 }
 0x1d1   :  { %873 = vst.msk [vmem:[#allocation2 + $0x58] sm:$0xff] %vm27_vm1, %v840_v57  ;;  %v1254_v50 = vld [vmem:[#allocation2 + $0x48] sm:$0xff] }
 0x1d2   :  { %1804 = vlog2.f32 %v1254_v50  ;;  %v1351_v46 = vsel %vm27_vm1, %v1289_v37, 0.0 }
 0x1d3   :  { %v771_v31 = vpop.xlane.xlu0 %770  ;;  %v1799_v55 = vpop.eup %1798  ;;  %v1352_v49 = vadd.f32 %v1351_v46, %v1350_v18  ;;  %v728_v46 = vld [vmem:[#allocation2 + $0xd8] sm:$0xff] }
 0x1d4   :  { %v841_v53 = vadd.f32 %v771_v31, %v713_v45  ;;  %v1291_v6 = vmul.f32 0.6931472, %v1799_v55 }
 0x1d5   :  { %v1255_v38 = vld [vmem:[#allocation2 + $0x50] sm:$0xff] }
 0x1d6   :  { %874 = vst.msk [vmem:[#allocation2 + $0x60] sm:$0xff] %vm27_vm1, %v841_v53  ;;  %v774_v9 = vpop.xlane.xlu1 %773  ;;  %1806 = vlog2.f32 %v1255_v38  ;;  %v1353_v2 = vsel %vm27_vm1, %v1291_v6, 0.0 }
 0x1d7   :  { %v842_v12 = vadd.f32 %v774_v9, %v714_v35  ;;  %v1801_v40 = vpop.eup %1800  ;;  %v1354_v50 = vadd.f32 %v1353_v2, %v1352_v49 }
 0x1d8   :  { %v1256_v33 = vld [vmem:[#allocation2 + $0x58] sm:$0xff]  ;;  %v1293_v58 = vmul.f32 0.6931472, %v1801_v40 }
 0x1d9   :  { %875 = vst.msk [vmem:[#allocation2 + $0x68] sm:$0xff] %vm27_vm1, %v842_v12  ;;  %1808 = vlog2.f32 %v1256_v33 }
 0x1da   :  { %v1803_v0 = vpop.eup %1802  ;;  %v1355_v26 = vsel %vm27_vm1, %v1293_v58, 0.0 }
 0x1db   :  { %v1295_v24 = vmul.f32 0.6931472, %v1803_v0  ;;  %v1356_v12 = vadd.f32 %v1355_v26, %v1354_v50  ;;  %v730_v26 = vld [vmem:[#allocation2 + $0xe8] sm:$0xff] }
 0x1dc   :  { %v777_v43 = vpop.xlane.xlu0 %776 }
 0x1dd   :  { %v843_v63 = vadd.f32 %v777_v43, %v715_v51  ;;  %v1257_v23 = vld [vmem:[#allocation2 + $0x60] sm:$0xff]  ;;  %v1357_v60 = vsel %vm27_vm1, %v1295_v24, 0.0  ;;  %v724_v43 = vld [vmem:[#allocation2 + $0xb8] sm:$0xff] }
 0x1de   :  { %1810 = vlog2.f32 %v1257_v23  ;;  %v1358_v36 = vadd.f32 %v1357_v60, %v1356_v12 }
 0x1df   :  { %876 = vst.msk [vmem:[#allocation2 + $0x70] sm:$0xff] %vm27_vm1, %v843_v63  ;;  %v780_v15 = vpop.xlane.xlu1 %779  ;;  %v1805_v56 = vpop.eup %1804 }
 0x1e0   :  { %v783_v34 = vpop.xlane.xlu0 %782  ;;  %v844_v32 = vadd.f32 %v780_v15, %v716_v17  ;;  %v1258_v44 = vld [vmem:[#allocation2 + $0x68] sm:$0xff]  ;;  %v1297_v45 = vmul.f32 0.6931472, %v1805_v56  ;;  %v729_v56 = vld [vmem:[#allocation2 + $0xe0] sm:$0xff] }
 0x1e1   :  { %v845_v48 = vadd.f32 %v783_v34, %v717_v39  ;;  %1812 = vlog2.f32 %v1258_v44  ;;  %v726_v34 = vld [vmem:[#allocation2 + $0xc8] sm:$0xff] }
 0x1e2   :  { %877 = vst.msk [vmem:[#allocation2 + $0x78] sm:$0xff] %vm27_vm1, %v844_v32  ;;  %v1359_v3 = vsel %vm27_vm1, %v1297_v45, 0.0 }
 0x1e3   :  { %878 = vst.msk [vmem:[#allocation2 + $0x80] sm:$0xff] %vm27_vm1, %v845_v48  ;;  %v786_v19 = vpop.xlane.xlu1 %785  ;;  %v1807_v59 = vpop.eup %1806  ;;  %v1360_v23 = vadd.f32 %v1359_v3, %v1358_v36  ;;  %v732_v3 = vld [vmem:[#allocation2 + $0xf8] sm:$0xff] }
 0x1e4   :  { %v789_v11 = vpop.xlane.xlu0 %788  ;;  %v846_v7 = vadd.f32 %v786_v19, %v718_v41  ;;  %v1299_v38 = vmul.f32 0.6931472, %v1807_v59 }
 0x1e5   :  { %v847_v21 = vadd.f32 %v789_v11, %v719_v14 }
 0x1e6   :  { %v1259_v16 = vld [vmem:[#allocation2 + $0x70] sm:$0xff]  ;;  %879 = vst.msk [vmem:[#allocation2 + $0x88] sm:$0xff] %vm27_vm1, %v846_v7  ;;  %v1809_v28 = vpop.eup %1808  ;;  %v1361_v63 = vsel %vm27_vm1, %v1299_v38, 0.0 }
 0x1e7   :  { %1814 = vlog2.f32 %v1259_v16  ;;  %880 = vst.msk [vmem:[#allocation2 + $0x90] sm:$0xff] %vm27_vm1, %v847_v21  ;;  %v792_v57 = vpop.xlane.xlu1 %791  ;;  %v1301_v22 = vmul.f32 0.6931472, %v1809_v28  ;;  %v1362_v40 = vadd.f32 %v1361_v63, %v1360_v23  ;;  %v731_v28 = vld [vmem:[#allocation2 + $0xf0] sm:$0xff] }
 0x1e8   :  { %v795_v30 = vpop.xlane.xlu0 %794  ;;  %v848_v31 = vadd.f32 %v792_v57, %v720_v52 }
 0x1e9   :  { %v1260_v53 = vld [vmem:[#allocation2 + $0x78] sm:$0xff]  ;;  %v849_v35 = vadd.f32 %v795_v30, %v721_v25  ;;  %v1363_v54 = vsel %vm27_vm1, %v1301_v22, 0.0 }
 0x1ea   :  { %v1261_v9 = vld [vmem:[#allocation2 + $0x80] sm:$0xff]  ;;  %1816 = vlog2.f32 %v1260_v53  ;;  %881 = vst.msk [vmem:[#allocation2 + $0x98] sm:$0xff] %vm27_vm1, %v848_v31  ;;  %v1364_v4 = vadd.f32 %v1363_v54, %v1362_v40 }
 0x1eb   :  { %1818 = vlog2.f32 %v1261_v9  ;;  %882 = vst.msk [vmem:[#allocation2 + $0xa0] sm:$0xff] %vm27_vm1, %v849_v35  ;;  %v798_v8 = vpop.xlane.xlu1 %797  ;;  %v1811_v33 = vpop.eup %1810 }
 0x1ec   :  { %v801_v51 = vpop.xlane.xlu0 %800  ;;  %v850_v20 = vadd.f32 %v798_v8, %v722_v61  ;;  %v1303_v17 = vmul.f32 0.6931472, %v1811_v33 }
 0x1ed   :  { %v851_v13 = vadd.f32 %v801_v51, %v723_v47  ;;  %v1262_v27 = vld [vmem:[#allocation2 + $0x88] sm:$0xff] }
 0x1ee   :  { %883 = vst.msk [vmem:[#allocation2 + $0xa8] sm:$0xff] %vm27_vm1, %v850_v20  ;;  %v1263_v1 = vld [vmem:[#allocation2 + $0x90] sm:$0xff]  ;;  %1820 = vlog2.f32 %v1262_v27  ;;  %v1813_v42 = vpop.eup %1812  ;;  %v1365_v48 = vsel %vm27_vm1, %v1303_v17, 0.0 }
 0x1ef   :  { %884 = vst.msk [vmem:[#allocation2 + $0xb0] sm:$0xff] %vm27_vm1, %v851_v13  ;;  %v804_v39 = vpop.xlane.xlu1 %803  ;;  %1822 = vlog2.f32 %v1263_v1  ;;  %v1305_v15 = vmul.f32 0.6931472, %v1813_v42  ;;  %v1366_v7 = vadd.f32 %v1365_v48, %v1364_v4 }
 0x1f0   :  { %v807_v55 = vpop.xlane.xlu0 %806  ;;  %v852_v5 = vadd.f32 %v804_v39, %v724_v43 }
 0x1f1   :  { %v853_v37 = vadd.f32 %v807_v55, %v725_v62  ;;  %v1264_v32 = vld [vmem:[#allocation2 + $0x98] sm:$0xff]  ;;  %v1367_v29 = vsel %vm27_vm1, %v1305_v15, 0.0 }
 0x1f2   :  { %885 = vst.msk [vmem:[#allocation2 + $0xb8] sm:$0xff] %vm27_vm1, %v852_v5  ;;  %v1265_v44 = vld [vmem:[#allocation2 + $0xa0] sm:$0xff]  ;;  %1824 = vlog2.f32 %v1264_v32  ;;  %v1368_v2 = vadd.f32 %v1367_v29, %v1366_v7 }
 0x1f3   :  { %886 = vst.msk [vmem:[#allocation2 + $0xc0] sm:$0xff] %vm27_vm1, %v853_v37  ;;  %v810_v41 = vpop.xlane.xlu1 %809  ;;  %1826 = vlog2.f32 %v1265_v44 }
 0x1f4   :  { %v1815_v6 = vpop.eup %1814  ;;  %v813_v14 = vpop.xlane.xlu0 %812  ;;  %v854_v0 = vadd.f32 %v810_v41, %v726_v34 }
 0x1f5   :  { %v855_v19 = vadd.f32 %v813_v14, %v727_v10  ;;  %v1266_v58 = vld [vmem:[#allocation2 + $0xa8] sm:$0xff]  ;;  %v1307_v11 = vmul.f32 0.6931472, %v1815_v6 }
 0x1f6   :  { %887 = vst.msk [vmem:[#allocation2 + $0xc8] sm:$0xff] %vm27_vm1, %v854_v0  ;;  %v1267_v18 = vld [vmem:[#allocation2 + $0xb0] sm:$0xff]  ;;  %1828 = vlog2.f32 %v1266_v58 }
 0x1f7   :  { %v1817_v21 = vpop.eup %1816  ;;  %888 = vst.msk [vmem:[#allocation2 + $0xd0] sm:$0xff] %vm27_vm1, %v855_v19  ;;  %v816_v52 = vpop.xlane.xlu1 %815  ;;  %1830 = vlog2.f32 %v1267_v18  ;;  %v1369_v24 = vsel %vm27_vm1, %v1307_v11, 0.0 }
 0x1f8   :  { %v1819_v16 = vpop.eup %1818  ;;  %v819_v25 = vpop.xlane.xlu0 %818  ;;  %v856_v59 = vadd.f32 %v816_v52, %v728_v46  ;;  %v1309_v49 = vmul.f32 0.6931472, %v1817_v21  ;;  %v1370_v31 = vadd.f32 %v1369_v24, %v1368_v2 }
 0x1f9   :  { %v857_v57 = vadd.f32 %v819_v25, %v729_v56  ;;  %v1268_v45 = vld [vmem:[#allocation2 + $0xb8] sm:$0xff]  ;;  %v1311_v30 = vmul.f32 0.6931472, %v1819_v16 }
 0x1fa   :  { %889 = vst.msk [vmem:[#allocation2 + $0xd8] sm:$0xff] %vm27_vm1, %v856_v59  ;;  %v1269_v50 = vld [vmem:[#allocation2 + $0xc0] sm:$0xff]  ;;  %1832 = vlog2.f32 %v1268_v45  ;;  %v1371_v53 = vsel %vm27_vm1, %v1309_v49, 0.0 }
 0x1fb   :  { %v1821_v35 = vpop.eup %1820  ;;  %890 = vst.msk [vmem:[#allocation2 + $0xe0] sm:$0xff] %vm27_vm1, %v857_v57  ;;  %v822_v61 = vpop.xlane.xlu1 %821  ;;  %1834 = vlog2.f32 %v1269_v50  ;;  %v1372_v60 = vadd.f32 %v1371_v53, %v1370_v31  ;;  %v1373_v8 = vsel %vm27_vm1, %v1311_v30, 0.0 }
 0x1fc   :  { %v1823_v38 = vpop.eup %1822  ;;  %v825_v9 = vpop.xlane.xlu0 %824  ;;  %v858_v47 = vadd.f32 %v822_v61, %v730_v26  ;;  %v1313_v12 = vmul.f32 0.6931472, %v1821_v35 }
 0x1fd   :  { %v859_v33 = vadd.f32 %v825_v9, %v731_v28  ;;  %v1270_v22 = vld [vmem:[#allocation2 + $0xc8] sm:$0xff]  ;;  %v1315_v51 = vmul.f32 0.6931472, %v1823_v38  ;;  %v1374_v20 = vadd.f32 %v1373_v8, %v1372_v60 }
 0x1fe   :  { %891 = vst.msk [vmem:[#allocation2 + $0xe8] sm:$0xff] %vm27_vm1, %v858_v47  ;;  %v1271_v36 = vld [vmem:[#allocation2 + $0xd0] sm:$0xff]  ;;  %1836 = vlog2.f32 %v1270_v22  ;;  %v1375_v13 = vsel %vm27_vm1, %v1313_v12, 0.0 }
 0x1ff   :  { %v1825_v43 = vpop.eup %1824  ;;  %892 = vst.msk [vmem:[#allocation2 + $0xf0] sm:$0xff] %vm27_vm1, %v859_v33  ;;  %v828_v27 = vpop.xlane.xlu1 %827  ;;  %1838 = vlog2.f32 %v1271_v36  ;;  %v1376_v63 = vadd.f32 %v1375_v13, %v1374_v20  ;;  %v1377_v23 = vsel %vm27_vm1, %v1315_v51, 0.0 }
 0x200   :  { %v1827_v17 = vpop.eup %1826  ;;  %v1230_v62 = vpop.xlane.xlu0 %1229  ;;  %v860_v1 = vadd.f32 %v828_v27, %v732_v3  ;;  %v1317_v42 = vmul.f32 0.6931472, %v1825_v43 }
 0x201   :  { %v1231_v39 = vrot.slane %v1230_v62, 4  ;;  %v1272_v55 = vld [vmem:[#allocation2 + $0xd8] sm:$0xff]  ;;  %v1319_v5 = vmul.f32 0.6931472, %v1827_v17  ;;  %v1378_v15 = vadd.f32 %v1377_v23, %v1376_v63 }
 0x202   :  { %893 = vst.msk [vmem:[#allocation2 + $0xf8] sm:$0xff] %vm27_vm1, %v860_v1  ;;  %v1273_v54 = vld [vmem:[#allocation2 + $0xe0] sm:$0xff]  ;;  %1840 = vlog2.f32 %v1272_v55  ;;  %v1379_v37 = vsel %vm27_vm1, %v1317_v42, 0.0 }
 0x203   :  { %v1829_v34 = vpop.eup %1828  ;;  %v1232_v32 = vadd.f32 %v1231_v39, %v1230_v62  ;;  %1842 = vlog2.f32 %v1273_v54  ;;  %v1380_v40 = vadd.f32 %v1379_v37, %v1378_v15  ;;  %v1381_v48 = vsel %vm27_vm1, %v1319_v5, 0.0  ;;  %v1101_v1 = vld [vmem:[%s2655_s2] sm:$0x1] }
 0x204   :  { %v1831_v10 = vpop.eup %1830  ;;  %v1321_v44 = vmul.f32 0.6931472, %v1829_v34 }
 0x205   :  { %v1233_v41 = vrot.slane %v1232_v32, 2  ;;  %v1274_v4 = vld [vmem:[#allocation2 + $0xe8] sm:$0xff]  ;;  %v1323_v6 = vmul.f32 0.6931472, %v1831_v10  ;;  %v1382_v14 = vadd.f32 %v1381_v48, %v1380_v40 }
 0x206   :  { %v1275_v0 = vld [vmem:[#allocation2 + $0xf0] sm:$0xff]  ;;  %1844 = vlog2.f32 %v1274_v4  ;;  %v1383_v29 = vsel %vm27_vm1, %v1321_v44, 0.0 }
 0x207   :  { %v1833_v19 = vpop.eup %1832  ;;  %v1234_v46 = vadd.f32 %v1233_v41, %v1232_v32  ;;  %1846 = vlog2.f32 %v1275_v0  ;;  %v1384_v58 = vadd.f32 %v1383_v29, %v1382_v14  ;;  %v1385_v56 = vsel %vm27_vm1, %v1323_v6, 0.0 }
 0x208   :  { %v1835_v11 = vpop.eup %1834  ;;  %v1325_v7 = vmul.f32 0.6931472, %v1833_v19 }
 0x209   :  { %v1235_v18 = vrot.slane %v1234_v46, 1  ;;  %v1276_v21 = vld [vmem:[#allocation2 + $0xf8] sm:$0xff]  ;;  %v1327_v52 = vmul.f32 0.6931472, %v1835_v11  ;;  %v1386_v2 = vadd.f32 %v1385_v56, %v1384_v58 }
 0x20a   :  { %1848 = vlog2.f32 %v1276_v21  ;;  %v1387_v24 = vsel %vm27_vm1, %v1325_v7, 0.0 }
 0x20b   :  { %v1837_v16 = vpop.eup %1836  ;;  %v1236_v25 = vadd.f32 %v1235_v18, %v1234_v46  ;;  %v1388_v59 = vadd.f32 %v1387_v24, %v1386_v2  ;;  %v1389_v26 = vsel %vm27_vm1, %v1327_v52, 0.0 }
 0x20c   :  { %v1839_v49 = vpop.eup %1838  ;;  %v1329_v57 = vmul.f32 0.6931472, %v1837_v16 }
 0x20d   :  { %1616 = vpush %v1236_v25  ;;  %v1331_v45 = vmul.f32 0.6931472, %v1839_v49  ;;  %v1390_v30 = vadd.f32 %v1389_v26, %v1388_v59 }
 0x20e   :  { %v1391_v31 = vsel %vm27_vm1, %v1329_v57, 0.0 }
 0x20f   :  { %v1841_v28 = vpop.eup %1840  ;;  %v1392_v50 = vadd.f32 %v1391_v31, %v1390_v30  ;;  %v1393_v61 = vsel %vm27_vm1, %v1331_v45, 0.0 }
 0x210   :  { %v1843_v53 = vpop.eup %1842  ;;  %v1333_v35 = vmul.f32 0.6931472, %v1841_v28 }
 0x211   :  { %v1335_v60 = vmul.f32 0.6931472, %v1843_v53  ;;  %v1394_v38 = vadd.f32 %v1393_v61, %v1392_v50 }
 0x212   :  { %v1395_v9 = vsel %vm27_vm1, %v1333_v35, 0.0 }
 0x213   :  { %v1845_v47 = vpop.eup %1844  ;;  %v1396_v12 = vadd.f32 %v1395_v9, %v1394_v38  ;;  %v1397_v3 = vsel %vm27_vm1, %v1335_v60, 0.0 }
 0x214   :  { %v1847_v8 = vpop.eup %1846  ;;  %v1337_v33 = vmul.f32 0.6931472, %v1845_v47 }
 0x215   :  { %v1339_v22 = vmul.f32 0.6931472, %v1847_v8  ;;  %v1398_v51 = vadd.f32 %v1397_v3, %v1396_v12 }
 0x216   :  { %v1399_v20 = vsel %vm27_vm1, %v1337_v33, 0.0 }
 0x217   :  { %v1849_v36 = vpop.eup %1848  ;;  %v1400_v13 = vadd.f32 %v1399_v20, %v1398_v51  ;;  %v1401_v27 = vsel %vm27_vm1, %v1339_v22, 0.0 }
 0x218   :  { %v1341_v43 = vmul.f32 0.6931472, %v1849_v36 }
 0x219   :  { %v1402_v63 = vadd.f32 %v1401_v27, %v1400_v13 }
 0x21a   :  { %v1403_v17 = vsel %vm27_vm1, %v1341_v43, 0.0 }
 0x21b   :  { %v1404_v62 = vadd.f32 %v1403_v17, %v1402_v63 }
 0x21d   :  { %1405 = vadd.xlane.f32.xlu1 %v1404_v62 }
 0x22f   :  { %v1440_v39 = vpop.xlane.xlu0 %1439 }
 0x230   :  { %v1441_v55 = vrot.slane %v1440_v39, 4 }
 0x232   :  { %v1442_v5 = vadd.f32 %v1441_v55, %v1440_v39 }
 0x234   :  { %v1443_v15 = vrot.slane %v1442_v5, 2 }
 0x236   :  { %v1444_v32 = vadd.f32 %v1443_v15, %v1442_v5 }
 0x238   :  { %v1445_v44 = vrot.slane %v1444_v32, 1 }
 0x23a   :  { %v1446_v4 = vadd.f32 %v1445_v44, %v1444_v32 }
 0x23e   :  { %s1617_s17 = spop %1616 }
 0x23f   :  { %s1238_s20 = smul.f32 2.0, %s1617_s17 }
 0x241   :  { %v1239_v42 = vstv %s1238_s20 }
 0x242   :  { %v1240_v23 = vsub.f32 %v1101_v1, %v1239_v42 }
 0x244   :  { %1241 = vst [vmem:[%s2655_s2] sm:$0x1] %v1240_v23 }
 0x24b   :  { %v1277_v6 = vld [vmem:[%s2655_s2] sm:$0x1] }
 0x2a6   :  { %v1406_v54 = vpop.xlane.xlu1 %1405 }
 0x2a7   :  { %v1407_v37 = vrot.slane %v1406_v54, 4 }
 0x2a9   :  { %v1408_v34 = vadd.f32 %v1407_v37, %v1406_v54 }
 0x2ab   :  { %v1409_v40 = vrot.slane %v1408_v34, 2 }
 0x2ad   :  { %v1410_v10 = vadd.f32 %v1409_v40, %v1408_v34 }
 0x2af   :  { %v1411_v48 = vrot.slane %v1410_v10, 1 }
 0x2b1   :  { %v1412_v41 = vadd.f32 %v1411_v48, %v1410_v10 }
 0x2b3   :  { %1618 = vpush %v1412_v41 }
 0x2b4   :  { %1620 = vpush %v1446_v4 }
 0x2e4   :  { %s1619_s23 = spop %1618 }
 0x2e5   :  { %v1414_v14 = vstv %s1619_s23  ;;  %s1621_s27 = spop %1620 }
 0x2e6   :  { %v1415_v0 = vadd.f32 %v1414_v14, %v1277_v6  ;;  %v1448_v19 = vstv %s1621_s27 }
 0x2e8   :  { %1416 = vst [vmem:[%s2655_s2] sm:$0x1] %v1415_v0 }
 0x2ef   :  { %v1421_v29 = vld [vmem:[%s2655_s2] sm:$0x1] }
 0x2f0   :  { %v1449_v46 = vadd.f32 %v1448_v19, %v1421_v29 }
 0x2f2   :  { %1450 = vst [vmem:[%s2655_s2] sm:$0x1] %v1449_v46 }

// kernel: contrast_loss_pallas.2
= control target key start
LH: loop header
LB: loop body
LE: loop exit
PB: predicated region body
PF: predicated region fallthrough
CT: control target
= control target key end

     0   :  { %s3526_s2 = inlined_call_operand.vmem [shape: bf16[128,128], index: 2, kind: input, shape index: {}]   ;;  %s3527_s0 = inlined_call_operand.vmem [shape: bf16[256,128], index: 0, kind: input, shape index: {}]   ;;  %s3528_s1 = inlined_call_operand.vmem [shape: bf16[256,128], index: 1, kind: input, shape index: {}]   ;;  %s3529_s4 = inlined_call_operand.vmem [shape: bf16[128,128], index: 4, kind: input, shape index: {}]   ;;  %s3530_s3 = inlined_call_operand.vmem [shape: f32[1,128], index: 3, kind: input, shape index: {}]   ;;  %s3531_s5 = inlined_call_operand.vmem [shape: f32[1,128], index: 5, kind: input, shape index: {}]   ;;  %s3532_s6 = inlined_call_operand.vmem [shape: bf16[256,128], index: 6, kind: output, shape index: {0}]   ;;  %s3533_s7 = inlined_call_operand.vmem [shape: bf16[256,128], index: 7, kind: output, shape index: {1}]  }
   0x1   :  { %v2564_v0 = vld [vmem:[%s3526_s2 + $0x38] sm:$0xff]   ;;  %v2565_v1 = vld [vmem:[%s3526_s2 + $0x30] sm:$0xff]   ;;  %v2566_v2 = vld [vmem:[%s3526_s2 + $0x28] sm:$0xff]  }
   0x2   :  { %2372 = vmatprep.subr.bf16.mxu0 %v2564_v0  ;;  %v2567_v3 = vld [vmem:[%s3526_s2 + $0x20] sm:$0xff]   ;;  %v2568_v5 = vld [vmem:[%s3526_s2 + $0x18] sm:$0xff]   ;;  %v2569_v6 = vld [vmem:[%s3526_s2 + $0x10] sm:$0xff]  }
   0x3   :  { %2373 = vmatpush3.bf16.msra.mxu0 %v2564_v0  ;;  %v2572_v4 = vld [vmem:[%s3527_s0] sm:$0xff]   ;;  %v2570_v7 = vld [vmem:[%s3526_s2 + $0x8] sm:$0xff]   ;;  %v2574_v10 = vld [vmem:[%s3527_s0 + $0x10] sm:$0xff]  }
   0x4   :  { %2374 = vmatprep.subr.bf16.mxu0 %v2565_v1  ;;  %2388 = vmatprep.mubr.bf16.mxu0 %v2572_v4  ;;  %v2571_v8 = vld [vmem:[%s3526_s2] sm:$0xff]   ;;  %v2573_v9 = vld [vmem:[%s3527_s0 + $0x8] sm:$0xff]   ;;  %v2575_v11 = vld [vmem:[%s3527_s0 + $0x18] sm:$0xff]  }
   0x5   :  { %v2576_v12 = vld [vmem:[%s3527_s0 + $0x20] sm:$0xff]   ;;  %v2822_v13 = vld [vmem:[%s3529_s4 + $0x38] sm:$0xff]   ;;  %v2827_v14 = vld [vmem:[%s3529_s4 + $0x30] sm:$0xff]  }
   0x6   :  { %2420 = vmatprep.subr.bf16.mxu1 %v2822_v13  ;;  %v2577_v15 = vld [vmem:[%s3527_s0 + $0x28] sm:$0xff]   ;;  %v2578_v17 = vld [vmem:[%s3527_s0 + $0x30] sm:$0xff]   ;;  %v2848_v18 = vld [vmem:[%s3529_s4 + $0x20] sm:$0xff]  }
   0x7   :  { %2375 = vmatpush3.bf16.msra.mxu0 %v2565_v1  ;;  %2421 = vmatpush3.bf16.msra.mxu1 %v2822_v13  ;;  %v2837_v16 = vld [vmem:[%s3529_s4 + $0x28] sm:$0xff]   ;;  %v2855_v19 = vld [vmem:[%s3529_s4 + $0x18] sm:$0xff]   ;;  %v2580_v21 = vld [vmem:[%s3527_s0 + $0x40] sm:$0xff]  }
   0x8   :  { %2376 = vmatprep.subr.bf16.mxu0 %v2566_v2  ;;  %2422 = vmatprep.subr.bf16.mxu1 %v2827_v14  ;;  %v2579_v20 = vld [vmem:[%s3527_s0 + $0x38] sm:$0xff]   ;;  %v2581_v22 = vld [vmem:[%s3527_s0 + $0x48] sm:$0xff]   ;;  %v2582_v23 = vld [vmem:[%s3527_s0 + $0x50] sm:$0xff]  }
   0x9   :  { %v2583_v24 = vld [vmem:[%s3527_s0 + $0x58] sm:$0xff]   ;;  %v2584_v25 = vld [vmem:[%s3527_s0 + $0x60] sm:$0xff]   ;;  %v2585_v26 = vld [vmem:[%s3527_s0 + $0x68] sm:$0xff]  }
   0xa   :  { %v2586_v27 = vld [vmem:[%s3527_s0 + $0x70] sm:$0xff]   ;;  %v2587_v28 = vld [vmem:[%s3527_s0 + $0x78] sm:$0xff]   ;;  %v2588_v29 = vld [vmem:[%s3528_s1] sm:$0xff]  }
   0xb   :  { %2377 = vmatpush3.bf16.msra.mxu0 %v2566_v2  ;;  %2423 = vmatpush3.bf16.msra.mxu1 %v2827_v14  ;;  %v2589_v30 = vld [vmem:[%s3528_s1 + $0x8] sm:$0xff]   ;;  %v2590_v31 = vld [vmem:[%s3528_s1 + $0x10] sm:$0xff]   ;;  %v2591_v33 = vld [vmem:[%s3528_s1 + $0x18] sm:$0xff]  }
   0xc   :  { %2378 = vmatprep.subr.bf16.mxu0 %v2567_v3  ;;  %2424 = vmatprep.subr.bf16.mxu1 %v2837_v16  ;;  %v2899_v32 = vld [vmem:[%s3529_s4 + $0x10] sm:$0xff]   ;;  %v2909_v34 = vld [vmem:[%s3529_s4 + $0x8] sm:$0xff]   ;;  %v2592_v35 = vld [vmem:[%s3528_s1 + $0x20] sm:$0xff]  }
   0xd   :  { %v2919_v36 = vld [vmem:[%s3529_s4] sm:$0xff]   ;;  %v2593_v37 = vld [vmem:[%s3528_s1 + $0x28] sm:$0xff]   ;;  %v2594_v38 = vld [vmem:[%s3528_s1 + $0x30] sm:$0xff]  }
   0xe   :  { %v2595_v39 = vld [vmem:[%s3528_s1 + $0x38] sm:$0xff]   ;;  %v2596_v40 = vld [vmem:[%s3528_s1 + $0x40] sm:$0xff]   ;;  %v2597_v41 = vld [vmem:[%s3528_s1 + $0x48] sm:$0xff]  }
   0xf   :  { %2379 = vmatpush3.bf16.msra.mxu0 %v2567_v3  ;;  %2425 = vmatpush3.bf16.msra.mxu1 %v2837_v16  ;;  %v2598_v42 = vld [vmem:[%s3528_s1 + $0x50] sm:$0xff]   ;;  %v2599_v43 = vld [vmem:[%s3528_s1 + $0x58] sm:$0xff]   ;;  %v2600_v44 = vld [vmem:[%s3528_s1 + $0x60] sm:$0xff]  }
  0x10   :  { %2380 = vmatprep.subr.bf16.mxu0 %v2568_v5  ;;  %2426 = vmatprep.subr.bf16.mxu1 %v2848_v18  ;;  %v2601_v45 = vld [vmem:[%s3528_s1 + $0x68] sm:$0xff]   ;;  %v2602_v46 = vld [vmem:[%s3528_s1 + $0x70] sm:$0xff]   ;;  %v2603_v47 = vld [vmem:[%s3528_s1 + $0x78] sm:$0xff]  }
  0x11   :  { %v2960_v50 = vld [vmem:[%s3530_s3] ss:$0 sm:$0xff] }
  0x13   :  { %2381 = vmatpush3.bf16.msra.mxu0 %v2568_v5  ;;  %2427 = vmatpush3.bf16.msra.mxu1 %v2848_v18 }
  0x14   :  { %2382 = vmatprep.subr.bf16.mxu0 %v2569_v6  ;;  %2428 = vmatprep.subr.bf16.mxu1 %v2855_v19 }
  0x17   :  { %2383 = vmatpush3.bf16.msra.mxu0 %v2569_v6  ;;  %2429 = vmatpush3.bf16.msra.mxu1 %v2855_v19 }
  0x18   :  { %2384 = vmatprep.subr.bf16.mxu0 %v2570_v7  ;;  %2430 = vmatprep.subr.bf16.mxu1 %v2899_v32 }
  0x1b   :  { %2385 = vmatpush3.bf16.msra.mxu0 %v2570_v7  ;;  %2431 = vmatpush3.bf16.msra.mxu1 %v2899_v32 }
  0x1c   :  { %2386 = vmatprep.subr.bf16.mxu0 %v2571_v8  ;;  %2432 = vmatprep.subr.bf16.mxu1 %v2909_v34 }
  0x1f   :  { %2387 = vmatpush3.bf16.msra.mxu0 %v2571_v8  ;;  %2433 = vmatpush3.bf16.msra.mxu1 %v2909_v34 }
  0x20   :  { %2468 = vmatprep.subr.bf16.mxu0 %v2564_v0  ;;  %2434 = vmatprep.subr.bf16.mxu1 %v2919_v36 }
  0x22   :  { %2389 = vmatmul.mubr.bf16.vlgmr.msra.gmra.mxu0 %v2573_v9 }
  0x23   :  { %2469 = vmatpush3.bf16.msra.mxu0 %v2564_v0  ;;  %2392 = vmatprep.mubr.bf16.mxu0 %v2574_v10 }
  0x24   :  { %2470 = vmatprep.subr.bf16.mxu0 %v2565_v1  ;;  %2435 = vmatpush3.bf16.msra.mxu1 %v2919_v36 }
  0x25   :  { %2516 = vmatprep.subr.bf16.mxu1 %v2822_v13 }
  0x27   :  { %2471 = vmatpush3.bf16.msra.mxu0 %v2565_v1 }
  0x28   :  { %2472 = vmatprep.subr.bf16.mxu0 %v2566_v2 }
  0x2a   :  { %2393 = vmatmul.mubr.bf16.gmra.mxu0 %v2575_v11 }
  0x2b   :  { %2396 = vmatprep.mubr.bf16.mxu0 %v2576_v12  ;;  %2473 = vmatpush3.bf16.msra.mxu0 %v2566_v2 }
  0x2c   :  { %2474 = vmatprep.subr.bf16.mxu0 %v2567_v3 }
  0x2f   :  { %2475 = vmatpush3.bf16.msra.mxu0 %v2567_v3 }
  0x30   :  { %2476 = vmatprep.subr.bf16.mxu0 %v2568_v5 }
  0x32   :  { %2397 = vmatmul.mubr.bf16.gmra.mxu0 %v2577_v15 }
  0x33   :  { %2400 = vmatprep.mubr.bf16.mxu0 %v2578_v17  ;;  %2477 = vmatpush3.bf16.msra.mxu0 %v2568_v5 }
  0x34   :  { %2478 = vmatprep.subr.bf16.mxu0 %v2569_v6 }
  0x37   :  { %2479 = vmatpush3.bf16.msra.mxu0 %v2569_v6 }
  0x38   :  { %2480 = vmatprep.subr.bf16.mxu0 %v2570_v7 }
  0x3a   :  { %2401 = vmatmul.mubr.bf16.gmra.mxu0 %v2579_v20 }
  0x3b   :  { %2404 = vmatprep.mubr.bf16.mxu0 %v2580_v21  ;;  %2481 = vmatpush3.bf16.msra.mxu0 %v2570_v7 }
  0x3c   :  { %2482 = vmatprep.subr.bf16.mxu0 %v2571_v8 }
  0x3f   :  { %2483 = vmatpush3.bf16.msra.mxu0 %v2571_v8 }
  0x42   :  { %2405 = vmatmul.mubr.bf16.gmra.mxu0 %v2581_v22 }
  0x43   :  { %2408 = vmatprep.mubr.bf16.mxu0 %v2582_v23 }
  0x4a   :  { %2409 = vmatmul.mubr.bf16.gmra.mxu0 %v2583_v24 }
  0x4b   :  { %2412 = vmatprep.mubr.bf16.mxu0 %v2584_v25 }
  0x52   :  { %2413 = vmatmul.mubr.bf16.gmra.mxu0 %v2585_v26 }
  0x53   :  { %2416 = vmatprep.mubr.bf16.mxu0 %v2586_v27 }
  0x5a   :  { %2417 = vmatmul.mubr.bf16.gmra.mxu0 %v2587_v28 }
  0x5b   :  { %2484 = vmatprep.mubr.bf16.mxu0 %v2588_v29 }
  0x62   :  { %2485 = vmatmul.mubr.bf16.vlgmr.msra.gmra.mxu0 %v2589_v30 }
  0x63   :  { %2488 = vmatprep.mubr.bf16.mxu0 %v2590_v31 }
  0x6a   :  { %2489 = vmatmul.mubr.bf16.gmra.mxu0 %v2591_v33 }
  0x6b   :  { %2492 = vmatprep.mubr.bf16.mxu0 %v2592_v35 }
  0x72   :  { %2493 = vmatmul.mubr.bf16.gmra.mxu0 %v2593_v37 }
  0x73   :  { %2496 = vmatprep.mubr.bf16.mxu0 %v2594_v38 }
  0x7a   :  { %2497 = vmatmul.mubr.bf16.gmra.mxu0 %v2595_v39 }
  0x7b   :  { %2500 = vmatprep.mubr.bf16.mxu0 %v2596_v40 }
  0x82   :  { %2501 = vmatmul.mubr.bf16.gmra.mxu0 %v2597_v41 }
  0x83   :  { %2504 = vmatprep.mubr.bf16.mxu0 %v2598_v42 }
  0x8a   :  { %2505 = vmatmul.mubr.bf16.gmra.mxu0 %v2599_v43 }
  0x8b   :  { %2508 = vmatprep.mubr.bf16.mxu0 %v2600_v44 }
  0x92   :  { %2509 = vmatmul.mubr.bf16.gmra.mxu0 %v2601_v45 }
  0x93   :  { %2512 = vmatprep.mubr.bf16.mxu0 %v2602_v46 }
  0x9a   :  { %2513 = vmatmul.mubr.bf16.gmra.mxu0 %v2603_v47 }
  0xe2   :  { %v2390_v48 = vpop.f32.mrf.mxu0 }
  0xe3   :  { %v285_v54 = vadd.f32 %v2390_v48, %v2960_v50 }
  0xe4   :  { %v276_v49 = vpop.f32.mrf.mxu0 }
  0xe5   :  { %v277_v52 = vadd.f32 %v2960_v50, %v276_v49  ;;  %v405_v61 = vmax.f32 %v285_v54, 0.0 }
  0xe6   :  { %v2391_v51 = vpop.f32.mrf.mxu0 }
  0xe7   :  { %v288_v53 = vadd.f32 %v2391_v51, %v2960_v50  ;;  %v403_v59 = vmax.f32 %v277_v52, 0.0 }
  0xe8   :  { %v279_v55 = vpop.f32.mrf.mxu0 }
  0xe9   :  { %v280_v56 = vadd.f32 %v2960_v50, %v279_v55  ;;  %v406_v57 = vmax.f32 %v288_v53, 0.0 }
  0xea   :  { %v2394_v58 = vpop.f32.mrf.mxu0 }
  0xeb   :  { %v404_v60 = vmax.f32 %v280_v56, 0.0  ;;  %v436_v0 = vpack.c.bf16 %v406_v57, %v405_v61  ;;  %v301_v4 = vadd.f32 %v2394_v58, %v2960_v50 }
  0xec   :  { %v292_v62 = vpop.f32.mrf.mxu0 }
  0xed   :  { %v435_v63 = vpack.c.bf16 %v404_v60, %v403_v59  ;;  %v293_v2 = vadd.f32 %v2960_v50, %v292_v62  ;;  %v409_v11 = vmax.f32 %v301_v4, 0.0 }
  0xee   :  { %v2395_v1 = vpop.f32.mrf.mxu0 }
  0xef   :  { %v304_v3 = vadd.f32 %v2395_v1, %v2960_v50  ;;  %2436 = vmatprep.mubr.bf16.mxu1 %v435_v63  ;;  %v407_v9 = vmax.f32 %v293_v2, 0.0 }
  0xf0   :  { %v295_v5 = vpop.f32.mrf.mxu0  ;;  %2437 = vmatmul.mubr.bf16.vlgmr.msra.gmra.mxu1 %v436_v0 }
  0xf1   :  { %v296_v6 = vadd.f32 %v2960_v50, %v295_v5  ;;  %2517 = vmatpush3.bf16.msra.mxu1 %v2822_v13  ;;  %v410_v7 = vmax.f32 %v304_v3, 0.0 }
  0xf2   :  { %v2398_v8 = vpop.f32.mrf.mxu0  ;;  %2518 = vmatprep.subr.bf16.mxu1 %v2827_v14 }
  0xf3   :  { %v408_v10 = vmax.f32 %v296_v6, 0.0  ;;  %v438_v17 = vpack.c.bf16 %v410_v7, %v409_v11  ;;  %v317_v13 = vadd.f32 %v2398_v8, %v2960_v50 }
  0xf4   :  { %v308_v12 = vpop.f32.mrf.mxu0 }
  0xf5   :  { %v437_v15 = vpack.c.bf16 %v408_v10, %v407_v9  ;;  %2519 = vmatpush3.bf16.msra.mxu1 %v2827_v14  ;;  %v309_v21 = vadd.f32 %v2960_v50, %v308_v12  ;;  %v413_v28 = vmax.f32 %v317_v13, 0.0 }
  0xf6   :  { %v2399_v20 = vpop.f32.mrf.mxu0  ;;  %2520 = vmatprep.subr.bf16.mxu1 %v2837_v16 }
  0xf7   :  { %v320_v22 = vadd.f32 %v2399_v20, %v2960_v50  ;;  %2440 = vmatprep.mubr.bf16.mxu1 %v437_v15  ;;  %v411_v14 = vmax.f32 %v309_v21, 0.0 }
  0xf8   :  { %v311_v23 = vpop.f32.mrf.mxu0  ;;  %2441 = vmatmul.mubr.bf16.gmra.mxu1 %v438_v17 }
  0xf9   :  { %v312_v24 = vadd.f32 %v2960_v50, %v311_v23  ;;  %2521 = vmatpush3.bf16.msra.mxu1 %v2837_v16  ;;  %v414_v25 = vmax.f32 %v320_v22, 0.0 }
  0xfa   :  { %v2402_v26 = vpop.f32.mrf.mxu0  ;;  %2522 = vmatprep.subr.bf16.mxu1 %v2848_v18 }
  0xfb   :  { %v412_v27 = vmax.f32 %v312_v24, 0.0  ;;  %v440_v31 = vpack.c.bf16 %v414_v25, %v413_v28  ;;  %v333_v16 = vadd.f32 %v2402_v26, %v2960_v50 }
  0xfc   :  { %v324_v29 = vpop.f32.mrf.mxu0 }
  0xfd   :  { %v439_v30 = vpack.c.bf16 %v412_v27, %v411_v14  ;;  %2523 = vmatpush3.bf16.msra.mxu1 %v2848_v18  ;;  %v325_v35 = vadd.f32 %v2960_v50, %v324_v29  ;;  %v417_v43 = vmax.f32 %v333_v16, 0.0 }
  0xfe   :  { %v2403_v33 = vpop.f32.mrf.mxu0  ;;  %2524 = vmatprep.subr.bf16.mxu1 %v2855_v19 }
  0xff   :  { %v336_v37 = vadd.f32 %v2403_v33, %v2960_v50  ;;  %2444 = vmatprep.mubr.bf16.mxu1 %v439_v30  ;;  %v415_v18 = vmax.f32 %v325_v35, 0.0 }
 0x100   :  { %v327_v38 = vpop.f32.mrf.mxu0  ;;  %2445 = vmatmul.mubr.bf16.gmra.mxu1 %v440_v31 }
 0x101   :  { %v328_v39 = vadd.f32 %v2960_v50, %v327_v38  ;;  %2525 = vmatpush3.bf16.msra.mxu1 %v2855_v19  ;;  %v418_v40 = vmax.f32 %v336_v37, 0.0 }
 0x102   :  { %v2406_v41 = vpop.f32.mrf.mxu0  ;;  %2526 = vmatprep.subr.bf16.mxu1 %v2899_v32 }
 0x103   :  { %v416_v42 = vmax.f32 %v328_v39, 0.0  ;;  %v442_v46 = vpack.c.bf16 %v418_v40, %v417_v43  ;;  %v349_v19 = vadd.f32 %v2406_v41, %v2960_v50 }
 0x104   :  { %v340_v44 = vpop.f32.mrf.mxu0 }
 0x105   :  { %v441_v45 = vpack.c.bf16 %v416_v42, %v415_v18  ;;  %2527 = vmatpush3.bf16.msra.mxu1 %v2899_v32  ;;  %v341_v48 = vadd.f32 %v2960_v50, %v340_v44  ;;  %v421_v56 = vmax.f32 %v349_v19, 0.0 }
 0x106   :  { %v2407_v47 = vpop.f32.mrf.mxu0  ;;  %2528 = vmatprep.subr.bf16.mxu1 %v2909_v34 }
 0x107   :  { %v352_v49 = vadd.f32 %v2407_v47, %v2960_v50  ;;  %2448 = vmatprep.mubr.bf16.mxu1 %v441_v45  ;;  %v419_v32 = vmax.f32 %v341_v48, 0.0 }
 0x108   :  { %v343_v51 = vpop.f32.mrf.mxu0  ;;  %2449 = vmatmul.mubr.bf16.gmra.mxu1 %v442_v46 }
 0x109   :  { %v344_v52 = vadd.f32 %v2960_v50, %v343_v51  ;;  %2529 = vmatpush3.bf16.msra.mxu1 %v2909_v34  ;;  %v422_v53 = vmax.f32 %v352_v49, 0.0 }
 0x10a   :  { %v2410_v54 = vpop.f32.mrf.mxu0  ;;  %2530 = vmatprep.subr.bf16.mxu1 %v2919_v36 }
 0x10b   :  { %v420_v55 = vmax.f32 %v344_v52, 0.0  ;;  %v444_v59 = vpack.c.bf16 %v422_v53, %v421_v56  ;;  %v365_v34 = vadd.f32 %v2410_v54, %v2960_v50 }
 0x10c   :  { %v356_v57 = vpop.f32.mrf.mxu0 }
 0x10d   :  { %v443_v58 = vpack.c.bf16 %v420_v55, %v419_v32  ;;  %2531 = vmatpush3.bf16.msra.mxu1 %v2919_v36  ;;  %v357_v61 = vadd.f32 %v2960_v50, %v356_v57  ;;  %v425_v5 = vmax.f32 %v365_v34, 0.0 }
 0x10e   :  { %v2411_v60 = vpop.f32.mrf.mxu0 }
 0x10f   :  { %v368_v62 = vadd.f32 %v2411_v60, %v2960_v50  ;;  %2452 = vmatprep.mubr.bf16.mxu1 %v443_v58  ;;  %v423_v3 = vmax.f32 %v357_v61, 0.0 }
 0x110   :  { %v359_v63 = vpop.f32.mrf.mxu0  ;;  %2453 = vmatmul.mubr.bf16.gmra.mxu1 %v444_v59 }
 0x111   :  { %v360_v0 = vadd.f32 %v2960_v50, %v359_v63  ;;  %v426_v1 = vmax.f32 %v368_v62, 0.0 }
 0x112   :  { %v2414_v2 = vpop.f32.mrf.mxu0 }
 0x113   :  { %v424_v4 = vmax.f32 %v360_v0, 0.0  ;;  %v446_v7 = vpack.c.bf16 %v426_v1, %v425_v5  ;;  %v381_v11 = vadd.f32 %v2414_v2, %v2960_v50 }
 0x114   :  { %v372_v6 = vpop.f32.mrf.mxu0 }
 0x115   :  { %v445_v36 = vpack.c.bf16 %v424_v4, %v423_v3  ;;  %v373_v9 = vadd.f32 %v2960_v50, %v372_v6  ;;  %v429_v13 = vmax.f32 %v381_v11, 0.0 }
 0x116   :  { %v2415_v8 = vpop.f32.mrf.mxu0 }
 0x117   :  { %v384_v10 = vadd.f32 %v2415_v8, %v2960_v50  ;;  %2456 = vmatprep.mubr.bf16.mxu1 %v445_v36  ;;  %v427_v21 = vmax.f32 %v373_v9, 0.0 }
 0x118   :  { %v375_v12 = vpop.f32.mrf.mxu0  ;;  %2457 = vmatmul.mubr.bf16.gmra.mxu1 %v446_v7 }
 0x119   :  { %v376_v15 = vadd.f32 %v2960_v50, %v375_v12  ;;  %v430_v17 = vmax.f32 %v384_v10, 0.0 }
 0x11a   :  { %v2418_v20 = vpop.f32.mrf.mxu0 }
 0x11b   :  { %v428_v22 = vmax.f32 %v376_v15, 0.0  ;;  %v448_v25 = vpack.c.bf16 %v430_v17, %v429_v13  ;;  %v397_v28 = vadd.f32 %v2418_v20, %v2960_v50 }
 0x11c   :  { %v388_v23 = vpop.f32.mrf.mxu0 }
 0x11d   :  { %v447_v24 = vpack.c.bf16 %v428_v22, %v427_v21  ;;  %v389_v14 = vadd.f32 %v2960_v50, %v388_v23  ;;  %v433_v16 = vmax.f32 %v397_v28, 0.0 }
 0x11e   :  { %v2419_v26 = vpop.f32.mrf.mxu0 }
 0x11f   :  { %v400_v27 = vadd.f32 %v2419_v26, %v2960_v50  ;;  %2460 = vmatprep.mubr.bf16.mxu1 %v447_v24  ;;  %v431_v35 = vmax.f32 %v389_v14, 0.0 }
 0x120   :  { %v391_v29 = vpop.f32.mrf.mxu0  ;;  %2461 = vmatmul.mubr.bf16.gmra.mxu1 %v448_v25 }
 0x121   :  { %v392_v30 = vadd.f32 %v2960_v50, %v391_v29  ;;  %v434_v31 = vmax.f32 %v400_v27, 0.0 }
 0x122   :  { %v2486_v33 = vpop.f32.mrf.mxu0 }
 0x123   :  { %v432_v37 = vmax.f32 %v392_v30, 0.0  ;;  %v450_v40 = vpack.c.bf16 %v434_v31, %v433_v16  ;;  %v1029_v43 = vadd.f32 %v2486_v33, %v2960_v50 }
 0x124   :  { %v1020_v38 = vpop.f32.mrf.mxu0 }
 0x125   :  { %v449_v39 = vpack.c.bf16 %v432_v37, %v431_v35  ;;  %v1021_v18 = vadd.f32 %v2960_v50, %v1020_v38  ;;  %v1149_v19 = vmax.f32 %v1029_v43, 0.0 }
 0x126   :  { %v2487_v41 = vpop.f32.mrf.mxu0 }
 0x127   :  { %v1032_v42 = vadd.f32 %v2487_v41, %v2960_v50  ;;  %2464 = vmatprep.mubr.bf16.mxu1 %v449_v39  ;;  %v1147_v48 = vmax.f32 %v1021_v18, 0.0 }
 0x128   :  { %2465 = vmatmul.mubr.bf16.gmra.mxu1 %v450_v40  ;;  %v1023_v44 = vpop.f32.mrf.mxu0 }
 0x129   :  { %v1024_v45 = vadd.f32 %v2960_v50, %v1023_v44  ;;  %v1150_v46 = vmax.f32 %v1032_v42, 0.0 }
 0x12a   :  { %v2490_v47 = vpop.f32.mrf.mxu0 }
 0x12b   :  { %v1148_v49 = vmax.f32 %v1024_v45, 0.0  ;;  %v1180_v53 = vpack.c.bf16 %v1150_v46, %v1149_v19  ;;  %v1045_v56 = vadd.f32 %v2490_v47, %v2960_v50 }
 0x12c   :  { %v1036_v51 = vpop.f32.mrf.mxu0 }
 0x12d   :  { %v1179_v52 = vpack.c.bf16 %v1148_v49, %v1147_v48  ;;  %v1037_v32 = vadd.f32 %v2960_v50, %v1036_v51  ;;  %v1153_v34 = vmax.f32 %v1045_v56, 0.0 }
 0x12e   :  { %v2491_v54 = vpop.f32.mrf.mxu0 }
 0x12f   :  { %v1048_v55 = vadd.f32 %v2491_v54, %v2960_v50  ;;  %2532 = vmatprep.mubr.bf16.mxu1 %v1179_v52  ;;  %v1151_v61 = vmax.f32 %v1037_v32, 0.0 }
 0x130   :  { %v1039_v57 = vpop.f32.mrf.mxu0  ;;  %2533 = vmatmul.mubr.bf16.vlgmr.msra.gmra.mxu1 %v1180_v53 }
 0x131   :  { %v1040_v58 = vadd.f32 %v2960_v50, %v1039_v57  ;;  %v1154_v59 = vmax.f32 %v1048_v55, 0.0 }
 0x132   :  { %v2494_v60 = vpop.f32.mrf.mxu0 }
 0x133   :  { %v1152_v62 = vmax.f32 %v1040_v58, 0.0  ;;  %v1182_v1 = vpack.c.bf16 %v1154_v59, %v1153_v34  ;;  %v1061_v5 = vadd.f32 %v2494_v60, %v2960_v50 }
 0x134   :  { %v1052_v63 = vpop.f32.mrf.mxu0 }
 0x135   :  { %v1181_v0 = vpack.c.bf16 %v1152_v62, %v1151_v61  ;;  %v1053_v3 = vadd.f32 %v2960_v50, %v1052_v63  ;;  %v1157_v11 = vmax.f32 %v1061_v5, 0.0 }
 0x136   :  { %v2495_v2 = vpop.f32.mrf.mxu0 }
 0x137   :  { %v1064_v4 = vadd.f32 %v2495_v2, %v2960_v50  ;;  %2536 = vmatprep.mubr.bf16.mxu1 %v1181_v0  ;;  %v1155_v9 = vmax.f32 %v1053_v3, 0.0 }
 0x138   :  { %v1055_v6 = vpop.f32.mrf.mxu0  ;;  %2537 = vmatmul.mubr.bf16.gmra.mxu1 %v1182_v1 }
 0x139   :  { %v1056_v36 = vadd.f32 %v2960_v50, %v1055_v6  ;;  %v1158_v7 = vmax.f32 %v1064_v4, 0.0 }
 0x13a   :  { %v2498_v8 = vpop.f32.mrf.mxu0 }
 0x13b   :  { %v1156_v10 = vmax.f32 %v1056_v36, 0.0  ;;  %v1184_v17 = vpack.c.bf16 %v1158_v7, %v1157_v11  ;;  %v1077_v13 = vadd.f32 %v2498_v8, %v2960_v50 }
 0x13c   :  { %v1068_v12 = vpop.f32.mrf.mxu0 }
 0x13d   :  { %v1183_v15 = vpack.c.bf16 %v1156_v10, %v1155_v9  ;;  %v1069_v21 = vadd.f32 %v2960_v50, %v1068_v12  ;;  %v1161_v28 = vmax.f32 %v1077_v13, 0.0 }
 0x13e   :  { %v2499_v20 = vpop.f32.mrf.mxu0 }
 0x13f   :  { %v1080_v22 = vadd.f32 %v2499_v20, %v2960_v50  ;;  %2540 = vmatprep.mubr.bf16.mxu1 %v1183_v15  ;;  %v1159_v14 = vmax.f32 %v1069_v21, 0.0 }
 0x140   :  { %v1071_v23 = vpop.f32.mrf.mxu0  ;;  %2541 = vmatmul.mubr.bf16.gmra.mxu1 %v1184_v17 }
 0x141   :  { %v1072_v24 = vadd.f32 %v2960_v50, %v1071_v23  ;;  %v1162_v25 = vmax.f32 %v1080_v22, 0.0 }
 0x142   :  { %v2502_v26 = vpop.f32.mrf.mxu0 }
 0x143   :  { %v1160_v27 = vmax.f32 %v1072_v24, 0.0  ;;  %v1186_v31 = vpack.c.bf16 %v1162_v25, %v1161_v28  ;;  %v1093_v16 = vadd.f32 %v2502_v26, %v2960_v50  ;;  %v3044_v24 = vld [vmem:[%s3531_s5] ss:$0 sm:$0xff] }
 0x144   :  { %v1084_v29 = vpop.f32.mrf.mxu0 }
 0x145   :  { %v1185_v30 = vpack.c.bf16 %v1160_v27, %v1159_v14  ;;  %v1085_v35 = vadd.f32 %v2960_v50, %v1084_v29  ;;  %v1165_v43 = vmax.f32 %v1093_v16, 0.0 }
 0x146   :  { %v2503_v33 = vpop.f32.mrf.mxu0 }
 0x147   :  { %v1096_v37 = vadd.f32 %v2503_v33, %v2960_v50  ;;  %2544 = vmatprep.mubr.bf16.mxu1 %v1185_v30  ;;  %v1163_v18 = vmax.f32 %v1085_v35, 0.0 }
 0x148   :  { %v1087_v38 = vpop.f32.mrf.mxu0  ;;  %2545 = vmatmul.mubr.bf16.gmra.mxu1 %v1186_v31 }
 0x149   :  { %v1088_v39 = vadd.f32 %v2960_v50, %v1087_v38  ;;  %v1166_v40 = vmax.f32 %v1096_v37, 0.0 }
 0x14a   :  { %v2506_v41 = vpop.f32.mrf.mxu0 }
 0x14b   :  { %v1164_v42 = vmax.f32 %v1088_v39, 0.0  ;;  %v1188_v46 = vpack.c.bf16 %v1166_v40, %v1165_v43  ;;  %v1109_v19 = vadd.f32 %v2506_v41, %v2960_v50 }
 0x14c   :  { %v1100_v44 = vpop.f32.mrf.mxu0 }
 0x14d   :  { %v1187_v45 = vpack.c.bf16 %v1164_v42, %v1163_v18  ;;  %v1101_v48 = vadd.f32 %v2960_v50, %v1100_v44  ;;  %v1169_v56 = vmax.f32 %v1109_v19, 0.0 }
 0x14e   :  { %v2507_v47 = vpop.f32.mrf.mxu0 }
 0x14f   :  { %v1112_v49 = vadd.f32 %v2507_v47, %v2960_v50  ;;  %2548 = vmatprep.mubr.bf16.mxu1 %v1187_v45  ;;  %v1167_v32 = vmax.f32 %v1101_v48, 0.0 }
 0x150   :  { %v1103_v51 = vpop.f32.mrf.mxu0  ;;  %2549 = vmatmul.mubr.bf16.gmra.mxu1 %v1188_v46 }
 0x151   :  { %v1104_v52 = vadd.f32 %v2960_v50, %v1103_v51  ;;  %v1170_v53 = vmax.f32 %v1112_v49, 0.0 }
 0x152   :  { %v2510_v54 = vpop.f32.mrf.mxu0 }
 0x153   :  { %v1168_v55 = vmax.f32 %v1104_v52, 0.0  ;;  %v1190_v59 = vpack.c.bf16 %v1170_v53, %v1169_v56  ;;  %v1125_v34 = vadd.f32 %v2510_v54, %v2960_v50 }
 0x154   :  { %v1116_v57 = vpop.f32.mrf.mxu0 }
 0x155   :  { %v1189_v58 = vpack.c.bf16 %v1168_v55, %v1167_v32  ;;  %v1117_v61 = vadd.f32 %v2960_v50, %v1116_v57  ;;  %v1173_v5 = vmax.f32 %v1125_v34, 0.0 }
 0x156   :  { %v2511_v60 = vpop.f32.mrf.mxu0 }
 0x157   :  { %v1128_v62 = vadd.f32 %v2511_v60, %v2960_v50  ;;  %2552 = vmatprep.mubr.bf16.mxu1 %v1189_v58  ;;  %v1171_v3 = vmax.f32 %v1117_v61, 0.0 }
 0x158   :  { %v1119_v63 = vpop.f32.mrf.mxu0  ;;  %2553 = vmatmul.mubr.bf16.gmra.mxu1 %v1190_v59 }
 0x159   :  { %v1120_v0 = vadd.f32 %v2960_v50, %v1119_v63  ;;  %v1174_v1 = vmax.f32 %v1128_v62, 0.0 }
 0x15a   :  { %v2514_v2 = vpop.f32.mrf.mxu0 }
 0x15b   :  { %v1172_v4 = vmax.f32 %v1120_v0, 0.0  ;;  %v1192_v7 = vpack.c.bf16 %v1174_v1, %v1173_v5  ;;  %v1141_v11 = vadd.f32 %v2514_v2, %v2960_v50 }
 0x15c   :  { %v1132_v6 = vpop.f32.mrf.mxu0 }
 0x15d   :  { %v1191_v36 = vpack.c.bf16 %v1172_v4, %v1171_v3  ;;  %v1133_v9 = vadd.f32 %v2960_v50, %v1132_v6  ;;  %v1177_v22 = vmax.f32 %v1141_v11, 0.0 }
 0x15e   :  { %v2515_v8 = vpop.f32.mrf.mxu0 }
 0x15f   :  { %v1144_v10 = vadd.f32 %v2515_v8, %v2960_v50  ;;  %2556 = vmatprep.mubr.bf16.mxu1 %v1191_v36  ;;  %v1175_v20 = vmax.f32 %v1133_v9, 0.0 }
 0x160   :  { %v1135_v12 = vpop.f32.mrf.mxu0  ;;  %2557 = vmatmul.mubr.bf16.gmra.mxu1 %v1192_v7 }
 0x161   :  { %v1136_v15 = vadd.f32 %v2960_v50, %v1135_v12  ;;  %v1178_v17 = vmax.f32 %v1144_v10, 0.0 }
 0x163   :  { %v1176_v21 = vmax.f32 %v1136_v15, 0.0  ;;  %v1194_v23 = vpack.c.bf16 %v1178_v17, %v1177_v22 }
 0x165   :  { %v1193_v13 = vpack.c.bf16 %v1176_v21, %v1175_v20 }
 0x167   :  { %2560 = vmatprep.mubr.bf16.mxu1 %v1193_v13 }
 0x168   :  { %2561 = vmatmul.mubr.bf16.gmra.mxu1 %v1194_v23 }
 0x1b0   :  { %v2438_v25 = vpop.f32.mrf.mxu1 }
 0x1b1   :  { %v3047_v26 = vadd.f32 %v2438_v25, %v3044_v24 }
 0x1b2   :  { %v539_v14 = vpop.f32.mrf.mxu1 }
 0x1b3   :  { %v3050_v50 = vadd.f32 %v3044_v24, %v539_v14  ;;  %v668_v27 = vmul.f32 %v3047_v26, %v3047_v26 }
 0x1b4   :  { %v2439_v28 = vpop.f32.mrf.mxu1 }
 0x1b5   :  { %v3055_v29 = vadd.f32 %v2439_v28, %v3044_v24  ;;  %702 = vadd.xlane.f32.xlu1 %v668_v27  ;;  %v666_v30 = vmul.f32 %v3050_v50, %v3050_v50 }
 0x1b6   :  { %v542_v31 = vpop.f32.mrf.mxu1 }
 0x1b7   :  { %v3060_v33 = vadd.f32 %v3044_v24, %v542_v31  ;;  %698 = vadd.xlane.f32.xlu0 %v666_v30  ;;  %v669_v35 = vmul.f32 %v3055_v29, %v3055_v29 }
 0x1b8   :  { %v2442_v37 = vpop.f32.mrf.mxu1 }
 0x1b9   :  { %v3065_v16 = vadd.f32 %v2442_v37, %v3044_v24  ;;  %704 = vadd.xlane.f32.xlu1 %v669_v35  ;;  %v667_v38 = vmul.f32 %v3060_v33, %v3060_v33 }
 0x1ba   :  { %v555_v39 = vpop.f32.mrf.mxu1 }
 0x1bb   :  { %700 = vadd.xlane.f32.xlu0 %v667_v38  ;;  %v3070_v41 = vadd.f32 %v3044_v24, %v555_v39  ;;  %v672_v42 = vmul.f32 %v3065_v16, %v3065_v16 }
 0x1bc   :  { %v2443_v40 = vpop.f32.mrf.mxu1 }
 0x1bd   :  { %v3073_v18 = vadd.f32 %v2443_v40, %v3044_v24  ;;  %v670_v48 = vmul.f32 %v3070_v41, %v3070_v41 }
 0x1be   :  { %v558_v43 = vpop.f32.mrf.mxu1 }
 0x1bf   :  { %v3078_v44 = vadd.f32 %v3044_v24, %v558_v43  ;;  %710 = vadd.xlane.f32.xlu0 %v672_v42  ;;  %v673_v45 = vmul.f32 %v3073_v18, %v3073_v18 }
 0x1c0   :  { %v2446_v46 = vpop.f32.mrf.mxu1 }
 0x1c1   :  { %v3083_v47 = vadd.f32 %v2446_v46, %v3044_v24  ;;  %712 = vadd.xlane.f32.xlu1 %v673_v45  ;;  %v671_v19 = vmul.f32 %v3078_v44, %v3078_v44 }
 0x1c2   :  { %v571_v49 = vpop.f32.mrf.mxu1 }
 0x1c3   :  { %706 = vadd.xlane.f32.xlu0 %v670_v48  ;;  %v3090_v52 = vadd.f32 %v3044_v24, %v571_v49  ;;  %v676_v54 = vmul.f32 %v3083_v47, %v3083_v47 }
 0x1c4   :  { %v2447_v51 = vpop.f32.mrf.mxu1 }
 0x1c5   :  { %v3093_v53 = vadd.f32 %v2447_v51, %v3044_v24  ;;  %708 = vadd.xlane.f32.xlu1 %v671_v19  ;;  %v674_v59 = vmul.f32 %v3090_v52, %v3090_v52 }
 0x1c6   :  { %v574_v32 = vpop.f32.mrf.mxu1 }
 0x1c7   :  { %v3098_v55 = vadd.f32 %v3044_v24, %v574_v32  ;;  %718 = vadd.xlane.f32.xlu0 %v676_v54  ;;  %v677_v56 = vmul.f32 %v3093_v53, %v3093_v53 }
 0x1c8   :  { %v2450_v57 = vpop.f32.mrf.mxu1 }
 0x1c9   :  { %v3103_v58 = vadd.f32 %v2450_v57, %v3044_v24  ;;  %720 = vadd.xlane.f32.xlu1 %v677_v56  ;;  %v675_v61 = vmul.f32 %v3098_v55, %v3098_v55 }
 0x1ca   :  { %v587_v60 = vpop.f32.mrf.mxu1 }
 0x1cb   :  { %714 = vadd.xlane.f32.xlu0 %v674_v59  ;;  %v3110_v34 = vadd.f32 %v3044_v24, %v587_v60  ;;  %v680_v0 = vmul.f32 %v3103_v58, %v3103_v58 }
 0x1cc   :  { %v2451_v62 = vpop.f32.mrf.mxu1 }
 0x1cd   :  { %v3113_v63 = vadd.f32 %v2451_v62, %v3044_v24  ;;  %716 = vadd.xlane.f32.xlu1 %v675_v61  ;;  %v678_v6 = vmul.f32 %v3110_v34, %v3110_v34 }
 0x1ce   :  { %v590_v1 = vpop.f32.mrf.mxu1 }
 0x1cf   :  { %v3118_v2 = vadd.f32 %v3044_v24, %v590_v1  ;;  %726 = vadd.xlane.f32.xlu0 %v680_v0  ;;  %v681_v3 = vmul.f32 %v3113_v63, %v3113_v63 }
 0x1d0   :  { %v2454_v4 = vpop.f32.mrf.mxu1 }
 0x1d1   :  { %v3123_v5 = vadd.f32 %v2454_v4, %v3044_v24  ;;  %728 = vadd.xlane.f32.xlu1 %v681_v3  ;;  %v679_v7 = vmul.f32 %v3118_v2, %v3118_v2 }
 0x1d2   :  { %v603_v36 = vpop.f32.mrf.mxu1 }
 0x1d3   :  { %722 = vadd.xlane.f32.xlu0 %v678_v6  ;;  %v3130_v9 = vadd.f32 %v3044_v24, %v603_v36  ;;  %v684_v11 = vmul.f32 %v3123_v5, %v3123_v5 }
 0x1d4   :  { %v2455_v8 = vpop.f32.mrf.mxu1 }
 0x1d5   :  { %v3133_v10 = vadd.f32 %v2455_v8, %v3044_v24  ;;  %724 = vadd.xlane.f32.xlu1 %v679_v7  ;;  %v682_v22 = vmul.f32 %v3130_v9, %v3130_v9 }
 0x1d6   :  { %v606_v12 = vpop.f32.mrf.mxu1 }
 0x1d7   :  { %v3138_v15 = vadd.f32 %v3044_v24, %v606_v12  ;;  %734 = vadd.xlane.f32.xlu0 %v684_v11  ;;  %v685_v17 = vmul.f32 %v3133_v10, %v3133_v10 }
 0x1d8   :  { %v2458_v20 = vpop.f32.mrf.mxu1 }
 0x1d9   :  { %v3143_v21 = vadd.f32 %v2458_v20, %v3044_v24  ;;  %736 = vadd.xlane.f32.xlu1 %v685_v17  ;;  %v683_v23 = vmul.f32 %v3138_v15, %v3138_v15 }
 0x1da   :  { %v619_v13 = vpop.f32.mrf.mxu1 }
 0x1db   :  { %730 = vadd.xlane.f32.xlu0 %v682_v22  ;;  %v3150_v14 = vadd.f32 %v3044_v24, %v619_v13  ;;  %v688_v28 = vmul.f32 %v3143_v21, %v3143_v21 }
 0x1dc   :  { %v2459_v25 = vpop.f32.mrf.mxu1 }
 0x1dd   :  { %v3153_v27 = vadd.f32 %v2459_v25, %v3044_v24  ;;  %732 = vadd.xlane.f32.xlu1 %v683_v23  ;;  %v686_v39 = vmul.f32 %v3150_v14, %v3150_v14 }
 0x1de   :  { %v622_v30 = vpop.f32.mrf.mxu1 }
 0x1df   :  { %v3158_v31 = vadd.f32 %v3044_v24, %v622_v30  ;;  %742 = vadd.xlane.f32.xlu0 %v688_v28  ;;  %v689_v35 = vmul.f32 %v3153_v27, %v3153_v27 }
 0x1e0   :  { %v2462_v37 = vpop.f32.mrf.mxu1 }
 0x1e1   :  { %v3163_v38 = vadd.f32 %v2462_v37, %v3044_v24  ;;  %744 = vadd.xlane.f32.xlu1 %v689_v35  ;;  %v687_v42 = vmul.f32 %v3158_v31, %v3158_v31 }
 0x1e2   :  { %v635_v40 = vpop.f32.mrf.mxu1 }
 0x1e3   :  { %738 = vadd.xlane.f32.xlu0 %v686_v39  ;;  %v3170_v45 = vadd.f32 %v3044_v24, %v635_v40  ;;  %v692_v48 = vmul.f32 %v3163_v38, %v3163_v38 }
 0x1e4   :  { %v2463_v43 = vpop.f32.mrf.mxu1 }
 0x1e5   :  { %v3173_v46 = vadd.f32 %v2463_v43, %v3044_v24  ;;  %740 = vadd.xlane.f32.xlu1 %v687_v42  ;;  %v690_v56 = vmul.f32 %v3170_v45, %v3170_v45 }
 0x1e6   :  { %v638_v49 = vpop.f32.mrf.mxu1 }
 0x1e7   :  { %v3178_v19 = vadd.f32 %v3044_v24, %v638_v49  ;;  %750 = vadd.xlane.f32.xlu0 %v692_v48  ;;  %v693_v51 = vmul.f32 %v3173_v46, %v3173_v46 }
 0x1e8   :  { %v2466_v54 = vpop.f32.mrf.mxu1 }
 0x1e9   :  { %v3183_v32 = vadd.f32 %v2466_v54, %v3044_v24  ;;  %752 = vadd.xlane.f32.xlu1 %v693_v51  ;;  %v691_v59 = vmul.f32 %v3178_v19, %v3178_v19 }
 0x1ea   :  { %v651_v57 = vpop.f32.mrf.mxu1 }
 0x1eb   :  { %746 = vadd.xlane.f32.xlu0 %v690_v56  ;;  %v3190_v61 = vadd.f32 %v3044_v24, %v651_v57  ;;  %v696_v0 = vmul.f32 %v3183_v32, %v3183_v32 }
 0x1ec   :  { %v2467_v60 = vpop.f32.mrf.mxu1 }
 0x1ed   :  { %v3193_v62 = vadd.f32 %v2467_v60, %v3044_v24  ;;  %748 = vadd.xlane.f32.xlu1 %v691_v59  ;;  %v694_v7 = vmul.f32 %v3190_v61, %v3190_v61 }
 0x1ee   :  { %v654_v1 = vpop.f32.mrf.mxu1 }
 0x1ef   :  { %v3198_v3 = vadd.f32 %v3044_v24, %v654_v1  ;;  %758 = vadd.xlane.f32.xlu0 %v696_v0  ;;  %v697_v4 = vmul.f32 %v3193_v62, %v3193_v62 }
 0x1f0   :  { %v2534_v6 = vpop.f32.mrf.mxu1 }
 0x1f1   :  { %v3203_v36 = vadd.f32 %v2534_v6, %v3044_v24  ;;  %760 = vadd.xlane.f32.xlu1 %v697_v4  ;;  %v695_v11 = vmul.f32 %v3198_v3, %v3198_v3 }
 0x1f2   :  { %v1229_v8 = vpop.f32.mrf.mxu1 }
 0x1f3   :  { %754 = vadd.xlane.f32.xlu0 %v694_v7  ;;  %v3210_v17 = vadd.f32 %v3044_v24, %v1229_v8  ;;  %v1358_v22 = vmul.f32 %v3203_v36, %v3203_v36 }
 0x1f4   :  { %v2535_v12 = vpop.f32.mrf.mxu1 }
 0x1f5   :  { %v3213_v20 = vadd.f32 %v2535_v12, %v3044_v24  ;;  %756 = vadd.xlane.f32.xlu1 %v695_v11  ;;  %v1356_v35 = vmul.f32 %v3210_v17, %v3210_v17 }
 0x1f6   :  { %v1232_v13 = vpop.f32.mrf.mxu1 }
 0x1f7   :  { %v3218_v23 = vadd.f32 %v3044_v24, %v1232_v13  ;;  %1392 = vadd.xlane.f32.xlu0 %v1358_v22  ;;  %v1359_v25 = vmul.f32 %v3213_v20, %v3213_v20 }
 0x1f8   :  { %v2538_v28 = vpop.f32.mrf.mxu1 }
 0x1f9   :  { %v3223_v30 = vadd.f32 %v2538_v28, %v3044_v24  ;;  %1394 = vadd.xlane.f32.xlu1 %v1359_v25  ;;  %v1357_v39 = vmul.f32 %v3218_v23, %v3218_v23 }
 0x1fa   :  { %v1245_v37 = vpop.f32.mrf.mxu1 }
 0x1fb   :  { %1388 = vadd.xlane.f32.xlu0 %v1356_v35  ;;  %v3230_v42 = vadd.f32 %v3044_v24, %v1245_v37  ;;  %v1362_v48 = vmul.f32 %v3223_v30, %v3223_v30 }
 0x1fc   :  { %v2539_v40 = vpop.f32.mrf.mxu1 }
 0x1fd   :  { %v3233_v43 = vadd.f32 %v2539_v40, %v3044_v24  ;;  %1390 = vadd.xlane.f32.xlu1 %v1357_v39  ;;  %v1360_v59 = vmul.f32 %v3230_v42, %v3230_v42 }
 0x1fe   :  { %v1248_v49 = vpop.f32.mrf.mxu1 }
 0x1ff   :  { %v3238_v51 = vadd.f32 %v3044_v24, %v1248_v49  ;;  %1400 = vadd.xlane.f32.xlu0 %v1362_v48  ;;  %v1363_v54 = vmul.f32 %v3233_v43, %v3233_v43 }
 0x200   :  { %v2542_v56 = vpop.f32.mrf.mxu1 }
 0x201   :  { %v3243_v57 = vadd.f32 %v2542_v56, %v3044_v24  ;;  %1402 = vadd.xlane.f32.xlu1 %v1363_v54  ;;  %v1361_v0 = vmul.f32 %v3238_v51, %v3238_v51 }
 0x202   :  { %v1261_v60 = vpop.f32.mrf.mxu1 }
 0x203   :  { %1396 = vadd.xlane.f32.xlu0 %v1360_v59  ;;  %v3250_v4 = vadd.f32 %v3044_v24, %v1261_v60  ;;  %v1366_v7 = vmul.f32 %v3243_v57, %v3243_v57 }
 0x204   :  { %v2543_v1 = vpop.f32.mrf.mxu1 }
 0x205   :  { %v3253_v6 = vadd.f32 %v2543_v1, %v3044_v24  ;;  %1398 = vadd.xlane.f32.xlu1 %v1361_v0  ;;  %v1364_v25 = vmul.f32 %v3250_v4, %v3250_v4 }
 0x206   :  { %v1264_v8 = vpop.f32.mrf.mxu1 }
 0x207   :  { %v3258_v11 = vadd.f32 %v3044_v24, %v1264_v8  ;;  %1408 = vadd.xlane.f32.xlu0 %v1366_v7  ;;  %v1367_v12 = vmul.f32 %v3253_v6, %v3253_v6 }
 0x208   :  { %v2546_v22 = vpop.f32.mrf.mxu1 }
 0x209   :  { %v3263_v13 = vadd.f32 %v2546_v22, %v3044_v24  ;;  %1410 = vadd.xlane.f32.xlu1 %v1367_v12  ;;  %v1365_v35 = vmul.f32 %v3258_v11, %v3258_v11 }
 0x20a   :  { %v1277_v28 = vpop.f32.mrf.mxu1 }
 0x20b   :  { %1404 = vadd.xlane.f32.xlu0 %v1364_v25  ;;  %v3270_v39 = vadd.f32 %v3044_v24, %v1277_v28  ;;  %v1370_v48 = vmul.f32 %v3263_v13, %v3263_v13 }
 0x20c   :  { %v2547_v37 = vpop.f32.mrf.mxu1 }
 0x20d   :  { %3552 = vst [vmem:[#allocation2_spill] sm:$0xff] %v3270_v39  ;;  %v3273_v40 = vadd.f32 %v2547_v37, %v3044_v24  ;;  %1406 = vadd.xlane.f32.xlu1 %v1365_v35  ;;  %v1368_v0 = vmul.f32 %v3270_v39, %v3270_v39 }
 0x20e   :  { %v1280_v49 = vpop.f32.mrf.mxu1 }
 0x20f   :  { %v3278_v54 = vadd.f32 %v3044_v24, %v1280_v49  ;;  %1416 = vadd.xlane.f32.xlu0 %v1370_v48  ;;  %v1371_v56 = vmul.f32 %v3273_v40, %v3273_v40 }
 0x210   :  { %v2550_v59 = vpop.f32.mrf.mxu1 }
 0x211   :  { %3553 = vst [vmem:[#allocation3_spill] sm:$0xff] %v3278_v54  ;;  %v3283_v60 = vadd.f32 %v2550_v59, %v3044_v24  ;;  %1418 = vadd.xlane.f32.xlu1 %v1371_v56  ;;  %v1369_v7 = vmul.f32 %v3278_v54, %v3278_v54 }
 0x212   :  { %v1293_v1 = vpop.f32.mrf.mxu1 }
 0x213   :  { %3554 = vst [vmem:[#allocation4_spill] sm:$0xff] %v3283_v60  ;;  %1412 = vadd.xlane.f32.xlu0 %v1368_v0  ;;  %v3290_v12 = vadd.f32 %v3044_v24, %v1293_v1  ;;  %v1374_v25 = vmul.f32 %v3283_v60, %v3283_v60 }
 0x214   :  { %v2551_v8 = vpop.f32.mrf.mxu1 }
 0x215   :  { %3555 = vst [vmem:[#allocation5_spill] sm:$0xff] %v3290_v12  ;;  %v3293_v22 = vadd.f32 %v2551_v8, %v3044_v24  ;;  %1414 = vadd.xlane.f32.xlu1 %v1369_v7  ;;  %v1372_v56 = vmul.f32 %v3290_v12, %v3290_v12 }
 0x216   :  { %v1296_v28 = vpop.f32.mrf.mxu1 }
 0x217   :  { %3556 = vst [vmem:[#allocation6_spill] sm:$0xff] %v3293_v22  ;;  %v3298_v35 = vadd.f32 %v3044_v24, %v1296_v28  ;;  %1424 = vadd.xlane.f32.xlu0 %v1374_v25  ;;  %v1375_v37 = vmul.f32 %v3293_v22, %v3293_v22 }
 0x218   :  { %v2554_v48 = vpop.f32.mrf.mxu1 }
 0x219   :  { %3557 = vst [vmem:[#allocation7_spill] sm:$0xff] %v3298_v35  ;;  %v3303_v49 = vadd.f32 %v2554_v48, %v3044_v24  ;;  %1426 = vadd.xlane.f32.xlu1 %v1375_v37  ;;  %v1373_v0 = vmul.f32 %v3298_v35, %v3298_v35 }
 0x21a   :  { %v1309_v59 = vpop.f32.mrf.mxu1 }
 0x21b   :  { %3558 = vst [vmem:[#allocation8_spill] sm:$0xff] %v3303_v49  ;;  %1420 = vadd.xlane.f32.xlu0 %v1372_v56  ;;  %v3310_v7 = vadd.f32 %v3044_v24, %v1309_v59  ;;  %v1378_v25 = vmul.f32 %v3303_v49, %v3303_v49 }
 0x21c   :  { %v2555_v1 = vpop.f32.mrf.mxu1 }
 0x21d   :  { %3559 = vst [vmem:[#allocation9_spill] sm:$0xff] %v3310_v7  ;;  %v3313_v8 = vadd.f32 %v2555_v1, %v3044_v24  ;;  %1422 = vadd.xlane.f32.xlu1 %v1373_v0  ;;  %v1376_v59 = vmul.f32 %v3310_v7, %v3310_v7 }
 0x21e   :  { %v1312_v28 = vpop.f32.mrf.mxu1 }
 0x21f   :  { %3560 = vst [vmem:[#allocation10_spill] sm:$0xff] %v3313_v8  ;;  %v3318_v37 = vadd.f32 %v3044_v24, %v1312_v28  ;;  %1432 = vadd.xlane.f32.xlu0 %v1378_v25  ;;  %v1379_v48 = vmul.f32 %v3313_v8, %v3313_v8 }
 0x220   :  { %v2558_v56 = vpop.f32.mrf.mxu1 }
 0x221   :  { %3561 = vst [vmem:[#allocation11_spill] sm:$0xff] %v3318_v37  ;;  %v3323_v35 = vadd.f32 %v2558_v56, %v3044_v24  ;;  %1434 = vadd.xlane.f32.xlu1 %v1379_v48  ;;  %v1377_v1 = vmul.f32 %v3318_v37, %v3318_v37 }
 0x222   :  { %v1325_v0 = vpop.f32.mrf.mxu1 }
 0x223   :  { %3562 = vst [vmem:[#allocation12_spill] sm:$0xff] %v3323_v35  ;;  %1428 = vadd.xlane.f32.xlu0 %v1376_v59  ;;  %v3330_v28 = vadd.f32 %v3044_v24, %v1325_v0  ;;  %v1382_v56 = vmul.f32 %v3323_v35, %v3323_v35 }
 0x224   :  { %v2559_v49 = vpop.f32.mrf.mxu1 }
 0x225   :  { %3563 = vst [vmem:[#allocation13_spill] sm:$0xff] %v3330_v28  ;;  %v3333_v25 = vadd.f32 %v2559_v49, %v3044_v24  ;;  %1430 = vadd.xlane.f32.xlu1 %v1377_v1  ;;  %v1380_v0 = vmul.f32 %v3330_v28, %v3330_v28 }
 0x226   :  { %v1328_v48 = vpop.f32.mrf.mxu1 }
 0x227   :  { %3564 = vst [vmem:[#allocation14_spill] sm:$0xff] %v3333_v25  ;;  %v3338_v8 = vadd.f32 %v3044_v24, %v1328_v48  ;;  %1440 = vadd.xlane.f32.xlu0 %v1382_v56  ;;  %v1383_v59 = vmul.f32 %v3333_v25, %v3333_v25 }
 0x228   :  { %v2562_v37 = vpop.f32.mrf.mxu1 }
 0x229   :  { %3565 = vst [vmem:[#allocation15_spill] sm:$0xff] %v3338_v8  ;;  %1442 = vadd.xlane.f32.xlu1 %v1383_v59  ;;  %v1381_v1 = vmul.f32 %v3338_v8, %v3338_v8  ;;  %v3350_v48 = vadd.f32 %v2562_v37, %v3044_v24 }
 0x22a   :  { %v1341_v7 = vpop.f32.mrf.mxu1 }
 0x22b   :  { %v3345_v49 = vadd.f32 %v3044_v24, %v1341_v7  ;;  %1436 = vadd.xlane.f32.xlu0 %v1380_v0  ;;  %3567 = vst [vmem:[#allocation17_spill] sm:$0xff] %v3350_v48  ;;  %v1386_v8 = vmul.f32 %v3350_v48, %v3350_v48 }
 0x22c   :  { %v2563_v35 = vpop.f32.mrf.mxu1 }
 0x22d   :  { %3566 = vst [vmem:[#allocation16_spill] sm:$0xff] %v3345_v49  ;;  %1438 = vadd.xlane.f32.xlu1 %v1381_v1  ;;  %v1384_v56 = vmul.f32 %v3345_v49, %v3345_v49  ;;  %v3358_v7 = vadd.f32 %v2563_v35, %v3044_v24 }
 0x22e   :  { %v1344_v59 = vpop.f32.mrf.mxu1 }
 0x22f   :  { %v3355_v25 = vadd.f32 %v3044_v24, %v1344_v59  ;;  %1444 = vadd.xlane.f32.xlu0 %v1384_v56  ;;  %3569 = vst [vmem:[#allocation19_spill] sm:$0xff] %v3358_v7  ;;  %v1387_v37 = vmul.f32 %v3358_v7, %v3358_v7 }
 0x231   :  { %3568 = vst [vmem:[#allocation18_spill] sm:$0xff] %v3355_v25  ;;  %v1385_v0 = vmul.f32 %v3355_v25, %v3355_v25 }
 0x233   :  { %1446 = vadd.xlane.f32.xlu1 %v1385_v0  ;;  %1448 = vadd.xlane.f32.xlu0 %v1386_v8 }
 0x237   :  { %1450 = vadd.xlane.f32.xlu1 %v1387_v37 }
 0x23e   :  { %v703_v1 = vpop.xlane.xlu1 %702 }
 0x23f   :  { %v764_v49 = vmax.f32 %v703_v1, 1e-16 }
 0x240   :  { %v699_v59 = vpop.xlane.xlu0 %698 }
 0x241   :  { %2612 = vrsqrt.f32 %v764_v49  ;;  %v762_v56 = vmax.f32 %v699_v59, 1e-16 }
 0x242   :  { %v705_v28 = vpop.xlane.xlu1 %704 }
 0x243   :  { %2614 = vrsqrt.f32 %v762_v56  ;;  %v765_v24 = vmax.f32 %v705_v28, 1e-16 }
 0x244   :  { %v701_v35 = vpop.xlane.xlu0 %700 }
 0x245   :  { %2616 = vrsqrt.f32 %v765_v24  ;;  %v763_v25 = vmax.f32 %v701_v35, 1e-16 }
 0x247   :  { %2618 = vrsqrt.f32 %v763_v25 }
 0x248   :  { %v711_v12 = vpop.xlane.xlu0 %710 }
 0x249   :  { %v768_v48 = vmax.f32 %v711_v12, 1e-16 }
 0x24a   :  { %v713_v0 = vpop.xlane.xlu1 %712 }
 0x24b   :  { %2620 = vrsqrt.f32 %v768_v48  ;;  %v769_v8 = vmax.f32 %v713_v0, 1e-16 }
 0x24c   :  { %v707_v22 = vpop.xlane.xlu0 %706 }
 0x24d   :  { %2622 = vrsqrt.f32 %v769_v8  ;;  %v766_v37 = vmax.f32 %v707_v22, 1e-16 }
 0x24e   :  { %v2613_v7 = vpop.eup %2612  ;;  %v709_v1 = vpop.xlane.xlu1 %708 }
 0x24f   :  { %2624 = vrsqrt.f32 %v766_v37  ;;  %v767_v49 = vmax.f32 %v709_v1, 1e-16  ;;  %v828_v56 = vmul.f32 %v2613_v7, %v3047_v26 }
 0x250   :  { %v2615_v59 = vpop.eup %2614  ;;  %v719_v28 = vpop.xlane.xlu0 %718 }
 0x251   :  { %2626 = vrsqrt.f32 %v767_v49  ;;  %v772_v24 = vmax.f32 %v719_v28, 1e-16  ;;  %v826_v25 = vmul.f32 %v2615_v59, %v3050_v50  ;;  %v1550_v22 = vmul.f32 14.285714, %v828_v56 }
 0x252   :  { %v2617_v35 = vpop.eup %2616  ;;  %v721_v12 = vpop.xlane.xlu1 %720 }
 0x253   :  { %v829_v48 = vmul.f32 %v2617_v35, %v3055_v29  ;;  %2628 = vrsqrt.f32 %v772_v24  ;;  %v773_v0 = vmax.f32 %v721_v12, 1e-16  ;;  %v1548_v26 = vmul.f32 14.285714, %v826_v25 }
 0x254   :  { %v2619_v8 = vpop.eup %2618  ;;  %v715_v60 = vpop.xlane.xlu0 %714 }
 0x255   :  { %v1551_v54 = vmul.f32 14.285714, %v829_v48  ;;  %v827_v37 = vmul.f32 %v2619_v8, %v3060_v33  ;;  %2630 = vrsqrt.f32 %v773_v0  ;;  %v770_v1 = vmax.f32 %v715_v60, 1e-16 }
 0x256   :  { %v717_v7 = vpop.xlane.xlu1 %716 }
 0x257   :  { %v2094_v49 = vpack.c.bf16 %v1551_v54, %v1550_v22  ;;  %v1549_v28 = vmul.f32 14.285714, %v827_v37  ;;  %2632 = vrsqrt.f32 %v770_v1  ;;  %v771_v39 = vmax.f32 %v717_v7, 1e-16 }
 0x258   :  { %v2621_v50 = vpop.eup %2620  ;;  %v727_v59 = vpop.xlane.xlu0 %726 }
 0x259   :  { %2246 = vst [vmem:[%s3532_s6 + $0x8] sm:$0xff] %v2094_v49   ;;  %v2089_v29 = vpack.c.bf16 %v1549_v28, %v1548_v26  ;;  %v832_v56 = vmul.f32 %v2621_v50, %v3065_v16  ;;  %2634 = vrsqrt.f32 %v771_v39  ;;  %v776_v24 = vmax.f32 %v727_v59, 1e-16 }
 0x25a   :  { %v2623_v33 = vpop.eup %2622  ;;  %v729_v35 = vpop.xlane.xlu1 %728 }
 0x25b   :  { %2090 = vst [vmem:[%s3532_s6] sm:$0xff] %v2089_v29   ;;  %v833_v54 = vmul.f32 %v2623_v33, %v3073_v18  ;;  %2636 = vrsqrt.f32 %v776_v24  ;;  %v777_v60 = vmax.f32 %v729_v35, 1e-16  ;;  %v1554_v12 = vmul.f32 14.285714, %v832_v56 }
 0x25c   :  { %v2625_v25 = vpop.eup %2624  ;;  %v723_v48 = vpop.xlane.xlu0 %722 }
 0x25d   :  { %v1555_v0 = vmul.f32 14.285714, %v833_v54  ;;  %v830_v8 = vmul.f32 %v2625_v25, %v3070_v41  ;;  %2638 = vrsqrt.f32 %v777_v60  ;;  %v774_v16 = vmax.f32 %v723_v48, 1e-16 }
 0x25e   :  { %v2627_v39 = vpop.eup %2626  ;;  %v725_v22 = vpop.xlane.xlu1 %724 }
 0x25f   :  { %v2104_v37 = vpack.c.bf16 %v1555_v0, %v1554_v12  ;;  %v831_v1 = vmul.f32 %v2627_v39, %v3078_v44  ;;  %2640 = vrsqrt.f32 %v774_v16  ;;  %v775_v7 = vmax.f32 %v725_v22, 1e-16 }
 0x260   :  { %v2629_v26 = vpop.eup %2628  ;;  %v735_v49 = vpop.xlane.xlu0 %734  ;;  %v1552_v18 = vmul.f32 14.285714, %v830_v8 }
 0x261   :  { %2248 = vst [vmem:[%s3532_s6 + $0x18] sm:$0xff] %v2104_v37   ;;  %v1553_v28 = vmul.f32 14.285714, %v831_v1  ;;  %v836_v50 = vmul.f32 %v2629_v26, %v3083_v47  ;;  %v780_v41 = vmax.f32 %v735_v49, 1e-16  ;;  %2642 = vrsqrt.f32 %v775_v7 }
 0x262   :  { %v2631_v59 = vpop.eup %2630  ;;  %v737_v29 = vpop.xlane.xlu1 %736 }
 0x263   :  { %v2099_v56 = vpack.c.bf16 %v1553_v28, %v1552_v18  ;;  %v837_v24 = vmul.f32 %v2631_v59, %v3093_v53  ;;  %2644 = vrsqrt.f32 %v780_v41  ;;  %v781_v33 = vmax.f32 %v737_v29, 1e-16 }
 0x264   :  { %v2633_v44 = vpop.eup %2632  ;;  %v731_v35 = vpop.xlane.xlu0 %730  ;;  %v1558_v54 = vmul.f32 14.285714, %v836_v50 }
 0x265   :  { %2247 = vst [vmem:[%s3532_s6 + $0x10] sm:$0xff] %v2099_v56   ;;  %v1559_v60 = vmul.f32 14.285714, %v837_v24  ;;  %v834_v25 = vmul.f32 %v2633_v44, %v3090_v52  ;;  %v778_v47 = vmax.f32 %v731_v35, 1e-16  ;;  %2646 = vrsqrt.f32 %v781_v33 }
 0x266   :  { %v2635_v12 = vpop.eup %2634  ;;  %v733_v48 = vpop.xlane.xlu1 %732 }
 0x267   :  { %v2114_v0 = vpack.c.bf16 %v1559_v60, %v1558_v54  ;;  %v835_v8 = vmul.f32 %v2635_v12, %v3098_v55  ;;  %2648 = vrsqrt.f32 %v778_v47  ;;  %v779_v16 = vmax.f32 %v733_v48, 1e-16 }
 0x268   :  { %v2637_v53 = vpop.eup %2636  ;;  %v743_v39 = vpop.xlane.xlu0 %742  ;;  %v1556_v22 = vmul.f32 14.285714, %v834_v25 }
 0x269   :  { %2250 = vst [vmem:[%s3532_s6 + $0x28] sm:$0xff] %v2114_v0   ;;  %v1557_v37 = vmul.f32 14.285714, %v835_v8  ;;  %v840_v1 = vmul.f32 %v2637_v53, %v3103_v58  ;;  %v784_v52 = vmax.f32 %v743_v39, 1e-16  ;;  %2650 = vrsqrt.f32 %v779_v16 }
 0x26a   :  { %v2639_v26 = vpop.eup %2638  ;;  %v745_v7 = vpop.xlane.xlu1 %744 }
 0x26b   :  { %v2109_v49 = vpack.c.bf16 %v1557_v37, %v1556_v22  ;;  %v841_v18 = vmul.f32 %v2639_v26, %v3113_v63  ;;  %2652 = vrsqrt.f32 %v784_v52  ;;  %v785_v28 = vmax.f32 %v745_v7, 1e-16 }
 0x26c   :  { %v2641_v55 = vpop.eup %2640  ;;  %v739_v50 = vpop.xlane.xlu0 %738  ;;  %v1562_v41 = vmul.f32 14.285714, %v840_v1 }
 0x26d   :  { %2249 = vst [vmem:[%s3532_s6 + $0x20] sm:$0xff] %v2109_v49   ;;  %v1563_v59 = vmul.f32 14.285714, %v841_v18  ;;  %v782_v29 = vmax.f32 %v739_v50, 1e-16  ;;  %v838_v58 = vmul.f32 %v2641_v55, %v3110_v34  ;;  %2654 = vrsqrt.f32 %v785_v28 }
 0x26e   :  { %v741_v56 = vpop.xlane.xlu1 %740  ;;  %v2643_v24 = vpop.eup %2642 }
 0x26f   :  { %v2124_v44 = vpack.c.bf16 %v1563_v59, %v1562_v41  ;;  %2656 = vrsqrt.f32 %v782_v29  ;;  %v783_v33 = vmax.f32 %v741_v56, 1e-16  ;;  %v839_v35 = vmul.f32 %v2643_v24, %v3118_v2 }
 0x270   :  { %v2645_v63 = vpop.eup %2644  ;;  %v751_v54 = vpop.xlane.xlu0 %750  ;;  %v1560_v25 = vmul.f32 14.285714, %v838_v58 }
 0x271   :  { %2252 = vst [vmem:[%s3532_s6 + $0x38] sm:$0xff] %v2124_v44   ;;  %2658 = vrsqrt.f32 %v783_v33  ;;  %v788_v60 = vmax.f32 %v751_v54, 1e-16  ;;  %v1561_v47 = vmul.f32 14.285714, %v839_v35  ;;  %v844_v34 = vmul.f32 %v2645_v63, %v3123_v5 }
 0x272   :  { %v753_v12 = vpop.xlane.xlu1 %752  ;;  %v2647_v48 = vpop.eup %2646 }
 0x273   :  { %2660 = vrsqrt.f32 %v788_v60  ;;  %v789_v0 = vmax.f32 %v753_v12, 1e-16  ;;  %v2119_v53 = vpack.c.bf16 %v1561_v47, %v1560_v25  ;;  %v845_v16 = vmul.f32 %v2647_v48, %v3133_v10 }
 0x274   :  { %v2649_v8 = vpop.eup %2648  ;;  %v747_v2 = vpop.xlane.xlu0 %746  ;;  %v1566_v22 = vmul.f32 14.285714, %v844_v34 }
 0x275   :  { %2662 = vrsqrt.f32 %v789_v0  ;;  %v786_v39 = vmax.f32 %v747_v2, 1e-16  ;;  %2251 = vst [vmem:[%s3532_s6 + $0x30] sm:$0xff] %v2119_v53   ;;  %v1567_v37 = vmul.f32 14.285714, %v845_v16  ;;  %v842_v1 = vmul.f32 %v2649_v8, %v3130_v9 }
 0x276   :  { %v749_v5 = vpop.xlane.xlu1 %748  ;;  %v2651_v52 = vpop.eup %2650 }
 0x277   :  { %2664 = vrsqrt.f32 %v786_v39  ;;  %v787_v26 = vmax.f32 %v749_v5, 1e-16  ;;  %v2134_v49 = vpack.c.bf16 %v1567_v37, %v1566_v22  ;;  %v843_v18 = vmul.f32 %v2651_v52, %v3138_v15 }
 0x278   :  { %v2653_v7 = vpop.eup %2652  ;;  %v759_v10 = vpop.xlane.xlu0 %758  ;;  %v1564_v28 = vmul.f32 14.285714, %v842_v1 }
 0x279   :  { %2666 = vrsqrt.f32 %v787_v26  ;;  %v792_v55 = vmax.f32 %v759_v10, 1e-16  ;;  %2254 = vst [vmem:[%s3532_s6 + $0x48] sm:$0xff] %v2134_v49   ;;  %v1565_v50 = vmul.f32 14.285714, %v843_v18  ;;  %v848_v41 = vmul.f32 %v2653_v7, %v3143_v21 }
 0x27a   :  { %v761_v9 = vpop.xlane.xlu1 %760  ;;  %v2655_v59 = vpop.eup %2654 }
 0x27b   :  { %2668 = vrsqrt.f32 %v792_v55  ;;  %v793_v29 = vmax.f32 %v761_v9, 1e-16  ;;  %v2129_v56 = vpack.c.bf16 %v1565_v50, %v1564_v28  ;;  %v849_v24 = vmul.f32 %v2655_v59, %v3153_v27 }
 0x27c   :  { %v2657_v58 = vpop.eup %2656  ;;  %v755_v15 = vpop.xlane.xlu0 %754  ;;  %v1570_v35 = vmul.f32 14.285714, %v848_v41 }
 0x27d   :  { %v846_v44 = vmul.f32 %v2657_v58, %v3150_v14  ;;  %2670 = vrsqrt.f32 %v793_v29  ;;  %v790_v33 = vmax.f32 %v755_v15, 1e-16  ;;  %2253 = vst [vmem:[%s3532_s6 + $0x40] sm:$0xff] %v2129_v56   ;;  %v1571_v21 = vmul.f32 14.285714, %v849_v24 }
 0x27e   :  { %v2659_v63 = vpop.eup %2658  ;;  %v757_v54 = vpop.xlane.xlu1 %756 }
 0x27f   :  { %v847_v60 = vmul.f32 %v2659_v63, %v3158_v31  ;;  %2672 = vrsqrt.f32 %v790_v33  ;;  %v791_v25 = vmax.f32 %v757_v54, 1e-16  ;;  %v2144_v34 = vpack.c.bf16 %v1571_v21, %v1570_v35 }
 0x280   :  { %v2661_v47 = vpop.eup %2660  ;;  %v1568_v27 = vmul.f32 14.285714, %v846_v44  ;;  %v1393_v12 = vpop.xlane.xlu0 %1392 }
 0x281   :  { %v1569_v48 = vmul.f32 14.285714, %v847_v60  ;;  %v852_v14 = vmul.f32 %v2661_v47, %v3163_v38  ;;  %2674 = vrsqrt.f32 %v791_v25  ;;  %v1454_v0 = vmax.f32 %v1393_v12, 1e-16  ;;  %2256 = vst [vmem:[%s3532_s6 + $0x58] sm:$0xff] %v2144_v34  }
 0x282   :  { %v2663_v8 = vpop.eup %2662  ;;  %v1395_v53 = vpop.xlane.xlu1 %1394 }
 0x283   :  { %v2139_v16 = vpack.c.bf16 %v1569_v48, %v1568_v27  ;;  %v853_v31 = vmul.f32 %v2663_v8, %v3173_v46  ;;  %2676 = vrsqrt.f32 %v1454_v0  ;;  %v1455_v39 = vmax.f32 %v1395_v53, 1e-16 }
 0x284   :  { %v2665_v2 = vpop.eup %2664  ;;  %v1389_v22 = vpop.xlane.xlu0 %1388  ;;  %v1574_v38 = vmul.f32 14.285714, %v852_v14 }
 0x285   :  { %2255 = vst [vmem:[%s3532_s6 + $0x50] sm:$0xff] %v2139_v16   ;;  %v1575_v37 = vmul.f32 14.285714, %v853_v31  ;;  %v850_v1 = vmul.f32 %v2665_v2, %v3170_v45  ;;  %v1452_v5 = vmax.f32 %v1389_v22, 1e-16  ;;  %2678 = vrsqrt.f32 %v1455_v39 }
 0x286   :  { %v2667_v52 = vpop.eup %2666  ;;  %v1391_v26 = vpop.xlane.xlu1 %1390 }
 0x287   :  { %v2154_v7 = vpack.c.bf16 %v1575_v37, %v1574_v38  ;;  %v851_v49 = vmul.f32 %v2667_v52, %v3178_v19  ;;  %2680 = vrsqrt.f32 %v1452_v5  ;;  %v1453_v18 = vmax.f32 %v1391_v26, 1e-16 }
 0x288   :  { %v2669_v46 = vpop.eup %2668  ;;  %v1401_v10 = vpop.xlane.xlu0 %1400  ;;  %v1572_v55 = vmul.f32 14.285714, %v850_v1 }
 0x289   :  { %2258 = vst [vmem:[%s3532_s6 + $0x68] sm:$0xff] %v2154_v7   ;;  %v1573_v28 = vmul.f32 14.285714, %v851_v49  ;;  %v856_v50 = vmul.f32 %v2669_v46, %v3183_v32  ;;  %v1458_v45 = vmax.f32 %v1401_v10, 1e-16  ;;  %2682 = vrsqrt.f32 %v1453_v18 }
 0x28a   :  { %v2671_v41 = vpop.eup %2670  ;;  %v1403_v9 = vpop.xlane.xlu1 %1402 }
 0x28b   :  { %v2149_v59 = vpack.c.bf16 %v1573_v28, %v1572_v55  ;;  %v857_v29 = vmul.f32 %v2671_v41, %v3193_v62  ;;  %2684 = vrsqrt.f32 %v1458_v45  ;;  %v1459_v58 = vmax.f32 %v1403_v9, 1e-16 }
 0x28c   :  { %v2673_v19 = vpop.eup %2672  ;;  %v1397_v56 = vpop.xlane.xlu0 %1396  ;;  %v1578_v24 = vmul.f32 14.285714, %v856_v50 }
 0x28d   :  { %2257 = vst [vmem:[%s3532_s6 + $0x60] sm:$0xff] %v2149_v59   ;;  %v1579_v15 = vmul.f32 14.285714, %v857_v29  ;;  %v854_v44 = vmul.f32 %v2673_v19, %v3190_v61  ;;  %v1456_v32 = vmax.f32 %v1397_v56, 1e-16  ;;  %2686 = vrsqrt.f32 %v1459_v58 }
 0x28e   :  { %v2675_v33 = vpop.eup %2674  ;;  %v1399_v63 = vpop.xlane.xlu1 %1398 }
 0x28f   :  { %v2164_v35 = vpack.c.bf16 %v1579_v15, %v1578_v24  ;;  %v855_v21 = vmul.f32 %v2675_v33, %v3198_v3  ;;  %2688 = vrsqrt.f32 %v1456_v32  ;;  %v1457_v62 = vmax.f32 %v1399_v63, 1e-16 }
 0x290   :  { %v1409_v54 = vpop.xlane.xlu0 %1408  ;;  %v2677_v60 = vpop.eup %2676  ;;  %v1576_v25 = vmul.f32 14.285714, %v854_v44 }
 0x291   :  { %2260 = vst [vmem:[%s3532_s6 + $0x78] sm:$0xff] %v2164_v35   ;;  %v1577_v47 = vmul.f32 14.285714, %v855_v21  ;;  %v1462_v34 = vmax.f32 %v1409_v54, 1e-16  ;;  %2690 = vrsqrt.f32 %v1457_v62  ;;  %v1518_v14 = vmul.f32 %v2677_v60, %v3203_v36 }
 0x292   :  { %v1411_v61 = vpop.xlane.xlu1 %1410  ;;  %v2679_v27 = vpop.eup %2678 }
 0x293   :  { %v2159_v12 = vpack.c.bf16 %v1577_v47, %v1576_v25  ;;  %2692 = vrsqrt.f32 %v1462_v34  ;;  %v1463_v48 = vmax.f32 %v1411_v61, 1e-16  ;;  %v1519_v3 = vmul.f32 %v2679_v27, %v3213_v20 }
 0x294   :  { %v1405_v0 = vpop.xlane.xlu0 %1404  ;;  %v2681_v8 = vpop.eup %2680 }
 0x295   :  { %2259 = vst [vmem:[%s3532_s6 + $0x70] sm:$0xff] %v2159_v12   ;;  %2694 = vrsqrt.f32 %v1463_v48  ;;  %v1460_v53 = vmax.f32 %v1405_v0, 1e-16  ;;  %v2174_v16 = vpack.c.bf16 %v1519_v3, %v1518_v14  ;;  %v1516_v36 = vmul.f32 %v2681_v8, %v3210_v17  ;;  %v3570_v14 = vld [vmem:[#allocation2_spill] sm:$0xff]  ;;  %v3571_v0 = vld [vmem:[#allocation3_spill] sm:$0xff] }
 0x296   :  { %v1407_v31 = vpop.xlane.xlu1 %1406  ;;  %v2683_v2 = vpop.eup %2682 }
 0x297   :  { %2696 = vrsqrt.f32 %v1460_v53  ;;  %v1461_v39 = vmax.f32 %v1407_v31, 1e-16  ;;  %2261 = vst [vmem:[%s3533_s7 + $0x8] sm:$0xff] %v2174_v16   ;;  %v1517_v20 = vmul.f32 %v2683_v2, %v3218_v23 }
 0x298   :  { %v1417_v22 = vpop.xlane.xlu0 %1416  ;;  %v2685_v38 = vpop.eup %2684 }
 0x299   :  { %2698 = vrsqrt.f32 %v1461_v39  ;;  %v1466_v37 = vmax.f32 %v1417_v22, 1e-16  ;;  %v2169_v1 = vpack.c.bf16 %v1517_v20, %v1516_v36  ;;  %v1522_v7 = vmul.f32 %v2685_v38, %v3223_v30  ;;  %v3572_v36 = vld [vmem:[#allocation4_spill] sm:$0xff]  ;;  %v3573_v22 = vld [vmem:[#allocation6_spill] sm:$0xff] }
 0x29a   :  { %v1419_v5 = vpop.xlane.xlu1 %1418  ;;  %v2687_v52 = vpop.eup %2686 }
 0x29b   :  { %2700 = vrsqrt.f32 %v1466_v37  ;;  %v1467_v26 = vmax.f32 %v1419_v5, 1e-16  ;;  %2170 = vst [vmem:[%s3533_s7] sm:$0xff] %v2169_v1   ;;  %v1523_v49 = vmul.f32 %v2687_v52, %v3233_v43 }
 0x29c   :  { %v1413_v17 = vpop.xlane.xlu0 %1412  ;;  %v2689_v46 = vpop.eup %2688 }
 0x29d   :  { %2702 = vrsqrt.f32 %v1467_v26  ;;  %v1464_v23 = vmax.f32 %v1413_v17, 1e-16  ;;  %v2184_v18 = vpack.c.bf16 %v1523_v49, %v1522_v7  ;;  %v1520_v45 = vmul.f32 %v2689_v46, %v3230_v42  ;;  %v3574_v17 = vld [vmem:[#allocation5_spill] sm:$0xff] }
 0x29e   :  { %v1415_v10 = vpop.xlane.xlu1 %1414  ;;  %v2691_v55 = vpop.eup %2690 }
 0x29f   :  { %2704 = vrsqrt.f32 %v1464_v23  ;;  %v1465_v28 = vmax.f32 %v1415_v10, 1e-16  ;;  %2263 = vst [vmem:[%s3533_s7 + $0x18] sm:$0xff] %v2184_v18   ;;  %v1521_v30 = vmul.f32 %v2691_v55, %v3238_v51  ;;  %v3575_v23 = vld [vmem:[#allocation7_spill] sm:$0xff] }
 0x2a0   :  { %v2693_v50 = vpop.eup %2692  ;;  %v1425_v41 = vpop.xlane.xlu0 %1424 }
 0x2a1   :  { %2706 = vrsqrt.f32 %v1465_v28  ;;  %v1470_v43 = vmax.f32 %v1425_v41, 1e-16  ;;  %v2179_v59 = vpack.c.bf16 %v1521_v30, %v1520_v45  ;;  %v1526_v19 = vmul.f32 %v2693_v50, %v3243_v57  ;;  %v3576_v41 = vld [vmem:[#allocation8_spill] sm:$0xff] }
 0x2a2   :  { %v2695_v9 = vpop.eup %2694  ;;  %v1427_v29 = vpop.xlane.xlu1 %1426 }
 0x2a3   :  { %v1527_v58 = vmul.f32 %v2695_v9, %v3253_v6  ;;  %2708 = vrsqrt.f32 %v1470_v43  ;;  %v1471_v56 = vmax.f32 %v1427_v29, 1e-16  ;;  %2262 = vst [vmem:[%s3533_s7 + $0x10] sm:$0xff] %v2179_v59   ;;  %v3577_v9 = vld [vmem:[#allocation10_spill] sm:$0xff] }
 0x2a4   :  { %v2697_v24 = vpop.eup %2696  ;;  %v1421_v42 = vpop.xlane.xlu0 %1420 }
 0x2a5   :  { %v2194_v15 = vpack.c.bf16 %v1527_v58, %v1526_v19  ;;  %2710 = vrsqrt.f32 %v1471_v56  ;;  %v1468_v51 = vmax.f32 %v1421_v42, 1e-16  ;;  %v1524_v57 = vmul.f32 %v2697_v24, %v3250_v4 }
 0x2a6   :  { %v2699_v44 = vpop.eup %2698  ;;  %v1423_v32 = vpop.xlane.xlu1 %1422 }
 0x2a7   :  { %2265 = vst [vmem:[%s3533_s7 + $0x28] sm:$0xff] %v2194_v15   ;;  %v1525_v6 = vmul.f32 %v2699_v44, %v3258_v11  ;;  %2712 = vrsqrt.f32 %v1468_v51  ;;  %v1469_v33 = vmax.f32 %v1423_v32, 1e-16  ;;  %v3578_v51 = vld [vmem:[#allocation9_spill] sm:$0xff]  ;;  %v3579_v32 = vld [vmem:[#allocation11_spill] sm:$0xff] }
 0x2a8   :  { %v2701_v63 = vpop.eup %2700  ;;  %v1433_v35 = vpop.xlane.xlu0 %1432 }
 0x2a9   :  { %v2189_v21 = vpack.c.bf16 %v1525_v6, %v1524_v57  ;;  %2714 = vrsqrt.f32 %v1469_v33  ;;  %v1474_v62 = vmax.f32 %v1433_v35, 1e-16  ;;  %v1530_v25 = vmul.f32 %v2701_v63, %v3263_v13 }
 0x2aa   :  { %v2703_v54 = vpop.eup %2702  ;;  %v1435_v60 = vpop.xlane.xlu1 %1434 }
 0x2ab   :  { %2264 = vst [vmem:[%s3533_s7 + $0x20] sm:$0xff] %v2189_v21   ;;  %v1531_v47 = vmul.f32 %v2703_v54, %v3273_v40  ;;  %2716 = vrsqrt.f32 %v1474_v62  ;;  %v1475_v4 = vmax.f32 %v1435_v60, 1e-16  ;;  %v3580_v62 = vld [vmem:[#allocation12_spill] sm:$0xff]  ;;  %v3581_v60 = vld [vmem:[#allocation14_spill] sm:$0xff] }
 0x2ac   :  { %v2705_v11 = vpop.eup %2704  ;;  %v1429_v34 = vpop.xlane.xlu0 %1428 }
 0x2ad   :  { %v2204_v61 = vpack.c.bf16 %v1531_v47, %v1530_v25  ;;  %2718 = vrsqrt.f32 %v1475_v4  ;;  %v1472_v27 = vmax.f32 %v1429_v34, 1e-16  ;;  %v1528_v3 = vmul.f32 %v2705_v11, %v3570_v14  ;;  %v3582_v34 = vld [vmem:[#allocation13_spill] sm:$0xff] }
 0x2ae   :  { %v2707_v12 = vpop.eup %2706  ;;  %v1431_v48 = vpop.xlane.xlu1 %1430 }
 0x2af   :  { %2267 = vst [vmem:[%s3533_s7 + $0x38] sm:$0xff] %v2204_v61   ;;  %v1529_v8 = vmul.f32 %v2707_v12, %v3571_v0  ;;  %2720 = vrsqrt.f32 %v1472_v27  ;;  %v1473_v13 = vmax.f32 %v1431_v48, 1e-16  ;;  %v3583_v27 = vld [vmem:[#allocation15_spill] sm:$0xff]  ;;  %v3584_v0 = vld [vmem:[#allocation16_spill] sm:$0xff] }
 0x2b0   :  { %v2709_v40 = vpop.eup %2708  ;;  %v1441_v53 = vpop.xlane.xlu0 %1440 }
 0x2b1   :  { %v2199_v16 = vpack.c.bf16 %v1529_v8, %v1528_v3  ;;  %2722 = vrsqrt.f32 %v1473_v13  ;;  %v1478_v31 = vmax.f32 %v1441_v53, 1e-16  ;;  %v1534_v20 = vmul.f32 %v2709_v40, %v3572_v36  ;;  %v3585_v13 = vld [vmem:[#allocation18_spill] sm:$0xff]  ;;  %v3587_v36 = vld [vmem:[#allocation19_spill] sm:$0xff] }
 0x2b2   :  { %v2711_v2 = vpop.eup %2710  ;;  %v1443_v39 = vpop.xlane.xlu1 %1442 }
 0x2b3   :  { %2266 = vst [vmem:[%s3533_s7 + $0x30] sm:$0xff] %v2199_v16   ;;  %v1535_v38 = vmul.f32 %v2711_v2, %v3573_v22  ;;  %2724 = vrsqrt.f32 %v1478_v31  ;;  %v1479_v37 = vmax.f32 %v1443_v39, 1e-16  ;;  %v3586_v2 = vld [vmem:[#allocation17_spill] sm:$0xff] }
 0x2b4   :  { %v2713_v1 = vpop.eup %2712  ;;  %v1437_v5 = vpop.xlane.xlu0 %1436 }
 0x2b5   :  { %v2214_v52 = vpack.c.bf16 %v1535_v38, %v1534_v20  ;;  %2726 = vrsqrt.f32 %v1479_v37  ;;  %v1476_v26 = vmax.f32 %v1437_v5, 1e-16  ;;  %v1532_v46 = vmul.f32 %v2713_v1, %v3574_v17 }
 0x2b6   :  { %v2715_v7 = vpop.eup %2714  ;;  %v1439_v49 = vpop.xlane.xlu1 %1438 }
 0x2b7   :  { %2269 = vst [vmem:[%s3533_s7 + $0x48] sm:$0xff] %v2214_v52   ;;  %v1533_v18 = vmul.f32 %v2715_v7, %v3575_v23  ;;  %2728 = vrsqrt.f32 %v1476_v26  ;;  %v1477_v10 = vmax.f32 %v1439_v49, 1e-16 }
 0x2b8   :  { %v2717_v55 = vpop.eup %2716  ;;  %v1445_v28 = vpop.xlane.xlu0 %1444 }
 0x2b9   :  { %v2209_v50 = vpack.c.bf16 %v1533_v18, %v1532_v46  ;;  %2730 = vrsqrt.f32 %v1477_v10  ;;  %v1480_v45 = vmax.f32 %v1445_v28, 1e-16  ;;  %v1538_v43 = vmul.f32 %v2717_v55, %v3576_v41 }
 0x2ba   :  { %v2719_v30 = vpop.eup %2718 }
 0x2bb   :  { %2268 = vst [vmem:[%s3533_s7 + $0x40] sm:$0xff] %v2209_v50   ;;  %v1539_v59 = vmul.f32 %v2719_v30, %v3577_v9  ;;  %2732 = vrsqrt.f32 %v1480_v45 }
 0x2bc   :  { %v2721_v29 = vpop.eup %2720  ;;  %v1447_v19 = vpop.xlane.xlu1 %1446 }
 0x2bd   :  { %v1449_v58 = vpop.xlane.xlu0 %1448  ;;  %v2224_v56 = vpack.c.bf16 %v1539_v59, %v1538_v43  ;;  %v1481_v24 = vmax.f32 %v1447_v19, 1e-16  ;;  %v1536_v44 = vmul.f32 %v2721_v29, %v3578_v51 }
 0x2be   :  { %v1482_v42 = vmax.f32 %v1449_v58, 1e-16  ;;  %v2723_v15 = vpop.eup %2722 }
 0x2bf   :  { %2271 = vst [vmem:[%s3533_s7 + $0x58] sm:$0xff] %v2224_v56   ;;  %v1537_v57 = vmul.f32 %v2723_v15, %v3579_v32  ;;  %2734 = vrsqrt.f32 %v1481_v24 }
 0x2c0   :  { %v2725_v6 = vpop.eup %2724  ;;  %v1451_v33 = vpop.xlane.xlu1 %1450  ;;  %2736 = vrsqrt.f32 %v1482_v42 }
 0x2c1   :  { %v2219_v63 = vpack.c.bf16 %v1537_v57, %v1536_v44  ;;  %v1483_v35 = vmax.f32 %v1451_v33, 1e-16  ;;  %v1542_v54 = vmul.f32 %v2725_v6, %v3580_v62 }
 0x2c2   :  { %v2727_v21 = vpop.eup %2726 }
 0x2c3   :  { %2270 = vst [vmem:[%s3533_s7 + $0x50] sm:$0xff] %v2219_v63   ;;  %v1543_v25 = vmul.f32 %v2727_v21, %v3581_v60  ;;  %2738 = vrsqrt.f32 %v1483_v35 }
 0x2c4   :  { %v2729_v47 = vpop.eup %2728 }
 0x2c5   :  { %v2234_v4 = vpack.c.bf16 %v1543_v25, %v1542_v54  ;;  %v1540_v61 = vmul.f32 %v2729_v47, %v3582_v34 }
 0x2c6   :  { %v2731_v11 = vpop.eup %2730 }
 0x2c7   :  { %2273 = vst [vmem:[%s3533_s7 + $0x68] sm:$0xff] %v2234_v4   ;;  %v1541_v12 = vmul.f32 %v2731_v11, %v3583_v27 }
 0x2c8   :  { %v2733_v14 = vpop.eup %2732 }
 0x2c9   :  { %v2229_v48 = vpack.c.bf16 %v1541_v12, %v1540_v61  ;;  %v1544_v8 = vmul.f32 %v2733_v14, %v3584_v0 }
 0x2cb   :  { %2272 = vst [vmem:[%s3533_s7 + $0x60] sm:$0xff] %v2229_v48  }
 0x2cc   :  { %v2735_v3 = vpop.eup %2734 }
 0x2cd   :  { %v1545_v40 = vmul.f32 %v2735_v3, %v3585_v13  ;;  %v2737_v53 = vpop.eup %2736 }
 0x2ce   :  { %v1546_v39 = vmul.f32 %v2737_v53, %v3586_v2 }
 0x2cf   :  { %v2239_v16 = vpack.c.bf16 %v1545_v40, %v1544_v8 }
 0x2d0   :  { %v2739_v31 = vpop.eup %2738 }
 0x2d1   :  { %2274 = vst [vmem:[%s3533_s7 + $0x70] sm:$0xff] %v2239_v16   ;;  %v1547_v20 = vmul.f32 %v2739_v31, %v3587_v36 }
 0x2d3   :  { %v2244_v22 = vpack.c.bf16 %v1547_v20, %v1546_v39 }
 0x2d5   :  { %2275 = vst [vmem:[%s3533_s7 + $0x78] sm:$0xff] %v2244_v22  }

</bundles_post_ra>
